<compile_context>
chip_gen: v7x
topology: tpu7x:2x2x1
jax: 0.10.0
libtpu: 0.0.40
codegen_flags: <defaults>
</compile_context>

<pallas_src>
import functools
import math

import jax
import jax.numpy as jnp
from jax.experimental import pallas as pl
from jax.experimental.pallas import tpu as pltpu


# ----------------------------------------------------------------------------
# helpers
# ----------------------------------------------------------------------------
def _round_up(x, m):
    return ((x + m - 1) // m) * m


def _pick_row_block(m):
    for rb in (512, 256, 128):
        if m % rb == 0:
            return rb
    return m                      # small M: single full block


def _pick_time_block(t):
    for tt in (32, 16, 8, 4, 2):
        if t % tt == 0:
            return tt
    return t                      # odd T: single chunk (demo-scale heuristic)


def _scatter_gate_cols(w_t, h, hp):
    """(R, 4*h) -> (R, 4*hp): each PyTorch gate [i,f,g,o] gets its own
    lane-aligned hp-wide slot, zeros elsewhere."""
    if hp == h:
        return w_t
    r = w_t.shape[0]
    out = jnp.zeros((r, 4 * hp), w_t.dtype)
    for g in range(4):
        out = out.at[:, g * hp:g * hp + h].set(w_t[:, g * h:(g + 1) * h])
    return out


def _pad_rows(w, rows_p):
    r = w.shape[0]
    if rows_p == r:
        return w
    pad = jnp.zeros((rows_p - r,) + w.shape[1:], w.dtype)
    return jnp.concatenate([w, pad], axis=0)


# ----------------------------------------------------------------------------
# Kernel 1: time-parallel input projection  gates_x = x @ W_ih_t + bias
# (one big GEMM over all T*B rows, hoisted out of the serial recurrence)
# ----------------------------------------------------------------------------
def _proj_kernel(x_ref, w_ref, b_ref, g_ref):
    g_ref[...] = (
        jnp.dot(x_ref[...].astype(w_ref.dtype), w_ref[...],
                preferred_element_type=jnp.float32)
        + b_ref[...]
    ).astype(g_ref.dtype)


def input_projection(x2d, w_ih_t, bias):
    m, d = x2d.shape
    g = w_ih_t.shape[1]
    rb = _pick_row_block(m)
    return pl.pallas_call(
        _proj_kernel,
        out_shape=jax.ShapeDtypeStruct((m, g), jnp.float32),
        grid_spec=pltpu.PrefetchScalarGridSpec(
            num_scalar_prefetch=0,
            grid=(m // rb,),
            in_specs=[
                pl.BlockSpec((rb, d), lambda i: (i, 0)),
                pl.BlockSpec((d, g), lambda i: (0, 0)),
                pl.BlockSpec((1, g), lambda i: (0, 0)),
            ],
            out_specs=pl.BlockSpec((rb, g), lambda i: (i, 0)),
        ),
        compiler_params=pltpu.CompilerParams(
            dimension_semantics=("parallel",)),
    )(x2d, w_ih_t, bias)


# ----------------------------------------------------------------------------
# Recurrent cell math (PyTorch gate order [i, f, g, o]; hp is 128-aligned so
# every gate slice is a whole-lane-tile select)
# ----------------------------------------------------------------------------
def _cell_update(gates, c_prev, hp):
    i_g = jax.nn.sigmoid(gates[:, 0 * hp:1 * hp])
    f_g = jax.nn.sigmoid(gates[:, 1 * hp:2 * hp])
    g_g = jnp.tanh(gates[:, 2 * hp:3 * hp])
    o_g = jax.nn.sigmoid(gates[:, 3 * hp:4 * hp])
    c_new = f_g * c_prev + i_g * g_g
    h_new = o_g * jnp.tanh(c_new)
    return h_new, c_new


# ----------------------------------------------------------------------------
# Kernel 2: recurrence over a chunk of TT time steps, emitting the hidden
# sequence (used for every layer except the last).
# ----------------------------------------------------------------------------
def _lstm_seq_kernel(gx_ref, whh_ref, hseq_ref, h_sc, c_sc, *, tt, hp):
    @pl.when(pl.program_id(0) == 0)
    def _init():
        h_sc[...] = jnp.zeros_like(h_sc)
        c_sc[...] = jnp.zeros_like(c_sc)

    w_hh = whh_ref[...]                       # VMEM-resident across the grid
    h = h_sc[...]
    c = c_sc[...]
    for s in range(tt):                       # unrolled inner time loop
        gates = gx_ref[s] + jnp.dot(h.astype(w_hh.dtype), w_hh,
                                    preferred_element_type=jnp.float32)
        h, c = _cell_update(gates, c, hp)
        hseq_ref[s] = h.astype(hseq_ref.dtype)
    h_sc[...] = h
    c_sc[...] = c


def lstm_seq_layer(gx_tbg, w_hh_t):
    t, b, g = gx_tbg.shape
    hp = w_hh_t.shape[0]
    tt = _pick_time_block(t)
    kernel = functools.partial(_lstm_seq_kernel, tt=tt, hp=hp)
    return pl.pallas_call(
        kernel,
        out_shape=jax.ShapeDtypeStruct((t, b, hp), jnp.float32),
        grid_spec=pltpu.PrefetchScalarGridSpec(
            num_scalar_prefetch=0,
            grid=(t // tt,),
            in_specs=[
                pl.BlockSpec((tt, b, g), lambda i: (i, 0, 0)),
                pl.BlockSpec((hp, g), lambda i: (0, 0)),
            ],
            out_specs=pl.BlockSpec((tt, b, hp), lambda i: (i, 0, 0)),
            scratch_shapes=[
                pltpu.VMEM((b, hp), jnp.float32),   # h state
                pltpu.VMEM((b, hp), jnp.float32),   # c state
            ],
        ),
        compiler_params=pltpu.CompilerParams(
            dimension_semantics=("arbitrary",)),     # serial recurrence
    )(gx_tbg, w_hh_t)


# ----------------------------------------------------------------------------
# Kernel 3: last layer recurrence with the MLP head fused in.  Only hn is
# consumed downstream, so the full (T, B, H) sequence is never written back;
# the (B, out) result is produced once at the final time chunk.
# ----------------------------------------------------------------------------
def _lstm_head_kernel(gx_ref, whh_ref, w1_ref, b1_ref, w2_ref, b2_ref,
                      out_ref, h_sc, c_sc, *, tt, hp):
    @pl.when(pl.program_id(0) == 0)
    def _init():
        h_sc[...] = jnp.zeros_like(h_sc)
        c_sc[...] = jnp.zeros_like(c_sc)

    w_hh = whh_ref[...]
    h = h_sc[...]
    c = c_sc[...]
    for s in range(tt):
        gates = gx_ref[s] + jnp.dot(h.astype(w_hh.dtype), w_hh,
                                    preferred_element_type=jnp.float32)
        h, c = _cell_update(gates, c, hp)
    h_sc[...] = h
    c_sc[...] = c

    @pl.when(pl.program_id(0) == pl.num_programs(0) - 1)
    def _head():
        hn = jnp.maximum(h, 0.0)                                  # relu(hn)
        z = jnp.dot(hn.astype(w1_ref.dtype), w1_ref[...],
                    preferred_element_type=jnp.float32) + b1_ref[...]
        z = jnp.maximum(z, 0.0)                                   # relu
        o = jnp.dot(z.astype(w2_ref.dtype), w2_ref[...],
                    preferred_element_type=jnp.float32) + b2_ref[...]
        out_ref[...] = o.astype(out_ref.dtype)


def lstm_last_layer(gx_tbg, w_hh_t, w1_t, b1, w2_t, b2):
    t, b, g = gx_tbg.shape
    hp = w_hh_t.shape[0]
    f = w1_t.shape[1]
    o = w2_t.shape[1]
    tt = _pick_time_block(t)
    kernel = functools.partial(_lstm_head_kernel, tt=tt, hp=hp)
    return pl.pallas_call(
        kernel,
        out_shape=jax.ShapeDtypeStruct((b, o), jnp.float32),
        grid_spec=pltpu.PrefetchScalarGridSpec(
            num_scalar_prefetch=0,
            grid=(t // tt,),
            in_specs=[
                pl.BlockSpec((tt, b, g), lambda i: (i, 0, 0)),
                pl.BlockSpec((hp, g), lambda i: (0, 0)),
                pl.BlockSpec((hp, f), lambda i: (0, 0)),
                pl.BlockSpec((1, f), lambda i: (0, 0)),
                pl.BlockSpec((f, o), lambda i: (0, 0)),
                pl.BlockSpec((1, o), lambda i: (0, 0)),
            ],
            out_specs=pl.BlockSpec((b, o), lambda i: (0, 0)),
            scratch_shapes=[
                pltpu.VMEM((b, hp), jnp.float32),
                pltpu.VMEM((b, hp), jnp.float32),
            ],
        ),
        compiler_params=pltpu.CompilerParams(
            dimension_semantics=("arbitrary",)),
    )(gx_tbg, w_hh_t, w1_t, b1, w2_t, b2)


# ----------------------------------------------------------------------------
# Parameters (PyTorch layout) and packing into the kernel layout
# ----------------------------------------------------------------------------
def init_torch_params(key, input_size, hidden_size, num_layers,
                      nr_fc_features, output_size, dtype=jnp.float32):
    """PyTorch-layout weights with nn.LSTM / nn.Linear default uniform init."""
    raw = {"lstm": []}
    bound = 1.0 / math.sqrt(hidden_size)
    for layer in range(num_layers):
        d_in = input_size if layer == 0 else hidden_size
        key, k1, k2, k3, k4 = jax.random.split(key, 5)
        raw["lstm"].append(dict(
            w_ih=jax.random.uniform(k1, (4 * hidden_size, d_in), dtype, -bound, bound),
            w_hh=jax.random.uniform(k2, (4 * hidden_size, hidden_size), dtype, -bound, bound),
            b_ih=jax.random.uniform(k3, (4 * hidden_size,), dtype, -bound, bound),
            b_hh=jax.random.uniform(k4, (4 * hidden_size,), dtype, -bound, bound),
        ))
    b1 = 1.0 / math.sqrt(hidden_size)
    key, k1, k2 = jax.random.split(key, 3)
    raw["fc1_w"] = jax.random.uniform(k1, (nr_fc_features, hidden_size), dtype, -b1, b1)
    raw["fc1_b"] = jax.random.uniform(k2, (nr_fc_features,), dtype, -b1, b1)
    b2 = 1.0 / math.sqrt(nr_fc_features)
    key, k1, k2 = jax.random.split(key, 3)
    raw["fc2_w"] = jax.random.uniform(k1, (output_size, nr_fc_features), dtype, -b2, b2)
    raw["fc2_b"] = jax.random.uniform(k2, (output_size,), dtype, -b2, b2)
    return raw


def pack_params(raw, hidden_size, weight_dtype=jnp.float32):
    """Transpose + zero-pad weights into the lane-aligned kernel layout.

    H is padded to Hp (multiple of 128); zero-padded gate columns/bias keep
    the padded h/c lanes exactly 0, so numerics match the unpadded LSTM.
    Pass weight_dtype=jnp.bfloat16 to halve resident weight VMEM / HBM traffic
    (kernels keep f32 accumulation, f32 cell state and f32 gate math).
    """
    h = hidden_size
    hp = _round_up(max(h, 128), 128)
    packed = {"lstm": []}
    for li, layer in enumerate(raw["lstm"]):
        w_ih_t = _scatter_gate_cols(jnp.transpose(layer["w_ih"]), h, hp)
        if li > 0:                               # consumes the padded hidden seq
            w_ih_t = _pad_rows(w_ih_t, hp)
        w_hh_t = _pad_rows(_scatter_gate_cols(jnp.transpose(layer["w_hh"]), h, hp), hp)
        bias = _scatter_gate_cols((layer["b_ih"] + layer["b_hh"])[None, :], h, hp)
        packed["lstm"].append(dict(
            w_ih_t=w_ih_t.astype(weight_dtype),
            w_hh_t=w_hh_t.astype(weight_dtype),
            bias=bias.astype(jnp.float32),
        ))
    packed["fc1_w_t"] = _pad_rows(jnp.transpose(raw["fc1_w"]), hp).astype(weight_dtype)
    packed["fc1_b"] = raw["fc1_b"][None, :].astype(jnp.float32)
    packed["fc2_w_t"] = jnp.transpose(raw["fc2_w"]).astype(weight_dtype)
    packed["fc2_b"] = raw["fc2_b"][None, :].astype(jnp.float32)
    return packed


# ----------------------------------------------------------------------------
# Full forward pass (== LSTM.forward of the PyTorch module)
# ----------------------------------------------------------------------------
@jax.jit
def lstm_forward(params, x_btd):
    """x_btd: (B, T, input_size), batch_first like the PyTorch module."""
    batch, t, _ = x_btd.shape
    seq = jnp.transpose(x_btd, (1, 0, 2))      # (T, B, D) time-major
    n_layers = len(params["lstm"])
    out = None
    for li, lp in enumerate(params["lstm"]):
        d_in = seq.shape[-1]
        # Hoisted, time-parallel input projection (one big GEMM over T*B rows).
        gx = input_projection(seq.reshape(t * batch, d_in), lp["w_ih_t"], lp["bias"])
        gx = gx.reshape(t, batch, -1)           # (T, B, 4*Hp)
        if li + 1 < n_layers:
            seq = lstm_seq_layer(gx, lp["w_hh_t"])            # (T, B, Hp)
        else:
            out = lstm_last_layer(gx, lp["w_hh_t"], params["fc1_w_t"],
                                  params["fc1_b"], params["fc2_w_t"],
                                  params["fc2_b"])            # (B, out)
    return out


# ----------------------------------------------------------------------------
# Pure-JAX reference (unpadded) for a correctness sanity check
# ----------------------------------------------------------------------------
def _reference_forward(raw, x_btd):
    hi = jax.lax.Precision.HIGHEST
    batch = x_btd.shape[0]
    seq = jnp.swapaxes(x_btd, 0, 1)            # (T, B, D)
    h_last = None
    for layer in raw["lstm"]:
        hs = layer["w_hh"].shape[1]
        bias = layer["b_ih"] + layer["b_hh"]

        def step(carry, x_t, layer=layer, bias=bias, hs=hs):
            h, c = carry
            gates = (jnp.dot(x_t, layer["w_ih"].T, precision=hi)
                     + jnp.dot(h, layer["w_hh"].T, precision=hi) + bias)
            i = jax.nn.sigmoid(gates[:, :hs])
            f = jax.nn.sigmoid(gates[:, hs:2 * hs])
            g = jnp.tanh(gates[:, 2 * hs:3 * hs])
            o = jax.nn.sigmoid(gates[:, 3 * hs:])
            c = f * c + i * g
            h = o * jnp.tanh(c)
            return (h, c), h

        init = (jnp.zeros((batch, hs), jnp.float32),
                jnp.zeros((batch, hs), jnp.float32))
        (h_last, _), seq = jax.lax.scan(step, init, seq)
    hn = jnp.maximum(h_last, 0.0)
    z = jnp.maximum(jnp.dot(hn, raw["fc1_w"].T, precision=hi) + raw["fc1_b"], 0.0)
    return jnp.dot(z, raw["fc2_w"].T, precision=hi) + raw["fc2_b"]


if __name__ == "__main__":
    B, T = 2, 8
    input_size = 16
    hidden_size = 32
    num_layers = 2
    nr_fc_features = 64
    output_size = 4

    key = jax.random.PRNGKey(0)
    key_x, key_p = jax.random.split(key)
    x = jax.random.normal(key_x, (B, T, input_size), dtype=jnp.float32)

    raw = init_torch_params(key_p, input_size, hidden_size, num_layers,
                            nr_fc_features, output_size)
    params = pack_params(raw, hidden_size)

    out = lstm_forward(params, x)
    jax.block_until_ready(out)
    assert out.shape == (B, output_size)

    ref = _reference_forward(raw, x)
    err = jnp.max(jnp.abs(out - ref))
    assert jnp.allclose(out, ref, rtol=5e-3, atol=5e-3), f"max abs err {err}"
    print("KERNEL_OK")
</pallas_src>

<mosaic_0001>
module attributes {stable_mosaic.version = 11 : i64} {
  func.func @_proj_kernel(%arg0: i32, %arg1: memref<16x16xf32, #tpu.memory_space<vmem>>, %arg2: memref<16x512xf32, #tpu.memory_space<vmem>>, %arg3: memref<1x512xf32, #tpu.memory_space<vmem>>, %arg4: memref<16x512xf32, #tpu.memory_space<vmem>>) attributes {dimension_semantics = [#tpu.dimension_semantics<parallel>], iteration_bounds = array<i64: 1>, scalar_prefetch = 0 : i64, scratch_operands = 0 : i64, tpu.core_type = #tpu.core_type<tc>, window_params = [{transform_indices = @transform_0, window_bounds = array<i64: 16, 16>}, {pipeline_mode = #tpu.pipeline_mode<synchronous>, transform_indices = @transform_1, window_bounds = array<i64: 16, 512>}, {pipeline_mode = #tpu.pipeline_mode<synchronous>, transform_indices = @transform_2, window_bounds = array<i64: 1, 512>}, {transform_indices = @transform_3, window_bounds = array<i64: 16, 512>}]} {
    %c0 = arith.constant 0 : index
    %c0_0 = arith.constant 0 : index
    %0 = vector.load %arg1[%c0, %c0_0] : memref<16x16xf32, #tpu.memory_space<vmem>>, vector<16x16xf32>
    %c0_1 = arith.constant 0 : index
    %c0_2 = arith.constant 0 : index
    %1 = vector.load %arg2[%c0_1, %c0_2] : memref<16x512xf32, #tpu.memory_space<vmem>>, vector<16x512xf32>
    %cst = arith.constant dense<0.000000e+00> : vector<16x512xf32>
    %2 = tpu.matmul %0, %1, %cst {dimension_numbers = #tpu.dot_dimension_numbers<[1], [0], [0], [1], [0, 0, 1, 1], [], []>} : vector<16x16xf32>, vector<16x512xf32>, vector<16x512xf32> -> vector<16x512xf32>
    %c0_3 = arith.constant 0 : index
    %c0_4 = arith.constant 0 : index
    %3 = vector.load %arg3[%c0_3, %c0_4] : memref<1x512xf32, #tpu.memory_space<vmem>>, vector<1x512xf32>
    %4 = vector.broadcast %3 : vector<1x512xf32> to vector<16x512xf32>
    %5 = arith.addf %2, %4 : vector<16x512xf32>
    %c0_5 = arith.constant 0 : index
    %c0_6 = arith.constant 0 : index
    %6 = vector.load %arg4[%c0_5, %c0_6] : memref<16x512xf32, #tpu.memory_space<vmem>>, vector<16x512xf32>
    tpu.vector_store %arg4[%c0_5, %c0_6], %5 {strides = array<i32>} : memref<16x512xf32, #tpu.memory_space<vmem>>, vector<16x512xf32>,
    return
  }
  func.func @transform_0(%arg0: i32) -> (i32, i32) {
    %c0_i32 = arith.constant 0 : i32
    %c0_i32_0 = arith.constant 0 : i32
    return %arg0, %c0_i32 : i32, i32
  }
  func.func @transform_1(%arg0: i32) -> (i32, i32) {
    %c0_i32 = arith.constant 0 : i32
    %c0_i32_0 = arith.constant 0 : i32
    %c0_i32_1 = arith.constant 0 : i32
    return %c0_i32, %c0_i32_0 : i32, i32
  }
  func.func @transform_2(%arg0: i32) -> (i32, i32) {
    %c0_i32 = arith.constant 0 : i32
    %c0_i32_0 = arith.constant 0 : i32
    %c0_i32_1 = arith.constant 0 : i32
    return %c0_i32, %c0_i32_0 : i32, i32
  }
  func.func @transform_3(%arg0: i32) -> (i32, i32) {
    %c0_i32 = arith.constant 0 : i32
    %c0_i32_0 = arith.constant 0 : i32
    return %arg0, %c0_i32 : i32, i32
  }
}

module attributes {stable_mosaic.version = 11 : i64} {
  func.func @_lstm_seq_kernel(%arg0: i32, %arg1: memref<8x2x512xf32, #tpu.memory_space<vmem>>, %arg2: memref<128x512xf32, #tpu.memory_space<vmem>>, %arg3: memref<8x2x128xf32, #tpu.memory_space<vmem>>, %arg4: memref<2x128xf32, #tpu.memory_space<vmem>>, %arg5: memref<2x128xf32, #tpu.memory_space<vmem>>) attributes {dimension_semantics = [#tpu.dimension_semantics<arbitrary>], iteration_bounds = array<i64: 1>, scalar_prefetch = 0 : i64, scratch_operands = 2 : i64, tpu.core_type = #tpu.core_type<tc>, window_params = [{transform_indices = @transform_0, window_bounds = array<i64: 8, 2, 512>}, {pipeline_mode = #tpu.pipeline_mode<synchronous>, transform_indices = @transform_1, window_bounds = array<i64: 128, 512>}, {transform_indices = @transform_2, window_bounds = array<i64: 8, 2, 128>}]} {
    %c0_i32 = arith.constant 0 : i32
    %0 = arith.cmpi eq, %arg0, %c0_i32 : i32
    %1 = arith.extui %0 : i1 to i32
    %c0_i32_0 = arith.constant 0 : i32
    %2 = arith.cmpi ne, %1, %c0_i32_0 : i32
    scf.if %2 {
      %cst_82 = arith.constant 0.000000e+00 : f32
      %264 = vector.broadcast %cst_82 : f32 to vector<2x128xf32>
      %c0_83 = arith.constant 0 : index
      %c0_84 = arith.constant 0 : index
      %265 = vector.load %arg4[%c0_83, %c0_84] : memref<2x128xf32, #tpu.memory_space<vmem>>, vector<2x128xf32>
      tpu.vector_store %arg4[%c0_83, %c0_84], %264 {strides = array<i32>} : memref<2x128xf32, #tpu.memory_space<vmem>>, vector<2x128xf32>,
      %cst_85 = arith.constant 0.000000e+00 : f32
      %266 = vector.broadcast %cst_85 : f32 to vector<2x128xf32>
      %c0_86 = arith.constant 0 : index
      %c0_87 = arith.constant 0 : index
      %267 = vector.load %arg5[%c0_86, %c0_87] : memref<2x128xf32, #tpu.memory_space<vmem>>, vector<2x128xf32>
      tpu.vector_store %arg5[%c0_86, %c0_87], %266 {strides = array<i32>} : memref<2x128xf32, #tpu.memory_space<vmem>>, vector<2x128xf32>,
    } else {
    }
    %c0 = arith.constant 0 : index
    %c0_1 = arith.constant 0 : index
    %3 = vector.load %arg2[%c0, %c0_1] : memref<128x512xf32, #tpu.memory_space<vmem>>, vector<128x512xf32>
    %c0_2 = arith.constant 0 : index
    %c0_3 = arith.constant 0 : index
    %4 = vector.load %arg4[%c0_2, %c0_3] : memref<2x128xf32, #tpu.memory_space<vmem>>, vector<2x128xf32>
    %c0_4 = arith.constant 0 : index
    %c0_5 = arith.constant 0 : index
    %5 = vector.load %arg5[%c0_4, %c0_5] : memref<2x128xf32, #tpu.memory_space<vmem>>, vector<2x128xf32>
    %c0_6 = arith.constant 0 : index
    %c0_7 = arith.constant 0 : index
    %c0_8 = arith.constant 0 : index
    %6 = vector.load %arg1[%c0_6, %c0_7, %c0_8] : memref<8x2x512xf32, #tpu.memory_space<vmem>>, vector<1x2x512xf32>
    %7 = vector.shape_cast %6 : vector<1x2x512xf32> to vector<2x512xf32>
    %cst = arith.constant dense<0.000000e+00> : vector<2x512xf32>
    %8 = tpu.matmul %4, %3, %cst {dimension_numbers = #tpu.dot_dimension_numbers<[1], [0], [0], [1], [0, 0, 1, 1], [], []>} : vector<2x128xf32>, vector<128x512xf32>, vector<2x512xf32> -> vector<2x512xf32>
    %9 = arith.addf %7, %8 : vector<2x512xf32>
    %10 = vector.extract_strided_slice %9 {offsets = [0, 0], sizes = [2, 128], strides = [1, 1]} : vector<2x512xf32> to vector<2x128xf32>
    %11 = arith.negf %10 : vector<2x128xf32>
    %12 = math.exp %11 : vector<2x128xf32>
    %cst_9 = arith.constant 1.000000e+00 : f32
    %13 = vector.broadcast %cst_9 : f32 to vector<2x128xf32>
    %14 = arith.addf %13, %12 : vector<2x128xf32>
    %15 = arith.divf %13, %14 : vector<2x128xf32>
    %16 = vector.extract_strided_slice %9 {offsets = [0, 128], sizes = [2, 128], strides = [1, 1]} : vector<2x512xf32> to vector<2x128xf32>
    %17 = arith.negf %16 : vector<2x128xf32>
    %18 = math.exp %17 : vector<2x128xf32>
    %cst_10 = arith.constant 1.000000e+00 : f32
    %19 = vector.broadcast %cst_10 : f32 to vector<2x128xf32>
    %20 = arith.addf %19, %18 : vector<2x128xf32>
    %21 = arith.divf %19, %20 : vector<2x128xf32>
    %22 = vector.extract_strided_slice %9 {offsets = [0, 256], sizes = [2, 128], strides = [1, 1]} : vector<2x512xf32> to vector<2x128xf32>
    %23 = math.tanh %22 : vector<2x128xf32>
    %24 = vector.extract_strided_slice %9 {offsets = [0, 384], sizes = [2, 128], strides = [1, 1]} : vector<2x512xf32> to vector<2x128xf32>
    %25 = arith.negf %24 : vector<2x128xf32>
    %26 = math.exp %25 : vector<2x128xf32>
    %cst_11 = arith.constant 1.000000e+00 : f32
    %27 = vector.broadcast %cst_11 : f32 to vector<2x128xf32>
    %28 = arith.addf %27, %26 : vector<2x128xf32>
    %29 = arith.divf %27, %28 : vector<2x128xf32>
    %30 = arith.mulf %21, %5 : vector<2x128xf32>
    %31 = arith.mulf %15, %23 : vector<2x128xf32>
    %32 = arith.addf %30, %31 : vector<2x128xf32>
    %33 = math.tanh %32 : vector<2x128xf32>
    %34 = arith.mulf %29, %33 : vector<2x128xf32>
    %c0_12 = arith.constant 0 : index
    %c0_13 = arith.constant 0 : index
    %c0_14 = arith.constant 0 : index
    %35 = vector.load %arg3[%c0_12, %c0_13, %c0_14] : memref<8x2x128xf32, #tpu.memory_space<vmem>>, vector<1x2x128xf32>
    %36 = vector.shape_cast %35 : vector<1x2x128xf32> to vector<2x128xf32>
    %37 = vector.shape_cast %34 : vector<2x128xf32> to vector<1x2x128xf32>
    tpu.vector_store %arg3[%c0_12, %c0_13, %c0_14], %37 {strides = array<i32>} : memref<8x2x128xf32, #tpu.memory_space<vmem>>, vector<1x2x128xf32>,
    %c1 = arith.constant 1 : index
    %c0_15 = arith.constant 0 : index
    %c0_16 = arith.constant 0 : index
    %38 = vector.load %arg1[%c1, %c0_15, %c0_16] : memref<8x2x512xf32, #tpu.memory_space<vmem>>, vector<1x2x512xf32>
    %39 = vector.shape_cast %38 : vector<1x2x512xf32> to vector<2x512xf32>
    %cst_17 = arith.constant dense<0.000000e+00> : vector<2x512xf32>
    %40 = tpu.matmul %34, %3, %cst_17 {dimension_numbers = #tpu.dot_dimension_numbers<[1], [0], [0], [1], [0, 0, 1, 1], [], []>} : vector<2x128xf32>, vector<128x512xf32>, vector<2x512xf32> -> vector<2x512xf32>
    %41 = arith.addf %39, %40 : vector<2x512xf32>
    %42 = vector.extract_strided_slice %41 {offsets = [0, 0], sizes = [2, 128], strides = [1, 1]} : vector<2x512xf32> to vector<2x128xf32>
    %43 = arith.negf %42 : vector<2x128xf32>
    %44 = math.exp %43 : vector<2x128xf32>
    %cst_18 = arith.constant 1.000000e+00 : f32
    %45 = vector.broadcast %cst_18 : f32 to vector<2x128xf32>
    %46 = arith.addf %45, %44 : vector<2x128xf32>
    %47 = arith.divf %45, %46 : vector<2x128xf32>
    %48 = vector.extract_strided_slice %41 {offsets = [0, 128], sizes = [2, 128], strides = [1, 1]} : vector<2x512xf32> to vector<2x128xf32>
    %49 = arith.negf %48 : vector<2x128xf32>
    %50 = math.exp %49 : vector<2x128xf32>
    %cst_19 = arith.constant 1.000000e+00 : f32
    %51 = vector.broadcast %cst_19 : f32 to vector<2x128xf32>
    %52 = arith.addf %51, %50 : vector<2x128xf32>
    %53 = arith.divf %51, %52 : vector<2x128xf32>
    %54 = vector.extract_strided_slice %41 {offsets = [0, 256], sizes = [2, 128], strides = [1, 1]} : vector<2x512xf32> to vector<2x128xf32>
    %55 = math.tanh %54 : vector<2x128xf32>
    %56 = vector.extract_strided_slice %41 {offsets = [0, 384], sizes = [2, 128], strides = [1, 1]} : vector<2x512xf32> to vector<2x128xf32>
    %57 = arith.negf %56 : vector<2x128xf32>
    %58 = math.exp %57 : vector<2x128xf32>
    %cst_20 = arith.constant 1.000000e+00 : f32
    %59 = vector.broadcast %cst_20 : f32 to vector<2x128xf32>
    %60 = arith.addf %59, %58 : vector<2x128xf32>
    %61 = arith.divf %59, %60 : vector<2x128xf32>
    %62 = arith.mulf %53, %32 : vector<2x128xf32>
    %63 = arith.mulf %47, %55 : vector<2x128xf32>
    %64 = arith.addf %62, %63 : vector<2x128xf32>
    %65 = math.tanh %64 : vector<2x128xf32>
    %66 = arith.mulf %61, %65 : vector<2x128xf32>
    %c1_21 = arith.constant 1 : index
    %c0_22 = arith.constant 0 : index
    %c0_23 = arith.constant 0 : index
    %67 = vector.load %arg3[%c1_21, %c0_22, %c0_23] : memref<8x2x128xf32, #tpu.memory_space<vmem>>, vector<1x2x128xf32>
    %68 = vector.shape_cast %67 : vector<1x2x128xf32> to vector<2x128xf32>
    %69 = vector.shape_cast %66 : vector<2x128xf32> to vector<1x2x128xf32>
    tpu.vector_store %arg3[%c1_21, %c0_22, %c0_23], %69 {strides = array<i32>} : memref<8x2x128xf32, #tpu.memory_space<vmem>>, vector<1x2x128xf32>,
    %c2 = arith.constant 2 : index
    %c0_24 = arith.constant 0 : index
    %c0_25 = arith.constant 0 : index
    %70 = vector.load %arg1[%c2, %c0_24, %c0_25] : memref<8x2x512xf32, #tpu.memory_space<vmem>>, vector<1x2x512xf32>
    %71 = vector.shape_cast %70 : vector<1x2x512xf32> to vector<2x512xf32>
    %cst_26 = arith.constant dense<0.000000e+00> : vector<2x512xf32>
    %72 = tpu.matmul %66, %3, %cst_26 {dimension_numbers = #tpu.dot_dimension_numbers<[1], [0], [0], [1], [0, 0, 1, 1], [], []>} : vector<2x128xf32>, vector<128x512xf32>, vector<2x512xf32> -> vector<2x512xf32>
    %73 = arith.addf %71, %72 : vector<2x512xf32>
    %74 = vector.extract_strided_slice %73 {offsets = [0, 0], sizes = [2, 128], strides = [1, 1]} : vector<2x512xf32> to vector<2x128xf32>
    %75 = arith.negf %74 : vector<2x128xf32>
    %76 = math.exp %75 : vector<2x128xf32>
    %cst_27 = arith.constant 1.000000e+00 : f32
    %77 = vector.broadcast %cst_27 : f32 to vector<2x128xf32>
    %78 = arith.addf %77, %76 : vector<2x128xf32>
    %79 = arith.divf %77, %78 : vector<2x128xf32>
    %80 = vector.extract_strided_slice %73 {offsets = [0, 128], sizes = [2, 128], strides = [1, 1]} : vector<2x512xf32> to vector<2x128xf32>
    %81 = arith.negf %80 : vector<2x128xf32>
    %82 = math.exp %81 : vector<2x128xf32>
    %cst_28 = arith.constant 1.000000e+00 : f32
    %83 = vector.broadcast %cst_28 : f32 to vector<2x128xf32>
    %84 = arith.addf %83, %82 : vector<2x128xf32>
    %85 = arith.divf %83, %84 : vector<2x128xf32>
    %86 = vector.extract_strided_slice %73 {offsets = [0, 256], sizes = [2, 128], strides = [1, 1]} : vector<2x512xf32> to vector<2x128xf32>
    %87 = math.tanh %86 : vector<2x128xf32>
    %88 = vector.extract_strided_slice %73 {offsets = [0, 384], sizes = [2, 128], strides = [1, 1]} : vector<2x512xf32> to vector<2x128xf32>
    %89 = arith.negf %88 : vector<2x128xf32>
    %90 = math.exp %89 : vector<2x128xf32>
    %cst_29 = arith.constant 1.000000e+00 : f32
    %91 = vector.broadcast %cst_29 : f32 to vector<2x128xf32>
    %92 = arith.addf %91, %90 : vector<2x128xf32>
    %93 = arith.divf %91, %92 : vector<2x128xf32>
    %94 = arith.mulf %85, %64 : vector<2x128xf32>
    %95 = arith.mulf %79, %87 : vector<2x128xf32>
    %96 = arith.addf %94, %95 : vector<2x128xf32>
    %97 = math.tanh %96 : vector<2x128xf32>
    %98 = arith.mulf %93, %97 : vector<2x128xf32>
    %c2_30 = arith.constant 2 : index
    %c0_31 = arith.constant 0 : index
    %c0_32 = arith.constant 0 : index
    %99 = vector.load %arg3[%c2_30, %c0_31, %c0_32] : memref<8x2x128xf32, #tpu.memory_space<vmem>>, vector<1x2x128xf32>
    %100 = vector.shape_cast %99 : vector<1x2x128xf32> to vector<2x128xf32>
    %101 = vector.shape_cast %98 : vector<2x128xf32> to vector<1x2x128xf32>
    tpu.vector_store %arg3[%c2_30, %c0_31, %c0_32], %101 {strides = array<i32>} : memref<8x2x128xf32, #tpu.memory_space<vmem>>, vector<1x2x128xf32>,
    %c3 = arith.constant 3 : index
    %c0_33 = arith.constant 0 : index
    %c0_34 = arith.constant 0 : index
    %102 = vector.load %arg1[%c3, %c0_33, %c0_34] : memref<8x2x512xf32, #tpu.memory_space<vmem>>, vector<1x2x512xf32>
    %103 = vector.shape_cast %102 : vector<1x2x512xf32> to vector<2x512xf32>
    %cst_35 = arith.constant dense<0.000000e+00> : vector<2x512xf32>
    %104 = tpu.matmul %98, %3, %cst_35 {dimension_numbers = #tpu.dot_dimension_numbers<[1], [0], [0], [1], [0, 0, 1, 1], [], []>} : vector<2x128xf32>, vector<128x512xf32>, vector<2x512xf32> -> vector<2x512xf32>
    %105 = arith.addf %103, %104 : vector<2x512xf32>
    %106 = vector.extract_strided_slice %105 {offsets = [0, 0], sizes = [2, 128], strides = [1, 1]} : vector<2x512xf32> to vector<2x128xf32>
    %107 = arith.negf %106 : vector<2x128xf32>
    %108 = math.exp %107 : vector<2x128xf32>
    %cst_36 = arith.constant 1.000000e+00 : f32
    %109 = vector.broadcast %cst_36 : f32 to vector<2x128xf32>
    %110 = arith.addf %109, %108 : vector<2x128xf32>
    %111 = arith.divf %109, %110 : vector<2x128xf32>
    %112 = vector.extract_strided_slice %105 {offsets = [0, 128], sizes = [2, 128], strides = [1, 1]} : vector<2x512xf32> to vector<2x128xf32>
    %113 = arith.negf %112 : vector<2x128xf32>
    %114 = math.exp %113 : vector<2x128xf32>
    %cst_37 = arith.constant 1.000000e+00 : f32
    %115 = vector.broadcast %cst_37 : f32 to vector<2x128xf32>
    %116 = arith.addf %115, %114 : vector<2x128xf32>
    %117 = arith.divf %115, %116 : vector<2x128xf32>
    %118 = vector.extract_strided_slice %105 {offsets = [0, 256], sizes = [2, 128], strides = [1, 1]} : vector<2x512xf32> to vector<2x128xf32>
    %119 = math.tanh %118 : vector<2x128xf32>
    %120 = vector.extract_strided_slice %105 {offsets = [0, 384], sizes = [2, 128], strides = [1, 1]} : vector<2x512xf32> to vector<2x128xf32>
    %121 = arith.negf %120 : vector<2x128xf32>
    %122 = math.exp %121 : vector<2x128xf32>
    %cst_38 = arith.constant 1.000000e+00 : f32
    %123 = vector.broadcast %cst_38 : f32 to vector<2x128xf32>
    %124 = arith.addf %123, %122 : vector<2x128xf32>
    %125 = arith.divf %123, %124 : vector<2x128xf32>
    %126 = arith.mulf %117, %96 : vector<2x128xf32>
    %127 = arith.mulf %111, %119 : vector<2x128xf32>
    %128 = arith.addf %126, %127 : vector<2x128xf32>
    %129 = math.tanh %128 : vector<2x128xf32>
    %130 = arith.mulf %125, %129 : vector<2x128xf32>
    %c3_39 = arith.constant 3 : index
    %c0_40 = arith.constant 0 : index
    %c0_41 = arith.constant 0 : index
    %131 = vector.load %arg3[%c3_39, %c0_40, %c0_41] : memref<8x2x128xf32, #tpu.memory_space<vmem>>, vector<1x2x128xf32>
    %132 = vector.shape_cast %131 : vector<1x2x128xf32> to vector<2x128xf32>
    %133 = vector.shape_cast %130 : vector<2x128xf32> to vector<1x2x128xf32>
    tpu.vector_store %arg3[%c3_39, %c0_40, %c0_41], %133 {strides = array<i32>} : memref<8x2x128xf32, #tpu.memory_space<vmem>>, vector<1x2x128xf32>,
    %c4 = arith.constant 4 : index
    %c0_42 = arith.constant 0 : index
    %c0_43 = arith.constant 0 : index
    %134 = vector.load %arg1[%c4, %c0_42, %c0_43] : memref<8x2x512xf32, #tpu.memory_space<vmem>>, vector<1x2x512xf32>
    %135 = vector.shape_cast %134 : vector<1x2x512xf32> to vector<2x512xf32>
    %cst_44 = arith.constant dense<0.000000e+00> : vector<2x512xf32>
    %136 = tpu.matmul %130, %3, %cst_44 {dimension_numbers = #tpu.dot_dimension_numbers<[1], [0], [0], [1], [0, 0, 1, 1], [], []>} : vector<2x128xf32>, vector<128x512xf32>, vector<2x512xf32> -> vector<2x512xf32>
    %137 = arith.addf %135, %136 : vector<2x512xf32>
    %138 = vector.extract_strided_slice %137 {offsets = [0, 0], sizes = [2, 128], strides = [1, 1]} : vector<2x512xf32> to vector<2x128xf32>
    %139 = arith.negf %138 : vector<2x128xf32>
    %140 = math.exp %139 : vector<2x128xf32>
    %cst_45 = arith.constant 1.000000e+00 : f32
    %141 = vector.broadcast %cst_45 : f32 to vector<2x128xf32>
    %142 = arith.addf %141, %140 : vector<2x128xf32>
    %143 = arith.divf %141, %142 : vector<2x128xf32>
    %144 = vector.extract_strided_slice %137 {offsets = [0, 128], sizes = [2, 128], strides = [1, 1]} : vector<2x512xf32> to vector<2x128xf32>
    %145 = arith.negf %144 : vector<2x128xf32>
    %146 = math.exp %145 : vector<2x128xf32>
    %cst_46 = arith.constant 1.000000e+00 : f32
    %147 = vector.broadcast %cst_46 : f32 to vector<2x128xf32>
    %148 = arith.addf %147, %146 : vector<2x128xf32>
    %149 = arith.divf %147, %148 : vector<2x128xf32>
    %150 = vector.extract_strided_slice %137 {offsets = [0, 256], sizes = [2, 128], strides = [1, 1]} : vector<2x512xf32> to vector<2x128xf32>
    %151 = math.tanh %150 : vector<2x128xf32>
    %152 = vector.extract_strided_slice %137 {offsets = [0, 384], sizes = [2, 128], strides = [1, 1]} : vector<2x512xf32> to vector<2x128xf32>
    %153 = arith.negf %152 : vector<2x128xf32>
    %154 = math.exp %153 : vector<2x128xf32>
    %cst_47 = arith.constant 1.000000e+00 : f32
    %155 = vector.broadcast %cst_47 : f32 to vector<2x128xf32>
    %156 = arith.addf %155, %154 : vector<2x128xf32>
    %157 = arith.divf %155, %156 : vector<2x128xf32>
    %158 = arith.mulf %149, %128 : vector<2x128xf32>
    %159 = arith.mulf %143, %151 : vector<2x128xf32>
    %160 = arith.addf %158, %159 : vector<2x128xf32>
    %161 = math.tanh %160 : vector<2x128xf32>
    %162 = arith.mulf %157, %161 : vector<2x128xf32>
    %c4_48 = arith.constant 4 : index
    %c0_49 = arith.constant 0 : index
    %c0_50 = arith.constant 0 : index
    %163 = vector.load %arg3[%c4_48, %c0_49, %c0_50] : memref<8x2x128xf32, #tpu.memory_space<vmem>>, vector<1x2x128xf32>
    %164 = vector.shape_cast %163 : vector<1x2x128xf32> to vector<2x128xf32>
    %165 = vector.shape_cast %162 : vector<2x128xf32> to vector<1x2x128xf32>
    tpu.vector_store %arg3[%c4_48, %c0_49, %c0_50], %165 {strides = array<i32>} : memref<8x2x128xf32, #tpu.memory_space<vmem>>, vector<1x2x128xf32>,
    %c5 = arith.constant 5 : index
    %c0_51 = arith.constant 0 : index
    %c0_52 = arith.constant 0 : index
    %166 = vector.load %arg1[%c5, %c0_51, %c0_52] : memref<8x2x512xf32, #tpu.memory_space<vmem>>, vector<1x2x512xf32>
    %167 = vector.shape_cast %166 : vector<1x2x512xf32> to vector<2x512xf32>
    %cst_53 = arith.constant dense<0.000000e+00> : vector<2x512xf32>
    %168 = tpu.matmul %162, %3, %cst_53 {dimension_numbers = #tpu.dot_dimension_numbers<[1], [0], [0], [1], [0, 0, 1, 1], [], []>} : vector<2x128xf32>, vector<128x512xf32>, vector<2x512xf32> -> vector<2x512xf32>
    %169 = arith.addf %167, %168 : vector<2x512xf32>
    %170 = vector.extract_strided_slice %169 {offsets = [0, 0], sizes = [2, 128], strides = [1, 1]} : vector<2x512xf32> to vector<2x128xf32>
    %171 = arith.negf %170 : vector<2x128xf32>
    %172 = math.exp %171 : vector<2x128xf32>
    %cst_54 = arith.constant 1.000000e+00 : f32
    %173 = vector.broadcast %cst_54 : f32 to vector<2x128xf32>
    %174 = arith.addf %173, %172 : vector<2x128xf32>
    %175 = arith.divf %173, %174 : vector<2x128xf32>
    %176 = vector.extract_strided_slice %169 {offsets = [0, 128], sizes = [2, 128], strides = [1, 1]} : vector<2x512xf32> to vector<2x128xf32>
    %177 = arith.negf %176 : vector<2x128xf32>
    %178 = math.exp %177 : vector<2x128xf32>
    %cst_55 = arith.constant 1.000000e+00 : f32
    %179 = vector.broadcast %cst_55 : f32 to vector<2x128xf32>
    %180 = arith.addf %179, %178 : vector<2x128xf32>
    %181 = arith.divf %179, %180 : vector<2x128xf32>
    %182 = vector.extract_strided_slice %169 {offsets = [0, 256], sizes = [2, 128], strides = [1, 1]} : vector<2x512xf32> to vector<2x128xf32>
    %183 = math.tanh %182 : vector<2x128xf32>
    %184 = vector.extract_strided_slice %169 {offsets = [0, 384], sizes = [2, 128], strides = [1, 1]} : vector<2x512xf32> to vector<2x128xf32>
    %185 = arith.negf %184 : vector<2x128xf32>
    %186 = math.exp %185 : vector<2x128xf32>
    %cst_56 = arith.constant 1.000000e+00 : f32
    %187 = vector.broadcast %cst_56 : f32 to vector<2x128xf32>
    %188 = arith.addf %187, %186 : vector<2x128xf32>
    %189 = arith.divf %187, %188 : vector<2x128xf32>
    %190 = arith.mulf %181, %160 : vector<2x128xf32>
    %191 = arith.mulf %175, %183 : vector<2x128xf32>
    %192 = arith.addf %190, %191 : vector<2x128xf32>
    %193 = math.tanh %192 : vector<2x128xf32>
    %194 = arith.mulf %189, %193 : vector<2x128xf32>
    %c5_57 = arith.constant 5 : index
    %c0_58 = arith.constant 0 : index
    %c0_59 = arith.constant 0 : index
    %195 = vector.load %arg3[%c5_57, %c0_58, %c0_59] : memref<8x2x128xf32, #tpu.memory_space<vmem>>, vector<1x2x128xf32>
    %196 = vector.shape_cast %195 : vector<1x2x128xf32> to vector<2x128xf32>
    %197 = vector.shape_cast %194 : vector<2x128xf32> to vector<1x2x128xf32>
    tpu.vector_store %arg3[%c5_57, %c0_58, %c0_59], %197 {strides = array<i32>} : memref<8x2x128xf32, #tpu.memory_space<vmem>>, vector<1x2x128xf32>,
    %c6 = arith.constant 6 : index
    %c0_60 = arith.constant 0 : index
    %c0_61 = arith.constant 0 : index
    %198 = vector.load %arg1[%c6, %c0_60, %c0_61] : memref<8x2x512xf32, #tpu.memory_space<vmem>>, vector<1x2x512xf32>
    %199 = vector.shape_cast %198 : vector<1x2x512xf32> to vector<2x512xf32>
    %cst_62 = arith.constant dense<0.000000e+00> : vector<2x512xf32>
    %200 = tpu.matmul %194, %3, %cst_62 {dimension_numbers = #tpu.dot_dimension_numbers<[1], [0], [0], [1], [0, 0, 1, 1], [], []>} : vector<2x128xf32>, vector<128x512xf32>, vector<2x512xf32> -> vector<2x512xf32>
    %201 = arith.addf %199, %200 : vector<2x512xf32>
    %202 = vector.extract_strided_slice %201 {offsets = [0, 0], sizes = [2, 128], strides = [1, 1]} : vector<2x512xf32> to vector<2x128xf32>
    %203 = arith.negf %202 : vector<2x128xf32>
    %204 = math.exp %203 : vector<2x128xf32>
    %cst_63 = arith.constant 1.000000e+00 : f32
    %205 = vector.broadcast %cst_63 : f32 to vector<2x128xf32>
    %206 = arith.addf %205, %204 : vector<2x128xf32>
    %207 = arith.divf %205, %206 : vector<2x128xf32>
    %208 = vector.extract_strided_slice %201 {offsets = [0, 128], sizes = [2, 128], strides = [1, 1]} : vector<2x512xf32> to vector<2x128xf32>
    %209 = arith.negf %208 : vector<2x128xf32>
    %210 = math.exp %209 : vector<2x128xf32>
    %cst_64 = arith.constant 1.000000e+00 : f32
    %211 = vector.broadcast %cst_64 : f32 to vector<2x128xf32>
    %212 = arith.addf %211, %210 : vector<2x128xf32>
    %213 = arith.divf %211, %212 : vector<2x128xf32>
    %214 = vector.extract_strided_slice %201 {offsets = [0, 256], sizes = [2, 128], strides = [1, 1]} : vector<2x512xf32> to vector<2x128xf32>
    %215 = math.tanh %214 : vector<2x128xf32>
    %216 = vector.extract_strided_slice %201 {offsets = [0, 384], sizes = [2, 128], strides = [1, 1]} : vector<2x512xf32> to vector<2x128xf32>
    %217 = arith.negf %216 : vector<2x128xf32>
    %218 = math.exp %217 : vector<2x128xf32>
    %cst_65 = arith.constant 1.000000e+00 : f32
    %219 = vector.broadcast %cst_65 : f32 to vector<2x128xf32>
    %220 = arith.addf %219, %218 : vector<2x128xf32>
    %221 = arith.divf %219, %220 : vector<2x128xf32>
    %222 = arith.mulf %213, %192 : vector<2x128xf32>
    %223 = arith.mulf %207, %215 : vector<2x128xf32>
    %224 = arith.addf %222, %223 : vector<2x128xf32>
    %225 = math.tanh %224 : vector<2x128xf32>
    %226 = arith.mulf %221, %225 : vector<2x128xf32>
    %c6_66 = arith.constant 6 : index
    %c0_67 = arith.constant 0 : index
    %c0_68 = arith.constant 0 : index
    %227 = vector.load %arg3[%c6_66, %c0_67, %c0_68] : memref<8x2x128xf32, #tpu.memory_space<vmem>>, vector<1x2x128xf32>
    %228 = vector.shape_cast %227 : vector<1x2x128xf32> to vector<2x128xf32>
    %229 = vector.shape_cast %226 : vector<2x128xf32> to vector<1x2x128xf32>
    tpu.vector_store %arg3[%c6_66, %c0_67, %c0_68], %229 {strides = array<i32>} : memref<8x2x128xf32, #tpu.memory_space<vmem>>, vector<1x2x128xf32>,
    %c7 = arith.constant 7 : index
    %c0_69 = arith.constant 0 : index
    %c0_70 = arith.constant 0 : index
    %230 = vector.load %arg1[%c7, %c0_69, %c0_70] : memref<8x2x512xf32, #tpu.memory_space<vmem>>, vector<1x2x512xf32>
    %231 = vector.shape_cast %230 : vector<1x2x512xf32> to vector<2x512xf32>
    %cst_71 = arith.constant dense<0.000000e+00> : vector<2x512xf32>
    %232 = tpu.matmul %226, %3, %cst_71 {dimension_numbers = #tpu.dot_dimension_numbers<[1], [0], [0], [1], [0, 0, 1, 1], [], []>} : vector<2x128xf32>, vector<128x512xf32>, vector<2x512xf32> -> vector<2x512xf32>
    %233 = arith.addf %231, %232 : vector<2x512xf32>
    %234 = vector.extract_strided_slice %233 {offsets = [0, 0], sizes = [2, 128], strides = [1, 1]} : vector<2x512xf32> to vector<2x128xf32>
    %235 = arith.negf %234 : vector<2x128xf32>
    %236 = math.exp %235 : vector<2x128xf32>
    %cst_72 = arith.constant 1.000000e+00 : f32
    %237 = vector.broadcast %cst_72 : f32 to vector<2x128xf32>
    %238 = arith.addf %237, %236 : vector<2x128xf32>
    %239 = arith.divf %237, %238 : vector<2x128xf32>
    %240 = vector.extract_strided_slice %233 {offsets = [0, 128], sizes = [2, 128], strides = [1, 1]} : vector<2x512xf32> to vector<2x128xf32>
    %241 = arith.negf %240 : vector<2x128xf32>
    %242 = math.exp %241 : vector<2x128xf32>
    %cst_73 = arith.constant 1.000000e+00 : f32
    %243 = vector.broadcast %cst_73 : f32 to vector<2x128xf32>
    %244 = arith.addf %243, %242 : vector<2x128xf32>
    %245 = arith.divf %243, %244 : vector<2x128xf32>
    %246 = vector.extract_strided_slice %233 {offsets = [0, 256], sizes = [2, 128], strides = [1, 1]} : vector<2x512xf32> to vector<2x128xf32>
    %247 = math.tanh %246 : vector<2x128xf32>
    %248 = vector.extract_strided_slice %233 {offsets = [0, 384], sizes = [2, 128], strides = [1, 1]} : vector<2x512xf32> to vector<2x128xf32>
    %249 = arith.negf %248 : vector<2x128xf32>
    %250 = math.exp %249 : vector<2x128xf32>
    %cst_74 = arith.constant 1.000000e+00 : f32
    %251 = vector.broadcast %cst_74 : f32 to vector<2x128xf32>
    %252 = arith.addf %251, %250 : vector<2x128xf32>
    %253 = arith.divf %251, %252 : vector<2x128xf32>
    %254 = arith.mulf %245, %224 : vector<2x128xf32>
    %255 = arith.mulf %239, %247 : vector<2x128xf32>
    %256 = arith.addf %254, %255 : vector<2x128xf32>
    %257 = math.tanh %256 : vector<2x128xf32>
    %258 = arith.mulf %253, %257 : vector<2x128xf32>
    %c7_75 = arith.constant 7 : index
    %c0_76 = arith.constant 0 : index
    %c0_77 = arith.constant 0 : index
    %259 = vector.load %arg3[%c7_75, %c0_76, %c0_77] : memref<8x2x128xf32, #tpu.memory_space<vmem>>, vector<1x2x128xf32>
    %260 = vector.shape_cast %259 : vector<1x2x128xf32> to vector<2x128xf32>
    %261 = vector.shape_cast %258 : vector<2x128xf32> to vector<1x2x128xf32>
    tpu.vector_store %arg3[%c7_75, %c0_76, %c0_77], %261 {strides = array<i32>} : memref<8x2x128xf32, #tpu.memory_space<vmem>>, vector<1x2x128xf32>,
    %c0_78 = arith.constant 0 : index
    %c0_79 = arith.constant 0 : index
    %262 = vector.load %arg4[%c0_78, %c0_79] : memref<2x128xf32, #tpu.memory_space<vmem>>, vector<2x128xf32>
    tpu.vector_store %arg4[%c0_78, %c0_79], %258 {strides = array<i32>} : memref<2x128xf32, #tpu.memory_space<vmem>>, vector<2x128xf32>,
    %c0_80 = arith.constant 0 : index
    %c0_81 = arith.constant 0 : index
    %263 = vector.load %arg5[%c0_80, %c0_81] : memref<2x128xf32, #tpu.memory_space<vmem>>, vector<2x128xf32>
    tpu.vector_store %arg5[%c0_80, %c0_81], %256 {strides = array<i32>} : memref<2x128xf32, #tpu.memory_space<vmem>>, vector<2x128xf32>,
    return
  }
  func.func @transform_0(%arg0: i32) -> (i32, i32, i32) {
    %c0_i32 = arith.constant 0 : i32
    %c0_i32_0 = arith.constant 0 : i32
    %c0_i32_1 = arith.constant 0 : i32
    return %arg0, %c0_i32, %c0_i32_0 : i32, i32, i32
  }
  func.func @transform_1(%arg0: i32) -> (i32, i32) {
    %c0_i32 = arith.constant 0 : i32
    %c0_i32_0 = arith.constant 0 : i32
    %c0_i32_1 = arith.constant 0 : i32
    return %c0_i32, %c0_i32_0 : i32, i32
  }
  func.func @transform_2(%arg0: i32) -> (i32, i32, i32) {
    %c0_i32 = arith.constant 0 : i32
    %c0_i32_0 = arith.constant 0 : i32
    %c0_i32_1 = arith.constant 0 : i32
    return %arg0, %c0_i32, %c0_i32_0 : i32, i32, i32
  }
}

module attributes {stable_mosaic.version = 11 : i64} {
  func.func @_proj_kernel(%arg0: i32, %arg1: memref<16x128xf32, #tpu.memory_space<vmem>>, %arg2: memref<128x512xf32, #tpu.memory_space<vmem>>, %arg3: memref<1x512xf32, #tpu.memory_space<vmem>>, %arg4: memref<16x512xf32, #tpu.memory_space<vmem>>) attributes {dimension_semantics = [#tpu.dimension_semantics<parallel>], iteration_bounds = array<i64: 1>, scalar_prefetch = 0 : i64, scratch_operands = 0 : i64, tpu.core_type = #tpu.core_type<tc>, window_params = [{transform_indices = @transform_0, window_bounds = array<i64: 16, 128>}, {pipeline_mode = #tpu.pipeline_mode<synchronous>, transform_indices = @transform_1, window_bounds = array<i64: 128, 512>}, {pipeline_mode = #tpu.pipeline_mode<synchronous>, transform_indices = @transform_2, window_bounds = array<i64: 1, 512>}, {transform_indices = @transform_3, window_bounds = array<i64: 16, 512>}]} {
    %c0 = arith.constant 0 : index
    %c0_0 = arith.constant 0 : index
    %0 = vector.load %arg1[%c0, %c0_0] : memref<16x128xf32, #tpu.memory_space<vmem>>, vector<16x128xf32>
    %c0_1 = arith.constant 0 : index
    %c0_2 = arith.constant 0 : index
    %1 = vector.load %arg2[%c0_1, %c0_2] : memref<128x512xf32, #tpu.memory_space<vmem>>, vector<128x512xf32>
    %cst = arith.constant dense<0.000000e+00> : vector<16x512xf32>
    %2 = tpu.matmul %0, %1, %cst {dimension_numbers = #tpu.dot_dimension_numbers<[1], [0], [0], [1], [0, 0, 1, 1], [], []>} : vector<16x128xf32>, vector<128x512xf32>, vector<16x512xf32> -> vector<16x512xf32>
    %c0_3 = arith.constant 0 : index
    %c0_4 = arith.constant 0 : index
    %3 = vector.load %arg3[%c0_3, %c0_4] : memref<1x512xf32, #tpu.memory_space<vmem>>, vector<1x512xf32>
    %4 = vector.broadcast %3 : vector<1x512xf32> to vector<16x512xf32>
    %5 = arith.addf %2, %4 : vector<16x512xf32>
    %c0_5 = arith.constant 0 : index
    %c0_6 = arith.constant 0 : index
    %6 = vector.load %arg4[%c0_5, %c0_6] : memref<16x512xf32, #tpu.memory_space<vmem>>, vector<16x512xf32>
    tpu.vector_store %arg4[%c0_5, %c0_6], %5 {strides = array<i32>} : memref<16x512xf32, #tpu.memory_space<vmem>>, vector<16x512xf32>,
    return
  }
  func.func @transform_0(%arg0: i32) -> (i32, i32) {
    %c0_i32 = arith.constant 0 : i32
    %c0_i32_0 = arith.constant 0 : i32
    return %arg0, %c0_i32 : i32, i32
  }
  func.func @transform_1(%arg0: i32) -> (i32, i32) {
    %c0_i32 = arith.constant 0 : i32
    %c0_i32_0 = arith.constant 0 : i32
    %c0_i32_1 = arith.constant 0 : i32
    return %c0_i32, %c0_i32_0 : i32, i32
  }
  func.func @transform_2(%arg0: i32) -> (i32, i32) {
    %c0_i32 = arith.constant 0 : i32
    %c0_i32_0 = arith.constant 0 : i32
    %c0_i32_1 = arith.constant 0 : i32
    return %c0_i32, %c0_i32_0 : i32, i32
  }
  func.func @transform_3(%arg0: i32) -> (i32, i32) {
    %c0_i32 = arith.constant 0 : i32
    %c0_i32_0 = arith.constant 0 : i32
    return %arg0, %c0_i32 : i32, i32
  }
}

module attributes {stable_mosaic.version = 11 : i64} {
  func.func @_lstm_head_kernel(%arg0: i32, %arg1: memref<8x2x512xf32, #tpu.memory_space<vmem>>, %arg2: memref<128x512xf32, #tpu.memory_space<vmem>>, %arg3: memref<128x64xf32, #tpu.memory_space<vmem>>, %arg4: memref<1x64xf32, #tpu.memory_space<vmem>>, %arg5: memref<64x4xf32, #tpu.memory_space<vmem>>, %arg6: memref<1x4xf32, #tpu.memory_space<vmem>>, %arg7: memref<2x4xf32, #tpu.memory_space<vmem>>, %arg8: memref<2x128xf32, #tpu.memory_space<vmem>>, %arg9: memref<2x128xf32, #tpu.memory_space<vmem>>) attributes {dimension_semantics = [#tpu.dimension_semantics<arbitrary>], iteration_bounds = array<i64: 1>, scalar_prefetch = 0 : i64, scratch_operands = 2 : i64, tpu.core_type = #tpu.core_type<tc>, window_params = [{transform_indices = @transform_0, window_bounds = array<i64: 8, 2, 512>}, {pipeline_mode = #tpu.pipeline_mode<synchronous>, transform_indices = @transform_1, window_bounds = array<i64: 128, 512>}, {pipeline_mode = #tpu.pipeline_mode<synchronous>, transform_indices = @transform_2, window_bounds = array<i64: 128, 64>}, {pipeline_mode = #tpu.pipeline_mode<synchronous>, transform_indices = @transform_3, window_bounds = array<i64: 1, 64>}, {pipeline_mode = #tpu.pipeline_mode<synchronous>, transform_indices = @transform_4, window_bounds = array<i64: 64, 4>}, {pipeline_mode = #tpu.pipeline_mode<synchronous>, transform_indices = @transform_5, window_bounds = array<i64: 1, 4>}, {pipeline_mode = #tpu.pipeline_mode<synchronous>, transform_indices = @transform_6, window_bounds = array<i64: 2, 4>}]} {
    %c0_i32 = arith.constant 0 : i32
    %0 = arith.cmpi eq, %arg0, %c0_i32 : i32
    %1 = arith.extui %0 : i1 to i32
    %c0_i32_0 = arith.constant 0 : i32
    %2 = arith.cmpi ne, %1, %c0_i32_0 : i32
    scf.if %2 {
      %cst_60 = arith.constant 0.000000e+00 : f32
      %243 = vector.broadcast %cst_60 : f32 to vector<2x128xf32>
      %c0_61 = arith.constant 0 : index
      %c0_62 = arith.constant 0 : index
      %244 = vector.load %arg8[%c0_61, %c0_62] : memref<2x128xf32, #tpu.memory_space<vmem>>, vector<2x128xf32>
      tpu.vector_store %arg8[%c0_61, %c0_62], %243 {strides = array<i32>} : memref<2x128xf32, #tpu.memory_space<vmem>>, vector<2x128xf32>,
      %cst_63 = arith.constant 0.000000e+00 : f32
      %245 = vector.broadcast %cst_63 : f32 to vector<2x128xf32>
      %c0_64 = arith.constant 0 : index
      %c0_65 = arith.constant 0 : index
      %246 = vector.load %arg9[%c0_64, %c0_65] : memref<2x128xf32, #tpu.memory_space<vmem>>, vector<2x128xf32>
      tpu.vector_store %arg9[%c0_64, %c0_65], %245 {strides = array<i32>} : memref<2x128xf32, #tpu.memory_space<vmem>>, vector<2x128xf32>,
    } else {
    }
    %c0 = arith.constant 0 : index
    %c0_1 = arith.constant 0 : index
    %3 = vector.load %arg2[%c0, %c0_1] : memref<128x512xf32, #tpu.memory_space<vmem>>, vector<128x512xf32>
    %c0_2 = arith.constant 0 : index
    %c0_3 = arith.constant 0 : index
    %4 = vector.load %arg8[%c0_2, %c0_3] : memref<2x128xf32, #tpu.memory_space<vmem>>, vector<2x128xf32>
    %c0_4 = arith.constant 0 : index
    %c0_5 = arith.constant 0 : index
    %5 = vector.load %arg9[%c0_4, %c0_5] : memref<2x128xf32, #tpu.memory_space<vmem>>, vector<2x128xf32>
    %c0_6 = arith.constant 0 : index
    %c0_7 = arith.constant 0 : index
    %c0_8 = arith.constant 0 : index
    %6 = vector.load %arg1[%c0_6, %c0_7, %c0_8] : memref<8x2x512xf32, #tpu.memory_space<vmem>>, vector<1x2x512xf32>
    %7 = vector.shape_cast %6 : vector<1x2x512xf32> to vector<2x512xf32>
    %cst = arith.constant dense<0.000000e+00> : vector<2x512xf32>
    %8 = tpu.matmul %4, %3, %cst {dimension_numbers = #tpu.dot_dimension_numbers<[1], [0], [0], [1], [0, 0, 1, 1], [], []>} : vector<2x128xf32>, vector<128x512xf32>, vector<2x512xf32> -> vector<2x512xf32>
    %9 = arith.addf %7, %8 : vector<2x512xf32>
    %10 = vector.extract_strided_slice %9 {offsets = [0, 0], sizes = [2, 128], strides = [1, 1]} : vector<2x512xf32> to vector<2x128xf32>
    %11 = arith.negf %10 : vector<2x128xf32>
    %12 = math.exp %11 : vector<2x128xf32>
    %cst_9 = arith.constant 1.000000e+00 : f32
    %13 = vector.broadcast %cst_9 : f32 to vector<2x128xf32>
    %14 = arith.addf %13, %12 : vector<2x128xf32>
    %15 = arith.divf %13, %14 : vector<2x128xf32>
    %16 = vector.extract_strided_slice %9 {offsets = [0, 128], sizes = [2, 128], strides = [1, 1]} : vector<2x512xf32> to vector<2x128xf32>
    %17 = arith.negf %16 : vector<2x128xf32>
    %18 = math.exp %17 : vector<2x128xf32>
    %cst_10 = arith.constant 1.000000e+00 : f32
    %19 = vector.broadcast %cst_10 : f32 to vector<2x128xf32>
    %20 = arith.addf %19, %18 : vector<2x128xf32>
    %21 = arith.divf %19, %20 : vector<2x128xf32>
    %22 = vector.extract_strided_slice %9 {offsets = [0, 256], sizes = [2, 128], strides = [1, 1]} : vector<2x512xf32> to vector<2x128xf32>
    %23 = math.tanh %22 : vector<2x128xf32>
    %24 = vector.extract_strided_slice %9 {offsets = [0, 384], sizes = [2, 128], strides = [1, 1]} : vector<2x512xf32> to vector<2x128xf32>
    %25 = arith.negf %24 : vector<2x128xf32>
    %26 = math.exp %25 : vector<2x128xf32>
    %cst_11 = arith.constant 1.000000e+00 : f32
    %27 = vector.broadcast %cst_11 : f32 to vector<2x128xf32>
    %28 = arith.addf %27, %26 : vector<2x128xf32>
    %29 = arith.divf %27, %28 : vector<2x128xf32>
    %30 = arith.mulf %21, %5 : vector<2x128xf32>
    %31 = arith.mulf %15, %23 : vector<2x128xf32>
    %32 = arith.addf %30, %31 : vector<2x128xf32>
    %33 = math.tanh %32 : vector<2x128xf32>
    %34 = arith.mulf %29, %33 : vector<2x128xf32>
    %c1 = arith.constant 1 : index
    %c0_12 = arith.constant 0 : index
    %c0_13 = arith.constant 0 : index
    %35 = vector.load %arg1[%c1, %c0_12, %c0_13] : memref<8x2x512xf32, #tpu.memory_space<vmem>>, vector<1x2x512xf32>
    %36 = vector.shape_cast %35 : vector<1x2x512xf32> to vector<2x512xf32>
    %cst_14 = arith.constant dense<0.000000e+00> : vector<2x512xf32>
    %37 = tpu.matmul %34, %3, %cst_14 {dimension_numbers = #tpu.dot_dimension_numbers<[1], [0], [0], [1], [0, 0, 1, 1], [], []>} : vector<2x128xf32>, vector<128x512xf32>, vector<2x512xf32> -> vector<2x512xf32>
    %38 = arith.addf %36, %37 : vector<2x512xf32>
    %39 = vector.extract_strided_slice %38 {offsets = [0, 0], sizes = [2, 128], strides = [1, 1]} : vector<2x512xf32> to vector<2x128xf32>
    %40 = arith.negf %39 : vector<2x128xf32>
    %41 = math.exp %40 : vector<2x128xf32>
    %cst_15 = arith.constant 1.000000e+00 : f32
    %42 = vector.broadcast %cst_15 : f32 to vector<2x128xf32>
    %43 = arith.addf %42, %41 : vector<2x128xf32>
    %44 = arith.divf %42, %43 : vector<2x128xf32>
    %45 = vector.extract_strided_slice %38 {offsets = [0, 128], sizes = [2, 128], strides = [1, 1]} : vector<2x512xf32> to vector<2x128xf32>
    %46 = arith.negf %45 : vector<2x128xf32>
    %47 = math.exp %46 : vector<2x128xf32>
    %cst_16 = arith.constant 1.000000e+00 : f32
    %48 = vector.broadcast %cst_16 : f32 to vector<2x128xf32>
    %49 = arith.addf %48, %47 : vector<2x128xf32>
    %50 = arith.divf %48, %49 : vector<2x128xf32>
    %51 = vector.extract_strided_slice %38 {offsets = [0, 256], sizes = [2, 128], strides = [1, 1]} : vector<2x512xf32> to vector<2x128xf32>
    %52 = math.tanh %51 : vector<2x128xf32>
    %53 = vector.extract_strided_slice %38 {offsets = [0, 384], sizes = [2, 128], strides = [1, 1]} : vector<2x512xf32> to vector<2x128xf32>
    %54 = arith.negf %53 : vector<2x128xf32>
    %55 = math.exp %54 : vector<2x128xf32>
    %cst_17 = arith.constant 1.000000e+00 : f32
    %56 = vector.broadcast %cst_17 : f32 to vector<2x128xf32>
    %57 = arith.addf %56, %55 : vector<2x128xf32>
    %58 = arith.divf %56, %57 : vector<2x128xf32>
    %59 = arith.mulf %50, %32 : vector<2x128xf32>
    %60 = arith.mulf %44, %52 : vector<2x128xf32>
    %61 = arith.addf %59, %60 : vector<2x128xf32>
    %62 = math.tanh %61 : vector<2x128xf32>
    %63 = arith.mulf %58, %62 : vector<2x128xf32>
    %c2 = arith.constant 2 : index
    %c0_18 = arith.constant 0 : index
    %c0_19 = arith.constant 0 : index
    %64 = vector.load %arg1[%c2, %c0_18, %c0_19] : memref<8x2x512xf32, #tpu.memory_space<vmem>>, vector<1x2x512xf32>
    %65 = vector.shape_cast %64 : vector<1x2x512xf32> to vector<2x512xf32>
    %cst_20 = arith.constant dense<0.000000e+00> : vector<2x512xf32>
    %66 = tpu.matmul %63, %3, %cst_20 {dimension_numbers = #tpu.dot_dimension_numbers<[1], [0], [0], [1], [0, 0, 1, 1], [], []>} : vector<2x128xf32>, vector<128x512xf32>, vector<2x512xf32> -> vector<2x512xf32>
    %67 = arith.addf %65, %66 : vector<2x512xf32>
    %68 = vector.extract_strided_slice %67 {offsets = [0, 0], sizes = [2, 128], strides = [1, 1]} : vector<2x512xf32> to vector<2x128xf32>
    %69 = arith.negf %68 : vector<2x128xf32>
    %70 = math.exp %69 : vector<2x128xf32>
    %cst_21 = arith.constant 1.000000e+00 : f32
    %71 = vector.broadcast %cst_21 : f32 to vector<2x128xf32>
    %72 = arith.addf %71, %70 : vector<2x128xf32>
    %73 = arith.divf %71, %72 : vector<2x128xf32>
    %74 = vector.extract_strided_slice %67 {offsets = [0, 128], sizes = [2, 128], strides = [1, 1]} : vector<2x512xf32> to vector<2x128xf32>
    %75 = arith.negf %74 : vector<2x128xf32>
    %76 = math.exp %75 : vector<2x128xf32>
    %cst_22 = arith.constant 1.000000e+00 : f32
    %77 = vector.broadcast %cst_22 : f32 to vector<2x128xf32>
    %78 = arith.addf %77, %76 : vector<2x128xf32>
    %79 = arith.divf %77, %78 : vector<2x128xf32>
    %80 = vector.extract_strided_slice %67 {offsets = [0, 256], sizes = [2, 128], strides = [1, 1]} : vector<2x512xf32> to vector<2x128xf32>
    %81 = math.tanh %80 : vector<2x128xf32>
    %82 = vector.extract_strided_slice %67 {offsets = [0, 384], sizes = [2, 128], strides = [1, 1]} : vector<2x512xf32> to vector<2x128xf32>
    %83 = arith.negf %82 : vector<2x128xf32>
    %84 = math.exp %83 : vector<2x128xf32>
    %cst_23 = arith.constant 1.000000e+00 : f32
    %85 = vector.broadcast %cst_23 : f32 to vector<2x128xf32>
    %86 = arith.addf %85, %84 : vector<2x128xf32>
    %87 = arith.divf %85, %86 : vector<2x128xf32>
    %88 = arith.mulf %79, %61 : vector<2x128xf32>
    %89 = arith.mulf %73, %81 : vector<2x128xf32>
    %90 = arith.addf %88, %89 : vector<2x128xf32>
    %91 = math.tanh %90 : vector<2x128xf32>
    %92 = arith.mulf %87, %91 : vector<2x128xf32>
    %c3 = arith.constant 3 : index
    %c0_24 = arith.constant 0 : index
    %c0_25 = arith.constant 0 : index
    %93 = vector.load %arg1[%c3, %c0_24, %c0_25] : memref<8x2x512xf32, #tpu.memory_space<vmem>>, vector<1x2x512xf32>
    %94 = vector.shape_cast %93 : vector<1x2x512xf32> to vector<2x512xf32>
    %cst_26 = arith.constant dense<0.000000e+00> : vector<2x512xf32>
    %95 = tpu.matmul %92, %3, %cst_26 {dimension_numbers = #tpu.dot_dimension_numbers<[1], [0], [0], [1], [0, 0, 1, 1], [], []>} : vector<2x128xf32>, vector<128x512xf32>, vector<2x512xf32> -> vector<2x512xf32>
    %96 = arith.addf %94, %95 : vector<2x512xf32>
    %97 = vector.extract_strided_slice %96 {offsets = [0, 0], sizes = [2, 128], strides = [1, 1]} : vector<2x512xf32> to vector<2x128xf32>
    %98 = arith.negf %97 : vector<2x128xf32>
    %99 = math.exp %98 : vector<2x128xf32>
    %cst_27 = arith.constant 1.000000e+00 : f32
    %100 = vector.broadcast %cst_27 : f32 to vector<2x128xf32>
    %101 = arith.addf %100, %99 : vector<2x128xf32>
    %102 = arith.divf %100, %101 : vector<2x128xf32>
    %103 = vector.extract_strided_slice %96 {offsets = [0, 128], sizes = [2, 128], strides = [1, 1]} : vector<2x512xf32> to vector<2x128xf32>
    %104 = arith.negf %103 : vector<2x128xf32>
    %105 = math.exp %104 : vector<2x128xf32>
    %cst_28 = arith.constant 1.000000e+00 : f32
    %106 = vector.broadcast %cst_28 : f32 to vector<2x128xf32>
    %107 = arith.addf %106, %105 : vector<2x128xf32>
    %108 = arith.divf %106, %107 : vector<2x128xf32>
    %109 = vector.extract_strided_slice %96 {offsets = [0, 256], sizes = [2, 128], strides = [1, 1]} : vector<2x512xf32> to vector<2x128xf32>
    %110 = math.tanh %109 : vector<2x128xf32>
    %111 = vector.extract_strided_slice %96 {offsets = [0, 384], sizes = [2, 128], strides = [1, 1]} : vector<2x512xf32> to vector<2x128xf32>
    %112 = arith.negf %111 : vector<2x128xf32>
    %113 = math.exp %112 : vector<2x128xf32>
    %cst_29 = arith.constant 1.000000e+00 : f32
    %114 = vector.broadcast %cst_29 : f32 to vector<2x128xf32>
    %115 = arith.addf %114, %113 : vector<2x128xf32>
    %116 = arith.divf %114, %115 : vector<2x128xf32>
    %117 = arith.mulf %108, %90 : vector<2x128xf32>
    %118 = arith.mulf %102, %110 : vector<2x128xf32>
    %119 = arith.addf %117, %118 : vector<2x128xf32>
    %120 = math.tanh %119 : vector<2x128xf32>
    %121 = arith.mulf %116, %120 : vector<2x128xf32>
    %c4 = arith.constant 4 : index
    %c0_30 = arith.constant 0 : index
    %c0_31 = arith.constant 0 : index
    %122 = vector.load %arg1[%c4, %c0_30, %c0_31] : memref<8x2x512xf32, #tpu.memory_space<vmem>>, vector<1x2x512xf32>
    %123 = vector.shape_cast %122 : vector<1x2x512xf32> to vector<2x512xf32>
    %cst_32 = arith.constant dense<0.000000e+00> : vector<2x512xf32>
    %124 = tpu.matmul %121, %3, %cst_32 {dimension_numbers = #tpu.dot_dimension_numbers<[1], [0], [0], [1], [0, 0, 1, 1], [], []>} : vector<2x128xf32>, vector<128x512xf32>, vector<2x512xf32> -> vector<2x512xf32>
    %125 = arith.addf %123, %124 : vector<2x512xf32>
    %126 = vector.extract_strided_slice %125 {offsets = [0, 0], sizes = [2, 128], strides = [1, 1]} : vector<2x512xf32> to vector<2x128xf32>
    %127 = arith.negf %126 : vector<2x128xf32>
    %128 = math.exp %127 : vector<2x128xf32>
    %cst_33 = arith.constant 1.000000e+00 : f32
    %129 = vector.broadcast %cst_33 : f32 to vector<2x128xf32>
    %130 = arith.addf %129, %128 : vector<2x128xf32>
    %131 = arith.divf %129, %130 : vector<2x128xf32>
    %132 = vector.extract_strided_slice %125 {offsets = [0, 128], sizes = [2, 128], strides = [1, 1]} : vector<2x512xf32> to vector<2x128xf32>
    %133 = arith.negf %132 : vector<2x128xf32>
    %134 = math.exp %133 : vector<2x128xf32>
    %cst_34 = arith.constant 1.000000e+00 : f32
    %135 = vector.broadcast %cst_34 : f32 to vector<2x128xf32>
    %136 = arith.addf %135, %134 : vector<2x128xf32>
    %137 = arith.divf %135, %136 : vector<2x128xf32>
    %138 = vector.extract_strided_slice %125 {offsets = [0, 256], sizes = [2, 128], strides = [1, 1]} : vector<2x512xf32> to vector<2x128xf32>
    %139 = math.tanh %138 : vector<2x128xf32>
    %140 = vector.extract_strided_slice %125 {offsets = [0, 384], sizes = [2, 128], strides = [1, 1]} : vector<2x512xf32> to vector<2x128xf32>
    %141 = arith.negf %140 : vector<2x128xf32>
    %142 = math.exp %141 : vector<2x128xf32>
    %cst_35 = arith.constant 1.000000e+00 : f32
    %143 = vector.broadcast %cst_35 : f32 to vector<2x128xf32>
    %144 = arith.addf %143, %142 : vector<2x128xf32>
    %145 = arith.divf %143, %144 : vector<2x128xf32>
    %146 = arith.mulf %137, %119 : vector<2x128xf32>
    %147 = arith.mulf %131, %139 : vector<2x128xf32>
    %148 = arith.addf %146, %147 : vector<2x128xf32>
    %149 = math.tanh %148 : vector<2x128xf32>
    %150 = arith.mulf %145, %149 : vector<2x128xf32>
    %c5 = arith.constant 5 : index
    %c0_36 = arith.constant 0 : index
    %c0_37 = arith.constant 0 : index
    %151 = vector.load %arg1[%c5, %c0_36, %c0_37] : memref<8x2x512xf32, #tpu.memory_space<vmem>>, vector<1x2x512xf32>
    %152 = vector.shape_cast %151 : vector<1x2x512xf32> to vector<2x512xf32>
    %cst_38 = arith.constant dense<0.000000e+00> : vector<2x512xf32>
    %153 = tpu.matmul %150, %3, %cst_38 {dimension_numbers = #tpu.dot_dimension_numbers<[1], [0], [0], [1], [0, 0, 1, 1], [], []>} : vector<2x128xf32>, vector<128x512xf32>, vector<2x512xf32> -> vector<2x512xf32>
    %154 = arith.addf %152, %153 : vector<2x512xf32>
    %155 = vector.extract_strided_slice %154 {offsets = [0, 0], sizes = [2, 128], strides = [1, 1]} : vector<2x512xf32> to vector<2x128xf32>
    %156 = arith.negf %155 : vector<2x128xf32>
    %157 = math.exp %156 : vector<2x128xf32>
    %cst_39 = arith.constant 1.000000e+00 : f32
    %158 = vector.broadcast %cst_39 : f32 to vector<2x128xf32>
    %159 = arith.addf %158, %157 : vector<2x128xf32>
    %160 = arith.divf %158, %159 : vector<2x128xf32>
    %161 = vector.extract_strided_slice %154 {offsets = [0, 128], sizes = [2, 128], strides = [1, 1]} : vector<2x512xf32> to vector<2x128xf32>
    %162 = arith.negf %161 : vector<2x128xf32>
    %163 = math.exp %162 : vector<2x128xf32>
    %cst_40 = arith.constant 1.000000e+00 : f32
    %164 = vector.broadcast %cst_40 : f32 to vector<2x128xf32>
    %165 = arith.addf %164, %163 : vector<2x128xf32>
    %166 = arith.divf %164, %165 : vector<2x128xf32>
    %167 = vector.extract_strided_slice %154 {offsets = [0, 256], sizes = [2, 128], strides = [1, 1]} : vector<2x512xf32> to vector<2x128xf32>
    %168 = math.tanh %167 : vector<2x128xf32>
    %169 = vector.extract_strided_slice %154 {offsets = [0, 384], sizes = [2, 128], strides = [1, 1]} : vector<2x512xf32> to vector<2x128xf32>
    %170 = arith.negf %169 : vector<2x128xf32>
    %171 = math.exp %170 : vector<2x128xf32>
    %cst_41 = arith.constant 1.000000e+00 : f32
    %172 = vector.broadcast %cst_41 : f32 to vector<2x128xf32>
    %173 = arith.addf %172, %171 : vector<2x128xf32>
    %174 = arith.divf %172, %173 : vector<2x128xf32>
    %175 = arith.mulf %166, %148 : vector<2x128xf32>
    %176 = arith.mulf %160, %168 : vector<2x128xf32>
    %177 = arith.addf %175, %176 : vector<2x128xf32>
    %178 = math.tanh %177 : vector<2x128xf32>
    %179 = arith.mulf %174, %178 : vector<2x128xf32>
    %c6 = arith.constant 6 : index
    %c0_42 = arith.constant 0 : index
    %c0_43 = arith.constant 0 : index
    %180 = vector.load %arg1[%c6, %c0_42, %c0_43] : memref<8x2x512xf32, #tpu.memory_space<vmem>>, vector<1x2x512xf32>
    %181 = vector.shape_cast %180 : vector<1x2x512xf32> to vector<2x512xf32>
    %cst_44 = arith.constant dense<0.000000e+00> : vector<2x512xf32>
    %182 = tpu.matmul %179, %3, %cst_44 {dimension_numbers = #tpu.dot_dimension_numbers<[1], [0], [0], [1], [0, 0, 1, 1], [], []>} : vector<2x128xf32>, vector<128x512xf32>, vector<2x512xf32> -> vector<2x512xf32>
    %183 = arith.addf %181, %182 : vector<2x512xf32>
    %184 = vector.extract_strided_slice %183 {offsets = [0, 0], sizes = [2, 128], strides = [1, 1]} : vector<2x512xf32> to vector<2x128xf32>
    %185 = arith.negf %184 : vector<2x128xf32>
    %186 = math.exp %185 : vector<2x128xf32>
    %cst_45 = arith.constant 1.000000e+00 : f32
    %187 = vector.broadcast %cst_45 : f32 to vector<2x128xf32>
    %188 = arith.addf %187, %186 : vector<2x128xf32>
    %189 = arith.divf %187, %188 : vector<2x128xf32>
    %190 = vector.extract_strided_slice %183 {offsets = [0, 128], sizes = [2, 128], strides = [1, 1]} : vector<2x512xf32> to vector<2x128xf32>
    %191 = arith.negf %190 : vector<2x128xf32>
    %192 = math.exp %191 : vector<2x128xf32>
    %cst_46 = arith.constant 1.000000e+00 : f32
    %193 = vector.broadcast %cst_46 : f32 to vector<2x128xf32>
    %194 = arith.addf %193, %192 : vector<2x128xf32>
    %195 = arith.divf %193, %194 : vector<2x128xf32>
    %196 = vector.extract_strided_slice %183 {offsets = [0, 256], sizes = [2, 128], strides = [1, 1]} : vector<2x512xf32> to vector<2x128xf32>
    %197 = math.tanh %196 : vector<2x128xf32>
    %198 = vector.extract_strided_slice %183 {offsets = [0, 384], sizes = [2, 128], strides = [1, 1]} : vector<2x512xf32> to vector<2x128xf32>
    %199 = arith.negf %198 : vector<2x128xf32>
    %200 = math.exp %199 : vector<2x128xf32>
    %cst_47 = arith.constant 1.000000e+00 : f32
    %201 = vector.broadcast %cst_47 : f32 to vector<2x128xf32>
    %202 = arith.addf %201, %200 : vector<2x128xf32>
    %203 = arith.divf %201, %202 : vector<2x128xf32>
    %204 = arith.mulf %195, %177 : vector<2x128xf32>
    %205 = arith.mulf %189, %197 : vector<2x128xf32>
    %206 = arith.addf %204, %205 : vector<2x128xf32>
    %207 = math.tanh %206 : vector<2x128xf32>
    %208 = arith.mulf %203, %207 : vector<2x128xf32>
    %c7 = arith.constant 7 : index
    %c0_48 = arith.constant 0 : index
    %c0_49 = arith.constant 0 : index
    %209 = vector.load %arg1[%c7, %c0_48, %c0_49] : memref<8x2x512xf32, #tpu.memory_space<vmem>>, vector<1x2x512xf32>
    %210 = vector.shape_cast %209 : vector<1x2x512xf32> to vector<2x512xf32>
    %cst_50 = arith.constant dense<0.000000e+00> : vector<2x512xf32>
    %211 = tpu.matmul %208, %3, %cst_50 {dimension_numbers = #tpu.dot_dimension_numbers<[1], [0], [0], [1], [0, 0, 1, 1], [], []>} : vector<2x128xf32>, vector<128x512xf32>, vector<2x512xf32> -> vector<2x512xf32>
    %212 = arith.addf %210, %211 : vector<2x512xf32>
    %213 = vector.extract_strided_slice %212 {offsets = [0, 0], sizes = [2, 128], strides = [1, 1]} : vector<2x512xf32> to vector<2x128xf32>
    %214 = arith.negf %213 : vector<2x128xf32>
    %215 = math.exp %214 : vector<2x128xf32>
    %cst_51 = arith.constant 1.000000e+00 : f32
    %216 = vector.broadcast %cst_51 : f32 to vector<2x128xf32>
    %217 = arith.addf %216, %215 : vector<2x128xf32>
    %218 = arith.divf %216, %217 : vector<2x128xf32>
    %219 = vector.extract_strided_slice %212 {offsets = [0, 128], sizes = [2, 128], strides = [1, 1]} : vector<2x512xf32> to vector<2x128xf32>
    %220 = arith.negf %219 : vector<2x128xf32>
    %221 = math.exp %220 : vector<2x128xf32>
    %cst_52 = arith.constant 1.000000e+00 : f32
    %222 = vector.broadcast %cst_52 : f32 to vector<2x128xf32>
    %223 = arith.addf %222, %221 : vector<2x128xf32>
    %224 = arith.divf %222, %223 : vector<2x128xf32>
    %225 = vector.extract_strided_slice %212 {offsets = [0, 256], sizes = [2, 128], strides = [1, 1]} : vector<2x512xf32> to vector<2x128xf32>
    %226 = math.tanh %225 : vector<2x128xf32>
    %227 = vector.extract_strided_slice %212 {offsets = [0, 384], sizes = [2, 128], strides = [1, 1]} : vector<2x512xf32> to vector<2x128xf32>
    %228 = arith.negf %227 : vector<2x128xf32>
    %229 = math.exp %228 : vector<2x128xf32>
    %cst_53 = arith.constant 1.000000e+00 : f32
    %230 = vector.broadcast %cst_53 : f32 to vector<2x128xf32>
    %231 = arith.addf %230, %229 : vector<2x128xf32>
    %232 = arith.divf %230, %231 : vector<2x128xf32>
    %233 = arith.mulf %224, %206 : vector<2x128xf32>
    %234 = arith.mulf %218, %226 : vector<2x128xf32>
    %235 = arith.addf %233, %234 : vector<2x128xf32>
    %236 = math.tanh %235 : vector<2x128xf32>
    %237 = arith.mulf %232, %236 : vector<2x128xf32>
    %c0_54 = arith.constant 0 : index
    %c0_55 = arith.constant 0 : index
    %238 = vector.load %arg8[%c0_54, %c0_55] : memref<2x128xf32, #tpu.memory_space<vmem>>, vector<2x128xf32>
    tpu.vector_store %arg8[%c0_54, %c0_55], %237 {strides = array<i32>} : memref<2x128xf32, #tpu.memory_space<vmem>>, vector<2x128xf32>,
    %c0_56 = arith.constant 0 : index
    %c0_57 = arith.constant 0 : index
    %239 = vector.load %arg9[%c0_56, %c0_57] : memref<2x128xf32, #tpu.memory_space<vmem>>, vector<2x128xf32>
    tpu.vector_store %arg9[%c0_56, %c0_57], %235 {strides = array<i32>} : memref<2x128xf32, #tpu.memory_space<vmem>>, vector<2x128xf32>,
    %c0_i32_58 = arith.constant 0 : i32
    %240 = arith.cmpi eq, %arg0, %c0_i32_58 : i32
    %241 = arith.extui %240 : i1 to i32
    %c0_i32_59 = arith.constant 0 : i32
    %242 = arith.cmpi ne, %241, %c0_i32_59 : i32
    scf.if %242 {
      %cst_60 = arith.constant 0.000000e+00 : f32
      %243 = vector.broadcast %cst_60 : f32 to vector<2x128xf32>
      %244 = arith.maximumf %237, %243 : vector<2x128xf32>
      %c0_61 = arith.constant 0 : index
      %c0_62 = arith.constant 0 : index
      %245 = vector.load %arg3[%c0_61, %c0_62] : memref<128x64xf32, #tpu.memory_space<vmem>>, vector<128x64xf32>
      %cst_63 = arith.constant dense<0.000000e+00> : vector<2x64xf32>
      %246 = tpu.matmul %244, %245, %cst_63 {dimension_numbers = #tpu.dot_dimension_numbers<[1], [0], [0], [1], [0, 0, 1, 1], [], []>} : vector<2x128xf32>, vector<128x64xf32>, vector<2x64xf32> -> vector<2x64xf32>
      %c0_64 = arith.constant 0 : index
      %c0_65 = arith.constant 0 : index
      %247 = vector.load %arg4[%c0_64, %c0_65] : memref<1x64xf32, #tpu.memory_space<vmem>>, vector<1x64xf32>
      %248 = vector.broadcast %247 : vector<1x64xf32> to vector<2x64xf32>
      %249 = arith.addf %246, %248 : vector<2x64xf32>
      %cst_66 = arith.constant 0.000000e+00 : f32
      %250 = vector.broadcast %cst_66 : f32 to vector<2x64xf32>
      %251 = arith.maximumf %249, %250 : vector<2x64xf32>
      %c0_67 = arith.constant 0 : index
      %c0_68 = arith.constant 0 : index
      %252 = vector.load %arg5[%c0_67, %c0_68] : memref<64x4xf32, #tpu.memory_space<vmem>>, vector<64x4xf32>
      %cst_69 = arith.constant dense<0.000000e+00> : vector<2x4xf32>
      %253 = tpu.matmul %251, %252, %cst_69 {dimension_numbers = #tpu.dot_dimension_numbers<[1], [0], [0], [1], [0, 0, 1, 1], [], []>} : vector<2x64xf32>, vector<64x4xf32>, vector<2x4xf32> -> vector<2x4xf32>
      %c0_70 = arith.constant 0 : index
      %c0_71 = arith.constant 0 : index
      %254 = vector.load %arg6[%c0_70, %c0_71] : memref<1x4xf32, #tpu.memory_space<vmem>>, vector<1x4xf32>
      %255 = vector.broadcast %254 : vector<1x4xf32> to vector<2x4xf32>
      %256 = arith.addf %253, %255 : vector<2x4xf32>
      %c0_72 = arith.constant 0 : index
      %c0_73 = arith.constant 0 : index
      %257 = vector.load %arg7[%c0_72, %c0_73] : memref<2x4xf32, #tpu.memory_space<vmem>>, vector<2x4xf32>
      tpu.vector_store %arg7[%c0_72, %c0_73], %256 {strides = array<i32>} : memref<2x4xf32, #tpu.memory_space<vmem>>, vector<2x4xf32>,
    } else {
    }
    return
  }
  func.func @transform_0(%arg0: i32) -> (i32, i32, i32) {
    %c0_i32 = arith.constant 0 : i32
    %c0_i32_0 = arith.constant 0 : i32
    %c0_i32_1 = arith.constant 0 : i32
    return %arg0, %c0_i32, %c0_i32_0 : i32, i32, i32
  }
  func.func @transform_1(%arg0: i32) -> (i32, i32) {
    %c0_i32 = arith.constant 0 : i32
    %c0_i32_0 = arith.constant 0 : i32
    %c0_i32_1 = arith.constant 0 : i32
    return %c0_i32, %c0_i32_0 : i32, i32
  }
  func.func @transform_2(%arg0: i32) -> (i32, i32) {
    %c0_i32 = arith.constant 0 : i32
    %c0_i32_0 = arith.constant 0 : i32
    %c0_i32_1 = arith.constant 0 : i32
    return %c0_i32, %c0_i32_0 : i32, i32
  }
  func.func @transform_3(%arg0: i32) -> (i32, i32) {
    %c0_i32 = arith.constant 0 : i32
    %c0_i32_0 = arith.constant 0 : i32
    %c0_i32_1 = arith.constant 0 : i32
    return %c0_i32, %c0_i32_0 : i32, i32
  }
  func.func @transform_4(%arg0: i32) -> (i32, i32) {
    %c0_i32 = arith.constant 0 : i32
    %c0_i32_0 = arith.constant 0 : i32
    %c0_i32_1 = arith.constant 0 : i32
    return %c0_i32, %c0_i32_0 : i32, i32
  }
  func.func @transform_5(%arg0: i32) -> (i32, i32) {
    %c0_i32 = arith.constant 0 : i32
    %c0_i32_0 = arith.constant 0 : i32
    %c0_i32_1 = arith.constant 0 : i32
    return %c0_i32, %c0_i32_0 : i32, i32
  }
  func.func @transform_6(%arg0: i32) -> (i32, i32) {
    %c0_i32 = arith.constant 0 : i32
    %c0_i32_0 = arith.constant 0 : i32
    %c0_i32_1 = arith.constant 0 : i32
    return %c0_i32, %c0_i32_0 : i32, i32
  }
}

</mosaic_0001>

<bundles_post_ra>
// kernel: lstm_forward.4
= control target key start
LH: loop header
LB: loop body
LE: loop exit
PB: predicated region body
PF: predicated region fallthrough
CT: control target
= control target key end

     0   :  { %8 = vsyncpa [#allocation3], 0  ;;  %s391_s0 = inlined_call_operand.vmem [shape: f32[16,16], index: 0, kind: input, shape index: {}]   ;;  %s392_s1 = inlined_call_operand.hbm [shape: f32[16,512], index: 1, kind: input, shape index: {}]   ;;  %s393_s2 = inlined_call_operand.hbm [shape: f32[1,512], index: 2, kind: input, shape index: {}]   ;;  %s394_s3 = inlined_call_operand.vmem [shape: f32[16,512], index: 3, kind: output, shape index: {}]  }
   0x1   :  { %9 = vsyncpa [#allocation5], 0  ;;  %s312_s12 = smov [#allocation2]   ;;  %s264_s16 = scalar_lea.hbm %s392_s1, 1024 }
   0x2   :  { %s17_s13 = sshll.u32 %s312_s12, 4  ;;  %p265_p0 = scmp.ne.s32.totalorder %s392_s1, %s264_s16  ;;  %s18_s13 = int_to_ptr.vmem [resolvable:$true] %s17_s13 }
   0x3   :  { %p268_p1 = scmp.lt.u32.totalorder %s264_s16, %s392_s1 }
   0x5   :  { %p270_p2 = pnand %p268_p1, %p265_p0 }
   0x7   :  { %273 = shalt.err (!%p270_p2)
}
   0x8   :  { %s274_s21 = scalar_lea.vmem %s18_s13, 1024  ;;  %p279_p4 = scmp.lt.s32.totalorder %s18_s13, %s18_s13 }
   0x9   :  { %p275_p3 = scmp.ne.s32.totalorder %s18_s13, %s274_s21  ;;  %p280_p5 = scmp.lt.s32.totalorder %s274_s21, %s274_s21 }
   0xb   :  { %p281_p6 = por %p280_p5, %p279_p4 }
   0xd   :  { %p282_p7 = pnand %p281_p6, %p275_p3 }
   0xf   :  { %285 = shalt.err (!%p282_p7)
}
  0x10   :  { %s313_s22 = smov 512   ;;  %s314_s23 = smov 32  }
  0x11   :  { %23 = dma.hbm_to_vmem [thread:$0]  %s392_s1, 1024, %s18_s13, [#allocation3], %s313_s22, %s313_s22, %s314_s23  }
  0x12   :  { %s315_s26 = smov [#allocation4]   ;;  %s286_s30 = scalar_lea.hbm %s393_s2, 64 }
  0x13   :  { %s30_s27 = sshll.u32 %s315_s26, 4  ;;  %p287_p8 = scmp.ne.s32.totalorder %s393_s2, %s286_s30  ;;  %s31_s27 = int_to_ptr.vmem [resolvable:$true] %s30_s27 }
  0x14   :  { %p290_p9 = scmp.lt.u32.totalorder %s286_s30, %s393_s2 }
  0x16   :  { %p292_p10 = pnand %p290_p9, %p287_p8 }
  0x18   :  { %295 = shalt.err (!%p292_p10)
}
  0x19   :  { %s296_s8 = scalar_lea.vmem %s31_s27, 64  ;;  %p301_p12 = scmp.lt.s32.totalorder %s31_s27, %s31_s27 }
  0x1a   :  { %p297_p11 = scmp.ne.s32.totalorder %s31_s27, %s296_s8  ;;  %p302_p13 = scmp.lt.s32.totalorder %s296_s8, %s296_s8 }
  0x1c   :  { %p303_p0 = por %p302_p13, %p301_p12 }
  0x1e   :  { %p304_p1 = pnand %p303_p0, %p297_p11 }
  0x20   :  { %307 = shalt.err (!%p304_p1)
}
  0x21   :  { %33 = dma.hbm_to_vmem [thread:$0]  %s393_s2, 64, %s31_s27, [#allocation5]  }
  0x22   :  { %308 = dma.done.wait [#allocation3], 1024  }
  0x23   :  { %309 = vsyncadd [#allocation3], 4294966272 }
  0x24   :  { %310 = dma.done.wait [#allocation5], 64  }
  0x25   :  { %311 = vsyncadd [#allocation5], 4294967232  ;;  %v316_v0 = vmov 0.0   ;;  %v43_v1 = vld [vmem:[#allocation2 + $0x8] sm:$0xff]  ;;  %v45_v3 = vld [vmem:[#allocation2 + $0x18] sm:$0xff]  ;;  %vm72_vm0 = vcmask 130048   ;;  %v52_v15 = vlaneseq }
  0x26   :  { %143 = vmatprep.mubr.f32.mxu0 %v316_v0  ;;  %220 = vmatprep.mubr.f32.mxu1 %v316_v0  ;;  %v47_v2 = vld [vmem:[#allocation2 + $0x28] sm:$0xff]  ;;  %v49_v5 = vld [vmem:[#allocation2 + $0x38] sm:$0xff]  ;;  %v42_v6 = vld [vmem:[#allocation2] sm:$0xff] }
  0x27   :  { %v251_v4 = vpack.c.bf16 %v47_v2, %v43_v1  ;;  %v46_v7 = vld [vmem:[#allocation2 + $0x20] sm:$0xff]  ;;  %v255_v8 = vpack.c.bf16 %v49_v5, %v45_v3  ;;  %v44_v10 = vld [vmem:[#allocation2 + $0x10] sm:$0xff]  ;;  %v41_v14 = vld [vmem:[%s391_s0 + $0x8] sm:$0xff]  ;;  %v53_v16 = vshrl.u32 %v52_v15, 7 }
  0x28   :  { %v253_v9 = vpack.c.bf16 %v46_v7, %v42_v6  ;;  %v48_v11 = vld [vmem:[#allocation2 + $0x30] sm:$0xff]  ;;  %v40_v13 = vld [vmem:[%s391_s0] sm:$0xff] }
  0x29   :  { %252 = vmatprep.subr.bf16.mxu0 %v251_v4  ;;  %v257_v12 = vpack.c.bf16 %v48_v11, %v44_v10  ;;  %256 = vmatprep.subr.bf16.mxu1 %v255_v8  ;;  %v54_v17 = vsub.s32 0, %v53_v16  ;;  %v50_v18 = vld [vmem:[#allocation4] sm:$0xf]  ;;  %v62_v19 = vsub.s32 2, %v53_v16  ;;  %v58_v20 = vsub.s32 1, %v53_v16 }
  0x2a   :  { %254 = vmatpush1.bf16.msra.mxu0 %v253_v9  ;;  %v66_v21 = vsub.s32 3, %v53_v16 }
  0x2b   :  { %258 = vmatpush1.bf16.msra.mxu1 %v257_v12  ;;  %v55_v22 = vrot.slane %v50_v18, %v54_v17  ;;  %v63_v23 = vrot.slane %v50_v18, %v62_v19  ;;  %v59_v24 = vrot.slane %v50_v18, %v58_v20 }
  0x2c   :  { %v67_v25 = vrot.slane %v50_v18, %v66_v21 }
  0x2d   :  { %247 = vmatmul.mubr.msk.f32.vlgmr.msra.gmra.mrb[0].mxu0 %vm72_vm0, %v40_v13 }
  0x2e   :  { %249 = vmatmul.mubr.msk.f32.vlgmr.msra.gmra.mrb[0].mxu1 %vm72_vm0, %v40_v13  ;;  %149 = vmatprep.mubr.f32.mxu0 %v316_v0 }
  0x2f   :  { %226 = vmatprep.mubr.f32.mxu1 %v316_v0 }
  0x31   :  { %248 = vmatmul.mubr.msk.f32.gmra.mrb[2].mxu0 %vm72_vm0, %v41_v14 }
  0x32   :  { %250 = vmatmul.mubr.msk.f32.gmra.mrb[2].mxu1 %vm72_vm0, %v41_v14 }
 0x100   :  { %v145_v26 = vpop.f32.mrb[0].mxu0 }
 0x101   :  { %v146_v27 = vadd.f32 %v145_v26, %v55_v22  ;;  %v222_v28 = vpop.f32.mrb[0].mxu1  ;;  %v147_v29 = vpop.f32.mrb[1].mxu0 }
 0x102   :  { %v223_v30 = vadd.f32 %v222_v28, %v63_v23  ;;  %v148_v31 = vadd.f32 %v147_v29, %v59_v24  ;;  %v224_v32 = vpop.f32.mrb[1].mxu1 }
 0x103   :  { %233 = vst [vmem:[%s394_s3] sm:$0xff] %v146_v27  ;;  %v225_v33 = vadd.f32 %v224_v32, %v67_v25 }
 0x104   :  { %235 = vst [vmem:[%s394_s3 + $0x10] sm:$0xff] %v223_v30  ;;  %234 = vst [vmem:[%s394_s3 + $0x8] sm:$0xff] %v148_v31  ;;  %v151_v34 = vpop.f32.mrb[2].mxu0 }
 0x105   :  { %236 = vst [vmem:[%s394_s3 + $0x18] sm:$0xff] %v225_v33  ;;  %v152_v35 = vadd.f32 %v151_v34, %v55_v22  ;;  %v228_v36 = vpop.f32.mrb[2].mxu1  ;;  %v153_v37 = vpop.f32.mrb[3].mxu0 }
 0x106   :  { %v229_v38 = vadd.f32 %v228_v36, %v63_v23  ;;  %v154_v39 = vadd.f32 %v153_v37, %v59_v24  ;;  %v230_v40 = vpop.f32.mrb[3].mxu1 }
 0x107   :  { %237 = vst [vmem:[%s394_s3 + $0x20] sm:$0xff] %v152_v35  ;;  %v231_v41 = vadd.f32 %v230_v40, %v67_v25 }
 0x108   :  { %239 = vst [vmem:[%s394_s3 + $0x30] sm:$0xff] %v229_v38  ;;  %238 = vst [vmem:[%s394_s3 + $0x28] sm:$0xff] %v154_v39 }
 0x109   :  { %240 = vst [vmem:[%s394_s3 + $0x38] sm:$0xff] %v231_v41 }
 0x10a   :  { %245 = vsyncpa [#allocation3], 1 }
 0x10b   :  { %246 = vsyncpa [#allocation5], 1 }

// kernel: lstm_forward.6
= control target key start
LH: loop header
LB: loop body
LE: loop exit
PB: predicated region body
PF: predicated region fallthrough
CT: control target
= control target key end

     0   :  { %v333_v3 = vmov 0.0   ;;  %s583_s1 = inlined_call_operand.vmem [shape: f32[128,512], index: 1, kind: input, shape index: {}]   ;;  %s584_s0 = inlined_call_operand.vmem [shape: f32[16,128], index: 0, kind: input, shape index: {}]   ;;  %s585_s2 = inlined_call_operand.vmem [shape: f32[1,512], index: 2, kind: input, shape index: {}]   ;;  %s586_s3 = inlined_call_operand.vmem [shape: f32[16,512], index: 3, kind: output, shape index: {}]  }
   0x1   :  { %v17_v0 = vld [vmem:[%s583_s1 + $0x8] sm:$0xff]  ;;  %v19_v2 = vld [vmem:[%s583_s1 + $0x18] sm:$0xff]  ;;  %166 = vmatprep.mubr.f32.mxu0 %v333_v3  ;;  %243 = vmatprep.mubr.f32.mxu1 %v333_v3  ;;  %v16_v6 = vld [vmem:[%s583_s1] sm:$0xff] }
   0x2   :  { %v21_v1 = vld [vmem:[%s583_s1 + $0x28] sm:$0xff]  ;;  %v23_v5 = vld [vmem:[%s583_s1 + $0x38] sm:$0xff]  ;;  %v20_v7 = vld [vmem:[%s583_s1 + $0x20] sm:$0xff] }
   0x3   :  { %v268_v4 = vpack.c.bf16 %v21_v1, %v17_v0  ;;  %v300_v8 = vpack.c.bf16 %v23_v5, %v19_v2  ;;  %v270_v9 = vpack.c.bf16 %v20_v7, %v16_v6  ;;  %v18_v10 = vld [vmem:[%s583_s1 + $0x10] sm:$0xff]  ;;  %v25_v12 = vld [vmem:[%s583_s1 + $0x48] sm:$0xff]  ;;  %v27_v15 = vld [vmem:[%s583_s1 + $0x58] sm:$0xff] }
   0x4   :  { %v22_v11 = vld [vmem:[%s583_s1 + $0x30] sm:$0xff]  ;;  %v29_v14 = vld [vmem:[%s583_s1 + $0x68] sm:$0xff]  ;;  %v31_v16 = vld [vmem:[%s583_s1 + $0x78] sm:$0xff] }
   0x5   :  { %269 = vmatprep.subr.bf16.mxu0 %v268_v4  ;;  %v302_v13 = vpack.c.bf16 %v22_v11, %v18_v10  ;;  %301 = vmatprep.subr.bf16.mxu1 %v300_v8  ;;  %v272_v17 = vpack.c.bf16 %v29_v14, %v25_v12  ;;  %v304_v18 = vpack.c.bf16 %v31_v16, %v27_v15  ;;  %v24_v19 = vld [vmem:[%s583_s1 + $0x40] sm:$0xff]  ;;  %v26_v21 = vld [vmem:[%s583_s1 + $0x50] sm:$0xff]  ;;  %v33_v24 = vld [vmem:[%s583_s1 + $0x88] sm:$0xff] }
   0x6   :  { %271 = vmatpush1.bf16.msra.mxu0 %v270_v9  ;;  %v28_v20 = vld [vmem:[%s583_s1 + $0x60] sm:$0xff]  ;;  %v30_v23 = vld [vmem:[%s583_s1 + $0x70] sm:$0xff]  ;;  %v37_v25 = vld [vmem:[%s583_s1 + $0xa8] sm:$0xff] }
   0x7   :  { %303 = vmatpush1.bf16.msra.mxu1 %v302_v13  ;;  %v274_v22 = vpack.c.bf16 %v28_v20, %v24_v19  ;;  %273 = vmatprep.subr.bf16.mxu0 %v272_v17  ;;  %v306_v26 = vpack.c.bf16 %v30_v23, %v26_v21  ;;  %v276_v27 = vpack.c.bf16 %v37_v25, %v33_v24  ;;  %v35_v28 = vld [vmem:[%s583_s1 + $0x98] sm:$0xff]  ;;  %v32_v30 = vld [vmem:[%s583_s1 + $0x80] sm:$0xff]  ;;  %v34_v33 = vld [vmem:[%s583_s1 + $0x90] sm:$0xff] }
   0x8   :  { %305 = vmatprep.subr.bf16.mxu1 %v304_v18  ;;  %v39_v29 = vld [vmem:[%s583_s1 + $0xb8] sm:$0xff]  ;;  %v36_v32 = vld [vmem:[%s583_s1 + $0xa0] sm:$0xff]  ;;  %v38_v34 = vld [vmem:[%s583_s1 + $0xb0] sm:$0xff] }
   0x9   :  { %v308_v31 = vpack.c.bf16 %v39_v29, %v35_v28  ;;  %v278_v35 = vpack.c.bf16 %v36_v32, %v32_v30  ;;  %v41_v36 = vld [vmem:[%s583_s1 + $0xc8] sm:$0xff]  ;;  %v43_v38 = vld [vmem:[%s583_s1 + $0xd8] sm:$0xff]  ;;  %v310_v39 = vpack.c.bf16 %v38_v34, %v34_v33  ;;  %v40_v42 = vld [vmem:[%s583_s1 + $0xc0] sm:$0xff] }
   0xa   :  { %275 = vmatpush1.bf16.msra.mxu0 %v274_v22  ;;  %v45_v37 = vld [vmem:[%s583_s1 + $0xe8] sm:$0xff]  ;;  %v47_v41 = vld [vmem:[%s583_s1 + $0xf8] sm:$0xff]  ;;  %v44_v43 = vld [vmem:[%s583_s1 + $0xe0] sm:$0xff] }
   0xb   :  { %307 = vmatpush1.bf16.msra.mxu1 %v306_v26  ;;  %277 = vmatprep.subr.bf16.mxu0 %v276_v27  ;;  %v280_v40 = vpack.c.bf16 %v45_v37, %v41_v36  ;;  %v312_v44 = vpack.c.bf16 %v47_v41, %v43_v38  ;;  %v42_v45 = vld [vmem:[%s583_s1 + $0xd0] sm:$0xff]  ;;  %v49_v47 = vld [vmem:[%s583_s1 + $0x108] sm:$0xff]  ;;  %v51_v49 = vld [vmem:[%s583_s1 + $0x118] sm:$0xff]  ;;  %v282_v51 = vpack.c.bf16 %v44_v43, %v40_v42  ;;  %v82_v36 = vlaneseq }
   0xc   :  { %309 = vmatprep.subr.bf16.mxu1 %v308_v31  ;;  %v46_v46 = vld [vmem:[%s583_s1 + $0xf0] sm:$0xff]  ;;  %v53_v48 = vld [vmem:[%s583_s1 + $0x128] sm:$0xff]  ;;  %v55_v50 = vld [vmem:[%s583_s1 + $0x138] sm:$0xff] }
   0xd   :  { %v314_v52 = vpack.c.bf16 %v46_v46, %v42_v45  ;;  %v284_v53 = vpack.c.bf16 %v53_v48, %v49_v47  ;;  %v48_v54 = vld [vmem:[%s583_s1 + $0x100] sm:$0xff]  ;;  %v50_v56 = vld [vmem:[%s583_s1 + $0x110] sm:$0xff]  ;;  %v316_v57 = vpack.c.bf16 %v55_v50, %v51_v49  ;;  %v57_v59 = vld [vmem:[%s583_s1 + $0x148] sm:$0xff]  ;;  %v83_v37 = vshrl.u32 %v82_v36, 7 }
   0xe   :  { %279 = vmatpush1.bf16.msra.mxu0 %v278_v35  ;;  %v52_v55 = vld [vmem:[%s583_s1 + $0x120] sm:$0xff]  ;;  %v54_v58 = vld [vmem:[%s583_s1 + $0x130] sm:$0xff]  ;;  %v61_v60 = vld [vmem:[%s583_s1 + $0x168] sm:$0xff] }
   0xf   :  { %311 = vmatpush1.bf16.msra.mxu1 %v310_v39  ;;  %281 = vmatprep.subr.bf16.mxu0 %v280_v40  ;;  %v59_v61 = vld [vmem:[%s583_s1 + $0x158] sm:$0xff]  ;;  %v286_v63 = vpack.c.bf16 %v52_v55, %v48_v54  ;;  %v318_v0 = vpack.c.bf16 %v54_v58, %v50_v56  ;;  %v288_v1 = vpack.c.bf16 %v61_v60, %v57_v59  ;;  %v56_v2 = vld [vmem:[%s583_s1 + $0x140] sm:$0xff]  ;;  %v58_v5 = vld [vmem:[%s583_s1 + $0x150] sm:$0xff]  ;;  %v84_v38 = vsub.s32 0, %v83_v37 }
  0x10   :  { %313 = vmatprep.subr.bf16.mxu1 %v312_v44  ;;  %v63_v62 = vld [vmem:[%s583_s1 + $0x178] sm:$0xff]  ;;  %v60_v4 = vld [vmem:[%s583_s1 + $0x160] sm:$0xff]  ;;  %v62_v7 = vld [vmem:[%s583_s1 + $0x170] sm:$0xff]  ;;  %v92_v40 = vsub.s32 2, %v83_v37  ;;  %v88_v41 = vsub.s32 1, %v83_v37  ;;  %v96_v42 = vsub.s32 3, %v83_v37 }
  0x11   :  { %v320_v6 = vpack.c.bf16 %v63_v62, %v59_v61  ;;  %v65_v8 = vld [vmem:[%s583_s1 + $0x188] sm:$0xff]  ;;  %v67_v10 = vld [vmem:[%s583_s1 + $0x198] sm:$0xff]  ;;  %v290_v12 = vpack.c.bf16 %v60_v4, %v56_v2  ;;  %v322_v13 = vpack.c.bf16 %v62_v7, %v58_v5  ;;  %v64_v15 = vld [vmem:[%s583_s1 + $0x180] sm:$0xff] }
  0x12   :  { %283 = vmatpush1.bf16.msra.mxu0 %v282_v51  ;;  %v69_v9 = vld [vmem:[%s583_s1 + $0x1a8] sm:$0xff]  ;;  %v71_v11 = vld [vmem:[%s583_s1 + $0x1b8] sm:$0xff]  ;;  %v68_v16 = vld [vmem:[%s583_s1 + $0x1a0] sm:$0xff] }
  0x13   :  { %315 = vmatpush1.bf16.msra.mxu1 %v314_v52  ;;  %285 = vmatprep.subr.bf16.mxu0 %v284_v53  ;;  %v292_v14 = vpack.c.bf16 %v69_v9, %v65_v8  ;;  %v66_v17 = vld [vmem:[%s583_s1 + $0x190] sm:$0xff]  ;;  %v324_v18 = vpack.c.bf16 %v71_v11, %v67_v10  ;;  %v73_v20 = vld [vmem:[%s583_s1 + $0x1c8] sm:$0xff]  ;;  %v75_v22 = vld [vmem:[%s583_s1 + $0x1d8] sm:$0xff]  ;;  %v294_v24 = vpack.c.bf16 %v68_v16, %v64_v15 }
  0x14   :  { %317 = vmatprep.subr.bf16.mxu1 %v316_v57  ;;  %v70_v19 = vld [vmem:[%s583_s1 + $0x1b0] sm:$0xff]  ;;  %v77_v21 = vld [vmem:[%s583_s1 + $0x1e8] sm:$0xff]  ;;  %v79_v23 = vld [vmem:[%s583_s1 + $0x1f8] sm:$0xff] }
  0x15   :  { %v326_v25 = vpack.c.bf16 %v70_v19, %v66_v17  ;;  %v296_v26 = vpack.c.bf16 %v77_v21, %v73_v20  ;;  %v72_v27 = vld [vmem:[%s583_s1 + $0x1c0] sm:$0xff]  ;;  %v328_v29 = vpack.c.bf16 %v79_v23, %v75_v22  ;;  %v74_v30 = vld [vmem:[%s583_s1 + $0x1d0] sm:$0xff]  ;;  %v15_v35 = vld [vmem:[%s584_s0 + $0x8] sm:$0xff] }
  0x16   :  { %287 = vmatpush1.bf16.msra.mxu0 %v286_v63  ;;  %v76_v28 = vld [vmem:[%s583_s1 + $0x1e0] sm:$0xff]  ;;  %v78_v31 = vld [vmem:[%s583_s1 + $0x1f0] sm:$0xff] }
  0x17   :  { %319 = vmatpush1.bf16.msra.mxu1 %v318_v0  ;;  %289 = vmatprep.subr.bf16.mxu0 %v288_v1  ;;  %v298_v32 = vpack.c.bf16 %v76_v28, %v72_v27  ;;  %v330_v33 = vpack.c.bf16 %v78_v31, %v74_v30  ;;  %v14_v34 = vld [vmem:[%s584_s0] sm:$0xff] }
  0x18   :  { %321 = vmatprep.subr.bf16.mxu1 %v320_v6  ;;  %v80_v39 = vld [vmem:[%s585_s2] sm:$0xf] }
  0x19   :  { %v85_v43 = vrot.slane %v80_v39, %v84_v38  ;;  %v93_v44 = vrot.slane %v80_v39, %v92_v40  ;;  %v89_v45 = vrot.slane %v80_v39, %v88_v41  ;;  %v97_v46 = vrot.slane %v80_v39, %v96_v42 }
  0x1a   :  { %291 = vmatpush1.bf16.msra.mxu0 %v290_v12 }
  0x1b   :  { %323 = vmatpush1.bf16.msra.mxu1 %v322_v13  ;;  %293 = vmatprep.subr.bf16.mxu0 %v292_v14 }
  0x1c   :  { %325 = vmatprep.subr.bf16.mxu1 %v324_v18 }
  0x1e   :  { %295 = vmatpush1.bf16.msra.mxu0 %v294_v24 }
  0x1f   :  { %327 = vmatpush1.bf16.msra.mxu1 %v326_v25  ;;  %297 = vmatprep.subr.bf16.mxu0 %v296_v26 }
  0x20   :  { %329 = vmatprep.subr.bf16.mxu1 %v328_v29 }
  0x22   :  { %299 = vmatpush1.bf16.msra.mxu0 %v298_v32 }
  0x23   :  { %331 = vmatpush1.bf16.msra.mxu1 %v330_v33 }
  0x25   :  { %167 = vmatmul.mubr.f32.vlgmr.msra.gmra.mrb[0].mxu0 %v14_v34 }
  0x26   :  { %244 = vmatmul.mubr.f32.vlgmr.msra.gmra.mrb[0].mxu1 %v14_v34  ;;  %172 = vmatprep.mubr.f32.mxu0 %v333_v3 }
  0x27   :  { %249 = vmatprep.mubr.f32.mxu1 %v333_v3 }
  0x29   :  { %173 = vmatmul.mubr.f32.gmra.mrb[2].mxu0 %v15_v35 }
  0x2a   :  { %250 = vmatmul.mubr.f32.gmra.mrb[2].mxu1 %v15_v35 }
  0xf8   :  { %v168_v47 = vpop.f32.mrb[0].mxu0 }
  0xf9   :  { %v169_v48 = vadd.f32 %v168_v47, %v85_v43  ;;  %v245_v49 = vpop.f32.mrb[0].mxu1  ;;  %v170_v3 = vpop.f32.mrb[1].mxu0 }
  0xfa   :  { %v246_v50 = vadd.f32 %v245_v49, %v93_v44  ;;  %v171_v51 = vadd.f32 %v170_v3, %v89_v45  ;;  %v247_v52 = vpop.f32.mrb[1].mxu1 }
  0xfb   :  { %256 = vst [vmem:[%s586_s3] sm:$0xff] %v169_v48  ;;  %v248_v53 = vadd.f32 %v247_v52, %v97_v46 }
  0xfc   :  { %258 = vst [vmem:[%s586_s3 + $0x10] sm:$0xff] %v246_v50  ;;  %257 = vst [vmem:[%s586_s3 + $0x8] sm:$0xff] %v171_v51  ;;  %v174_v54 = vpop.f32.mrb[2].mxu0 }
  0xfd   :  { %259 = vst [vmem:[%s586_s3 + $0x18] sm:$0xff] %v248_v53  ;;  %v175_v55 = vadd.f32 %v174_v54, %v85_v43  ;;  %v251_v56 = vpop.f32.mrb[2].mxu1  ;;  %v176_v57 = vpop.f32.mrb[3].mxu0 }
  0xfe   :  { %v252_v58 = vadd.f32 %v251_v56, %v93_v44  ;;  %v177_v59 = vadd.f32 %v176_v57, %v89_v45  ;;  %v253_v60 = vpop.f32.mrb[3].mxu1 }
  0xff   :  { %260 = vst [vmem:[%s586_s3 + $0x20] sm:$0xff] %v175_v55  ;;  %v254_v61 = vadd.f32 %v253_v60, %v97_v46 }
 0x100   :  { %262 = vst [vmem:[%s586_s3 + $0x30] sm:$0xff] %v252_v58  ;;  %261 = vst [vmem:[%s586_s3 + $0x28] sm:$0xff] %v177_v59 }
 0x101   :  { %263 = vst [vmem:[%s586_s3 + $0x38] sm:$0xff] %v254_v61 }

// kernel: lstm_forward.5
= control target key start
LH: loop header
LB: loop body
LE: loop exit
PB: predicated region body
PF: predicated region fallthrough
CT: control target
= control target key end

     0   :  { %7 = vsyncpa [#allocation5], 0  ;;  %s2409_s9 = smov [#allocation4]   ;;  %s2869_s0 = inlined_call_operand.vmem [shape: f32[8,2,512], index: 0, kind: input, shape index: {}]   ;;  %s2870_s1 = inlined_call_operand.hbm [shape: f32[128,512], index: 1, kind: input, shape index: {}]   ;;  %s2871_s2 = inlined_call_operand.vmem [shape: f32[8,2,128], index: 2, kind: output, shape index: {}]  }
   0x1   :  { %s15_s10 = sshll.u32 %s2409_s9, 4  ;;  %s2385_s13 = scalar_lea.hbm %s2870_s1, 8192  ;;  %s16_s10 = int_to_ptr.vmem [resolvable:$true] %s15_s10 }
   0x2   :  { %p2386_p0 = scmp.ne.s32.totalorder %s2870_s1, %s2385_s13  ;;  %p2389_p1 = scmp.lt.u32.totalorder %s2385_s13, %s2870_s1 }
   0x4   :  { %p2391_p2 = pnand %p2389_p1, %p2386_p0 }
   0x6   :  { %2394 = shalt.err (!%p2391_p2)
}
   0x7   :  { %s2395_s18 = scalar_lea.vmem %s16_s10, 8192  ;;  %p2400_p4 = scmp.lt.s32.totalorder %s16_s10, %s16_s10 }
   0x8   :  { %p2396_p3 = scmp.ne.s32.totalorder %s16_s10, %s2395_s18  ;;  %p2401_p5 = scmp.lt.s32.totalorder %s2395_s18, %s2395_s18 }
   0xa   :  { %p2402_p6 = por %p2401_p5, %p2400_p4 }
   0xc   :  { %p2403_p7 = pnand %p2402_p6, %p2396_p3 }
   0xe   :  { %2406 = shalt.err (!%p2403_p7)
}
   0xf   :  { %s2410_s19 = smov 512   ;;  %s2411_s20 = smov 32  }
  0x10   :  { %21 = dma.hbm_to_vmem [thread:$0]  %s2870_s1, 8192, %s16_s10, [#allocation5], %s2410_s19, %s2410_s19, %s2411_s20  }
  0x11   :  { %2407 = dma.done.wait [#allocation5], 8192  }
  0x12   :  { %2408 = vsyncadd [#allocation5], 4294959104  ;;  %v2412_v0 = vmov 0.0   ;;  %v32_v1 = vld [vmem:[#allocation4 + $0x8] sm:$0xff]  ;;  %v34_v3 = vld [vmem:[#allocation4 + $0x18] sm:$0xff] }
  0x13   :  { %162 = vmatprep.mubr.f32.mxu0 %v2412_v0  ;;  %29 = vst [vmem:[#allocation2] sm:$0x3] %v2412_v0  ;;  %30 = vst [vmem:[#allocation3] sm:$0x3] %v2412_v0  ;;  %233 = vmatprep.mubr.f32.mxu1 %v2412_v0  ;;  %v36_v2 = vld [vmem:[#allocation4 + $0x28] sm:$0xff]  ;;  %v38_v5 = vld [vmem:[#allocation4 + $0x38] sm:$0xff] }
  0x14   :  { %v2445_v4 = vpack.c.bf16 %v36_v2, %v32_v1  ;;  %v31_v6 = vld [vmem:[#allocation4] sm:$0xff]  ;;  %v2447_v8 = vpack.c.bf16 %v38_v5, %v34_v3  ;;  %v33_v10 = vld [vmem:[#allocation4 + $0x10] sm:$0xff]  ;;  %v40_v12 = vld [vmem:[#allocation4 + $0x48] sm:$0xff] }
  0x15   :  { %v35_v7 = vld [vmem:[#allocation4 + $0x20] sm:$0xff]  ;;  %v37_v11 = vld [vmem:[#allocation4 + $0x30] sm:$0xff]  ;;  %v44_v14 = vld [vmem:[#allocation4 + $0x68] sm:$0xff] }
  0x16   :  { %v2449_v9 = vpack.c.bf16 %v35_v7, %v31_v6  ;;  %1741 = vmatprep.subr.bf16.mxu0 %v2445_v4  ;;  %v2452_v13 = vpack.c.bf16 %v37_v11, %v33_v10  ;;  %v42_v15 = vld [vmem:[#allocation4 + $0x58] sm:$0xff]  ;;  %1773 = vmatprep.subr.bf16.mxu1 %v2447_v8  ;;  %v2456_v17 = vpack.c.bf16 %v44_v14, %v40_v12  ;;  %v39_v19 = vld [vmem:[#allocation4 + $0x40] sm:$0xff]  ;;  %v41_v21 = vld [vmem:[#allocation4 + $0x50] sm:$0xff] }
  0x17   :  { %v46_v16 = vld [vmem:[#allocation4 + $0x78] sm:$0xff]  ;;  %v43_v20 = vld [vmem:[#allocation4 + $0x60] sm:$0xff]  ;;  %v45_v23 = vld [vmem:[#allocation4 + $0x70] sm:$0xff] }
  0x18   :  { %1743 = vmatpush1.bf16.msra.mxu0 %v2449_v9  ;;  %v2458_v18 = vpack.c.bf16 %v46_v16, %v42_v15  ;;  %1775 = vmatpush1.bf16.msra.mxu1 %v2452_v13  ;;  %v2461_v22 = vpack.c.bf16 %v43_v20, %v39_v19  ;;  %v48_v24 = vld [vmem:[#allocation4 + $0x88] sm:$0xff]  ;;  %v2465_v26 = vpack.c.bf16 %v45_v23, %v41_v21  ;;  %v50_v28 = vld [vmem:[#allocation4 + $0x98] sm:$0xff]  ;;  %v47_v30 = vld [vmem:[#allocation4 + $0x80] sm:$0xff] }
  0x19   :  { %v52_v25 = vld [vmem:[#allocation4 + $0xa8] sm:$0xff]  ;;  %1745 = vmatprep.subr.bf16.mxu0 %v2456_v17  ;;  %v54_v29 = vld [vmem:[#allocation4 + $0xb8] sm:$0xff]  ;;  %v51_v32 = vld [vmem:[#allocation4 + $0xa0] sm:$0xff] }
  0x1a   :  { %1777 = vmatprep.subr.bf16.mxu1 %v2458_v18  ;;  %v2467_v27 = vpack.c.bf16 %v52_v25, %v48_v24  ;;  %v2469_v31 = vpack.c.bf16 %v54_v29, %v50_v28  ;;  %v49_v33 = vld [vmem:[#allocation4 + $0x90] sm:$0xff]  ;;  %v2472_v35 = vpack.c.bf16 %v51_v32, %v47_v30  ;;  %v56_v36 = vld [vmem:[#allocation4 + $0xc8] sm:$0xff]  ;;  %v58_v38 = vld [vmem:[#allocation4 + $0xd8] sm:$0xff] }
  0x1b   :  { %v53_v34 = vld [vmem:[#allocation4 + $0xb0] sm:$0xff]  ;;  %v60_v37 = vld [vmem:[#allocation4 + $0xe8] sm:$0xff]  ;;  %v62_v41 = vld [vmem:[#allocation4 + $0xf8] sm:$0xff] }
  0x1c   :  { %1747 = vmatpush1.bf16.msra.mxu0 %v2461_v22  ;;  %1779 = vmatpush1.bf16.msra.mxu1 %v2465_v26  ;;  %v2476_v39 = vpack.c.bf16 %v53_v34, %v49_v33  ;;  %v2478_v40 = vpack.c.bf16 %v60_v37, %v56_v36  ;;  %v55_v42 = vld [vmem:[#allocation4 + $0xc0] sm:$0xff]  ;;  %v2481_v44 = vpack.c.bf16 %v62_v41, %v58_v38  ;;  %v57_v45 = vld [vmem:[#allocation4 + $0xd0] sm:$0xff]  ;;  %v64_v47 = vld [vmem:[#allocation4 + $0x108] sm:$0xff] }
  0x1d   :  { %1749 = vmatprep.subr.bf16.mxu0 %v2467_v27  ;;  %v59_v43 = vld [vmem:[#allocation4 + $0xe0] sm:$0xff]  ;;  %1781 = vmatprep.subr.bf16.mxu1 %v2469_v31  ;;  %v61_v46 = vld [vmem:[#allocation4 + $0xf0] sm:$0xff]  ;;  %v68_v48 = vld [vmem:[#allocation4 + $0x128] sm:$0xff] }
  0x1e   :  { %v66_v49 = vld [vmem:[#allocation4 + $0x118] sm:$0xff]  ;;  %v2484_v51 = vpack.c.bf16 %v59_v43, %v55_v42  ;;  %v2488_v52 = vpack.c.bf16 %v61_v46, %v57_v45  ;;  %v2490_v53 = vpack.c.bf16 %v68_v48, %v64_v47  ;;  %v63_v54 = vld [vmem:[#allocation4 + $0x100] sm:$0xff]  ;;  %v65_v56 = vld [vmem:[#allocation4 + $0x110] sm:$0xff] }
  0x1f   :  { %v70_v50 = vld [vmem:[#allocation4 + $0x138] sm:$0xff]  ;;  %v67_v55 = vld [vmem:[#allocation4 + $0x120] sm:$0xff]  ;;  %v69_v58 = vld [vmem:[#allocation4 + $0x130] sm:$0xff] }
  0x20   :  { %1751 = vmatpush1.bf16.msra.mxu0 %v2472_v35  ;;  %1783 = vmatpush1.bf16.msra.mxu1 %v2476_v39  ;;  %v2493_v57 = vpack.c.bf16 %v70_v50, %v66_v49  ;;  %v72_v59 = vld [vmem:[#allocation4 + $0x148] sm:$0xff]  ;;  %v74_v61 = vld [vmem:[#allocation4 + $0x158] sm:$0xff]  ;;  %v2496_v63 = vpack.c.bf16 %v67_v55, %v63_v54  ;;  %v2500_v1 = vpack.c.bf16 %v69_v58, %v65_v56  ;;  %v71_v3 = vld [vmem:[#allocation4 + $0x140] sm:$0xff]  ;;  %v2413_v49 = vmov 1983009808  }
  0x21   :  { %1753 = vmatprep.subr.bf16.mxu0 %v2478_v40  ;;  %1785 = vmatprep.subr.bf16.mxu1 %v2481_v44  ;;  %v76_v60 = vld [vmem:[#allocation4 + $0x168] sm:$0xff]  ;;  %v78_v62 = vld [vmem:[#allocation4 + $0x178] sm:$0xff]  ;;  %v75_v5 = vld [vmem:[#allocation4 + $0x160] sm:$0xff]  ;;  %v247_v50 = vunpack.c.l.s4 %v2413_v49  ;;  %v249_v54 = vlaneseq }
  0x22   :  { %v2502_v2 = vpack.c.bf16 %v76_v60, %v72_v59  ;;  %v73_v6 = vld [vmem:[#allocation4 + $0x150] sm:$0xff]  ;;  %v2505_v7 = vpack.c.bf16 %v78_v62, %v74_v61  ;;  %v80_v11 = vld [vmem:[#allocation4 + $0x188] sm:$0xff]  ;;  %v82_v14 = vld [vmem:[#allocation4 + $0x198] sm:$0xff]  ;;  %v2508_v16 = vpack.c.bf16 %v75_v5, %v71_v3 }
  0x23   :  { %v77_v10 = vld [vmem:[#allocation4 + $0x170] sm:$0xff]  ;;  %v84_v12 = vld [vmem:[#allocation4 + $0x1a8] sm:$0xff]  ;;  %v86_v15 = vld [vmem:[#allocation4 + $0x1b8] sm:$0xff]  ;;  %v248_v55 = vunpack.c.0.s8 %v247_v50  ;;  %v250_v56 = vshrl.u32 %v249_v54, 7 }
  0x24   :  { %1755 = vmatpush1.bf16.msra.mxu0 %v2484_v51  ;;  %1787 = vmatpush1.bf16.msra.mxu1 %v2488_v52  ;;  %v2512_v19 = vpack.c.bf16 %v77_v10, %v73_v6  ;;  %v2514_v20 = vpack.c.bf16 %v84_v12, %v80_v11  ;;  %v79_v21 = vld [vmem:[#allocation4 + $0x180] sm:$0xff]  ;;  %v81_v24 = vld [vmem:[#allocation4 + $0x190] sm:$0xff]  ;;  %v2517_v25 = vpack.c.bf16 %v86_v15, %v82_v14  ;;  %v88_v29 = vld [vmem:[#allocation4 + $0x1c8] sm:$0xff] }
  0x25   :  { %1757 = vmatprep.subr.bf16.mxu0 %v2490_v53  ;;  %1789 = vmatprep.subr.bf16.mxu1 %v2493_v57  ;;  %v83_v23 = vld [vmem:[#allocation4 + $0x1a0] sm:$0xff]  ;;  %v85_v28 = vld [vmem:[#allocation4 + $0x1b0] sm:$0xff]  ;;  %v92_v30 = vld [vmem:[#allocation4 + $0x1e8] sm:$0xff]  ;;  %v2577_v59 = vsub.s32 %v248_v55, %v250_v56 }
  0x26   :  { %v90_v32 = vld [vmem:[#allocation4 + $0x1d8] sm:$0xff]  ;;  %v2520_v34 = vpack.c.bf16 %v83_v23, %v79_v21  ;;  %v2524_v36 = vpack.c.bf16 %v85_v28, %v81_v24  ;;  %v2526_v37 = vpack.c.bf16 %v92_v30, %v88_v29  ;;  %v87_v38 = vld [vmem:[#allocation4 + $0x1c0] sm:$0xff]  ;;  %v89_v43 = vld [vmem:[#allocation4 + $0x1d0] sm:$0xff] }
  0x27   :  { %v94_v33 = vld [vmem:[#allocation4 + $0x1f8] sm:$0xff]  ;;  %v91_v41 = vld [vmem:[#allocation4 + $0x1e0] sm:$0xff]  ;;  %v93_v45 = vld [vmem:[#allocation4 + $0x1f0] sm:$0xff] }
  0x28   :  { %1759 = vmatpush1.bf16.msra.mxu0 %v2496_v63  ;;  %1791 = vmatpush1.bf16.msra.mxu1 %v2500_v1  ;;  %v2529_v42 = vpack.c.bf16 %v94_v33, %v90_v32  ;;  %v2532_v46 = vpack.c.bf16 %v91_v41, %v87_v38  ;;  %v2536_v47 = vpack.c.bf16 %v93_v45, %v89_v43  ;;  %v95_v48 = vld [vmem:[#allocation2] sm:$0x3]  ;;  %v96_v45 = vld [vmem:[#allocation3] sm:$0x3] }
  0x29   :  { %1761 = vmatprep.subr.bf16.mxu0 %v2502_v2  ;;  %1793 = vmatprep.subr.bf16.mxu1 %v2505_v7  ;;  %v97_v11 = vld [vmem:[%s2869_s0] sm:$0xff] }
  0x2c   :  { %1763 = vmatpush1.bf16.msra.mxu0 %v2508_v16  ;;  %1795 = vmatpush1.bf16.msra.mxu1 %v2512_v19 }
  0x2d   :  { %1765 = vmatprep.subr.bf16.mxu0 %v2514_v20  ;;  %1797 = vmatprep.subr.bf16.mxu1 %v2517_v25 }
  0x30   :  { %1767 = vmatpush1.bf16.msra.mxu0 %v2520_v34  ;;  %1799 = vmatpush1.bf16.msra.mxu1 %v2524_v36 }
  0x31   :  { %1769 = vmatprep.subr.bf16.mxu0 %v2526_v37  ;;  %1801 = vmatprep.subr.bf16.mxu1 %v2529_v42 }
  0x34   :  { %1771 = vmatpush1.bf16.msra.mxu0 %v2532_v46  ;;  %1803 = vmatpush1.bf16.msra.mxu1 %v2536_v47 }
  0x35   :  { %1805 = vmatprep.subr.bf16.mxu0 %v2445_v4  ;;  %1837 = vmatprep.subr.bf16.mxu1 %v2447_v8 }
  0x37   :  { %163 = vmatmul.mubr.f32.vlgmr.msra.gmra.mrb[0].mxu0 %v95_v48  ;;  %234 = vmatmul.mubr.f32.vlgmr.msra.gmra.mrb[0].mxu1 %v95_v48 }
  0x38   :  { %1807 = vmatpush1.bf16.msra.mxu0 %v2449_v9  ;;  %1839 = vmatpush1.bf16.msra.mxu1 %v2452_v13 }
  0x39   :  { %1809 = vmatprep.subr.bf16.mxu0 %v2456_v17  ;;  %1841 = vmatprep.subr.bf16.mxu1 %v2458_v18 }
  0x3a   :  { %361 = vmatprep.mubr.f32.mxu0 %v2412_v0  ;;  %432 = vmatprep.mubr.f32.mxu1 %v2412_v0 }
  0x3c   :  { %1811 = vmatpush1.bf16.msra.mxu0 %v2461_v22  ;;  %1843 = vmatpush1.bf16.msra.mxu1 %v2465_v26 }
  0x3d   :  { %1813 = vmatprep.subr.bf16.mxu0 %v2467_v27  ;;  %1845 = vmatprep.subr.bf16.mxu1 %v2469_v31 }
  0x40   :  { %1815 = vmatpush1.bf16.msra.mxu0 %v2472_v35  ;;  %1847 = vmatpush1.bf16.msra.mxu1 %v2476_v39 }
  0x41   :  { %1817 = vmatprep.subr.bf16.mxu0 %v2478_v40  ;;  %1849 = vmatprep.subr.bf16.mxu1 %v2481_v44 }
  0x44   :  { %1819 = vmatpush1.bf16.msra.mxu0 %v2484_v51  ;;  %1851 = vmatpush1.bf16.msra.mxu1 %v2488_v52 }
  0x45   :  { %1821 = vmatprep.subr.bf16.mxu0 %v2490_v53  ;;  %1853 = vmatprep.subr.bf16.mxu1 %v2493_v57 }
  0x48   :  { %1823 = vmatpush1.bf16.msra.mxu0 %v2496_v63  ;;  %1855 = vmatpush1.bf16.msra.mxu1 %v2500_v1 }
  0x49   :  { %1825 = vmatprep.subr.bf16.mxu0 %v2502_v2  ;;  %1857 = vmatprep.subr.bf16.mxu1 %v2505_v7 }
  0x4c   :  { %1827 = vmatpush1.bf16.msra.mxu0 %v2508_v16  ;;  %1859 = vmatpush1.bf16.msra.mxu1 %v2512_v19 }
  0x4d   :  { %1829 = vmatprep.subr.bf16.mxu0 %v2514_v20  ;;  %1861 = vmatprep.subr.bf16.mxu1 %v2517_v25 }
  0x50   :  { %1831 = vmatpush1.bf16.msra.mxu0 %v2520_v34  ;;  %1863 = vmatpush1.bf16.msra.mxu1 %v2524_v36 }
  0x51   :  { %1833 = vmatprep.subr.bf16.mxu0 %v2526_v37  ;;  %1865 = vmatprep.subr.bf16.mxu1 %v2529_v42 }
  0x54   :  { %1835 = vmatpush1.bf16.msra.mxu0 %v2532_v46  ;;  %1867 = vmatpush1.bf16.msra.mxu1 %v2536_v47 }
  0x55   :  { %1869 = vmatprep.subr.bf16.mxu0 %v2445_v4  ;;  %1901 = vmatprep.subr.bf16.mxu1 %v2447_v8 }
 0x10a   :  { %v164_v58 = vpop.f32.mrb[0].mxu0  ;;  %v235_v60 = vpop.f32.mrb[0].mxu1 }
 0x10b   :  { %v166_v61 = vpop.f32.mrb[1].mxu0  ;;  %v237_v3 = vpop.f32.mrb[1].mxu1 }
 0x10c   :  { %v244_v62 = vcombine.low %v164_v58, %v166_v61  ;;  %v245_v5 = vcombine.low %v235_v60, %v237_v3 }
 0x10e   :  { %v252_v6 = vrot.slane %v244_v62, %v2577_v59  ;;  %v259_v10 = vrot.slane %v245_v5, %v2577_v59 }
 0x110   :  { %v260_v12 = vcombine.low %v252_v6, %v259_v10 }
 0x112   :  { %v262_v14 = vadd.f32 %v260_v12, %v97_v11 }
 0x114   :  { %v1702_v15 = vmul.f32 -1.442695, %v262_v14  ;;  %v270_v21 = vrot.slane %v262_v14, 2  ;;  %v281_v24 = vrot.slane %v262_v14, 6  ;;  %v278_v30 = vrot.slane %v262_v14, 4 }
 0x116   :  { %2257 = vpow2.f32 %v1702_v15  ;;  %v1703_v23 = vmul.f32 -1.442695, %v270_v21  ;;  %v1704_v28 = vmul.f32 -1.442695, %v281_v24  ;;  %v1705_v15 = vld [vmem:[%s2869_s0 + $0x8] sm:$0xff] }
 0x118   :  { %2259 = vpow2.f32 %v1703_v23 }
 0x119   :  { %2261 = vpow2.f32 %v1704_v28 }
 0x120   :  { %v2258_v29 = vpop.eup %2257 }
 0x121   :  { %v266_v32 = vadd.f32 1.0, %v2258_v29 }
 0x122   :  { %v2260_v33 = vpop.eup %2259 }
 0x123   :  { %2263 = vrcp.f32 %v266_v32  ;;  %v275_v38 = vadd.f32 1.0, %v2260_v33  ;;  %v2262_v41 = vpop.eup %2261 }
 0x124   :  { %2265 = vtanh.f32 %v278_v30  ;;  %v286_v50 = vadd.f32 1.0, %v2262_v41 }
 0x125   :  { %2267 = vrcp.f32 %v275_v38 }
 0x126   :  { %2269 = vrcp.f32 %v286_v50 }
 0x12d   :  { %v2264_v43 = vpop.eup %2263 }
 0x12e   :  { %v2266_v48 = vpop.eup %2265 }
 0x12f   :  { %v2268_v49 = vpop.eup %2267  ;;  %v290_v55 = vmul.f32 %v2266_v48, %v2264_v43 }
 0x130   :  { %v289_v54 = vmul.f32 %v2268_v49, %v96_v45  ;;  %v2270_v58 = vpop.eup %2269 }
 0x132   :  { %v2584_v56 = vadd.f32 %v290_v55, %v289_v54 }
 0x134   :  { %2271 = vtanh.f32 %v2584_v56 }
 0x13e   :  { %v2272_v60 = vpop.eup %2271 }
 0x13f   :  { %v293_v61 = vmul.f32 %v2272_v60, %v2270_v58 }
 0x141   :  { %294 = vst [vmem:[%s2871_s2] sm:$0x3] %v293_v61  ;;  %362 = vmatmul.mubr.f32.vlgmr.msra.gmra.mrb[2].mxu0 %v293_v61  ;;  %433 = vmatmul.mubr.f32.vlgmr.msra.gmra.mrb[2].mxu1 %v293_v61 }
 0x142   :  { %1871 = vmatpush1.bf16.msra.mxu0 %v2449_v9  ;;  %1903 = vmatpush1.bf16.msra.mxu1 %v2452_v13 }
 0x143   :  { %1873 = vmatprep.subr.bf16.mxu0 %v2456_v17  ;;  %1905 = vmatprep.subr.bf16.mxu1 %v2458_v18 }
 0x144   :  { %561 = vmatprep.mubr.f32.mxu0 %v2412_v0  ;;  %632 = vmatprep.mubr.f32.mxu1 %v2412_v0 }
 0x146   :  { %1875 = vmatpush1.bf16.msra.mxu0 %v2461_v22  ;;  %1907 = vmatpush1.bf16.msra.mxu1 %v2465_v26 }
 0x147   :  { %1877 = vmatprep.subr.bf16.mxu0 %v2467_v27  ;;  %1909 = vmatprep.subr.bf16.mxu1 %v2469_v31 }
 0x14a   :  { %1879 = vmatpush1.bf16.msra.mxu0 %v2472_v35  ;;  %1911 = vmatpush1.bf16.msra.mxu1 %v2476_v39 }
 0x14b   :  { %1881 = vmatprep.subr.bf16.mxu0 %v2478_v40  ;;  %1913 = vmatprep.subr.bf16.mxu1 %v2481_v44 }
 0x14e   :  { %1883 = vmatpush1.bf16.msra.mxu0 %v2484_v51  ;;  %1915 = vmatpush1.bf16.msra.mxu1 %v2488_v52 }
 0x14f   :  { %1885 = vmatprep.subr.bf16.mxu0 %v2490_v53  ;;  %1917 = vmatprep.subr.bf16.mxu1 %v2493_v57 }
 0x152   :  { %1887 = vmatpush1.bf16.msra.mxu0 %v2496_v63  ;;  %1919 = vmatpush1.bf16.msra.mxu1 %v2500_v1 }
 0x153   :  { %1889 = vmatprep.subr.bf16.mxu0 %v2502_v2  ;;  %1921 = vmatprep.subr.bf16.mxu1 %v2505_v7 }
 0x156   :  { %1891 = vmatpush1.bf16.msra.mxu0 %v2508_v16  ;;  %1923 = vmatpush1.bf16.msra.mxu1 %v2512_v19 }
 0x157   :  { %1893 = vmatprep.subr.bf16.mxu0 %v2514_v20  ;;  %1925 = vmatprep.subr.bf16.mxu1 %v2517_v25 }
 0x15a   :  { %1895 = vmatpush1.bf16.msra.mxu0 %v2520_v34  ;;  %1927 = vmatpush1.bf16.msra.mxu1 %v2524_v36 }
 0x15b   :  { %1897 = vmatprep.subr.bf16.mxu0 %v2526_v37  ;;  %1929 = vmatprep.subr.bf16.mxu1 %v2529_v42 }
 0x15e   :  { %1899 = vmatpush1.bf16.msra.mxu0 %v2532_v46  ;;  %1931 = vmatpush1.bf16.msra.mxu1 %v2536_v47 }
 0x15f   :  { %1933 = vmatprep.subr.bf16.mxu0 %v2445_v4  ;;  %1965 = vmatprep.subr.bf16.mxu1 %v2447_v8 }
 0x214   :  { %v363_v62 = vpop.f32.mrb[2].mxu0  ;;  %v434_v3 = vpop.f32.mrb[2].mxu1 }
 0x215   :  { %v365_v5 = vpop.f32.mrb[3].mxu0  ;;  %v436_v6 = vpop.f32.mrb[3].mxu1 }
 0x216   :  { %v443_v10 = vcombine.low %v363_v62, %v365_v5  ;;  %v444_v11 = vcombine.low %v434_v3, %v436_v6 }
 0x218   :  { %v451_v12 = vrot.slane %v443_v10, %v2577_v59  ;;  %v458_v14 = vrot.slane %v444_v11, %v2577_v59 }
 0x21a   :  { %v459_v21 = vcombine.low %v451_v12, %v458_v14 }
 0x21c   :  { %v461_v23 = vadd.f32 %v1705_v15, %v459_v21 }
 0x21e   :  { %v1706_v24 = vmul.f32 -1.442695, %v461_v23  ;;  %v469_v28 = vrot.slane %v461_v23, 2  ;;  %v480_v30 = vrot.slane %v461_v23, 6  ;;  %v477_v38 = vrot.slane %v461_v23, 4  ;;  %v1710_v23 = vld [vmem:[%s2869_s0 + $0x10] sm:$0xff] }
 0x220   :  { %2273 = vpow2.f32 %v1706_v24  ;;  %v1707_v29 = vmul.f32 -1.442695, %v469_v28  ;;  %v1708_v32 = vmul.f32 -1.442695, %v480_v30 }
 0x222   :  { %2275 = vpow2.f32 %v1707_v29 }
 0x223   :  { %2277 = vpow2.f32 %v1708_v32 }
 0x22a   :  { %v2274_v33 = vpop.eup %2273 }
 0x22b   :  { %v465_v41 = vadd.f32 1.0, %v2274_v33 }
 0x22c   :  { %v2276_v43 = vpop.eup %2275 }
 0x22d   :  { %2279 = vrcp.f32 %v465_v41  ;;  %v474_v45 = vadd.f32 1.0, %v2276_v43  ;;  %v2278_v48 = vpop.eup %2277 }
 0x22e   :  { %2281 = vtanh.f32 %v477_v38  ;;  %v485_v55 = vadd.f32 1.0, %v2278_v48 }
 0x22f   :  { %2283 = vrcp.f32 %v474_v45 }
 0x230   :  { %2285 = vrcp.f32 %v485_v55 }
 0x237   :  { %v2280_v49 = vpop.eup %2279 }
 0x238   :  { %v2282_v50 = vpop.eup %2281 }
 0x239   :  { %v2284_v54 = vpop.eup %2283  ;;  %v489_v60 = vmul.f32 %v2282_v50, %v2280_v49 }
 0x23a   :  { %v488_v58 = vmul.f32 %v2284_v54, %v2584_v56  ;;  %v2286_v62 = vpop.eup %2285 }
 0x23c   :  { %v2630_v61 = vadd.f32 %v489_v60, %v488_v58 }
 0x23e   :  { %2287 = vtanh.f32 %v2630_v61 }
 0x248   :  { %v2288_v3 = vpop.eup %2287 }
 0x249   :  { %v492_v5 = vmul.f32 %v2288_v3, %v2286_v62 }
 0x24b   :  { %1709 = vst [vmem:[%s2871_s2 + $0x2] sm:$0x3] %v492_v5  ;;  %562 = vmatmul.mubr.f32.vlgmr.msra.gmra.mrb[4].mxu0 %v492_v5  ;;  %633 = vmatmul.mubr.f32.vlgmr.msra.gmra.mrb[4].mxu1 %v492_v5 }
 0x24c   :  { %1935 = vmatpush1.bf16.msra.mxu0 %v2449_v9  ;;  %1967 = vmatpush1.bf16.msra.mxu1 %v2452_v13 }
 0x24d   :  { %1937 = vmatprep.subr.bf16.mxu0 %v2456_v17  ;;  %1969 = vmatprep.subr.bf16.mxu1 %v2458_v18 }
 0x24e   :  { %761 = vmatprep.mubr.f32.mxu0 %v2412_v0  ;;  %832 = vmatprep.mubr.f32.mxu1 %v2412_v0 }
 0x250   :  { %1939 = vmatpush1.bf16.msra.mxu0 %v2461_v22  ;;  %1971 = vmatpush1.bf16.msra.mxu1 %v2465_v26 }
 0x251   :  { %1941 = vmatprep.subr.bf16.mxu0 %v2467_v27  ;;  %1973 = vmatprep.subr.bf16.mxu1 %v2469_v31 }
 0x254   :  { %1943 = vmatpush1.bf16.msra.mxu0 %v2472_v35  ;;  %1975 = vmatpush1.bf16.msra.mxu1 %v2476_v39 }
 0x255   :  { %1945 = vmatprep.subr.bf16.mxu0 %v2478_v40  ;;  %1977 = vmatprep.subr.bf16.mxu1 %v2481_v44 }
 0x258   :  { %1947 = vmatpush1.bf16.msra.mxu0 %v2484_v51  ;;  %1979 = vmatpush1.bf16.msra.mxu1 %v2488_v52 }
 0x259   :  { %1949 = vmatprep.subr.bf16.mxu0 %v2490_v53  ;;  %1981 = vmatprep.subr.bf16.mxu1 %v2493_v57 }
 0x25c   :  { %1951 = vmatpush1.bf16.msra.mxu0 %v2496_v63  ;;  %1983 = vmatpush1.bf16.msra.mxu1 %v2500_v1 }
 0x25d   :  { %1953 = vmatprep.subr.bf16.mxu0 %v2502_v2  ;;  %1985 = vmatprep.subr.bf16.mxu1 %v2505_v7 }
 0x260   :  { %1955 = vmatpush1.bf16.msra.mxu0 %v2508_v16  ;;  %1987 = vmatpush1.bf16.msra.mxu1 %v2512_v19 }
 0x261   :  { %1957 = vmatprep.subr.bf16.mxu0 %v2514_v20  ;;  %1989 = vmatprep.subr.bf16.mxu1 %v2517_v25 }
 0x264   :  { %1959 = vmatpush1.bf16.msra.mxu0 %v2520_v34  ;;  %1991 = vmatpush1.bf16.msra.mxu1 %v2524_v36 }
 0x265   :  { %1961 = vmatprep.subr.bf16.mxu0 %v2526_v37  ;;  %1993 = vmatprep.subr.bf16.mxu1 %v2529_v42 }
 0x268   :  { %1963 = vmatpush1.bf16.msra.mxu0 %v2532_v46  ;;  %1995 = vmatpush1.bf16.msra.mxu1 %v2536_v47 }
 0x269   :  { %1997 = vmatprep.subr.bf16.mxu0 %v2445_v4  ;;  %2029 = vmatprep.subr.bf16.mxu1 %v2447_v8 }
 0x31e   :  { %v563_v56 = vpop.f32.mrb[4].mxu0  ;;  %v634_v6 = vpop.f32.mrb[4].mxu1 }
 0x31f   :  { %v565_v10 = vpop.f32.mrb[5].mxu0  ;;  %v636_v11 = vpop.f32.mrb[5].mxu1 }
 0x320   :  { %v643_v12 = vcombine.low %v563_v56, %v565_v10  ;;  %v644_v14 = vcombine.low %v634_v6, %v636_v11 }
 0x322   :  { %v651_v15 = vrot.slane %v643_v12, %v2577_v59  ;;  %v658_v21 = vrot.slane %v644_v14, %v2577_v59 }
 0x324   :  { %v659_v24 = vcombine.low %v651_v15, %v658_v21 }
 0x326   :  { %v661_v28 = vadd.f32 %v1710_v23, %v659_v24 }
 0x328   :  { %v1711_v29 = vmul.f32 -1.442695, %v661_v28  ;;  %v669_v30 = vrot.slane %v661_v28, 2  ;;  %v680_v33 = vrot.slane %v661_v28, 6  ;;  %v677_v43 = vrot.slane %v661_v28, 4  ;;  %v1715_v28 = vld [vmem:[%s2869_s0 + $0x18] sm:$0xff] }
 0x32a   :  { %2289 = vpow2.f32 %v1711_v29  ;;  %v1712_v32 = vmul.f32 -1.442695, %v669_v30  ;;  %v1713_v38 = vmul.f32 -1.442695, %v680_v33 }
 0x32c   :  { %2291 = vpow2.f32 %v1712_v32 }
 0x32d   :  { %2293 = vpow2.f32 %v1713_v38 }
 0x334   :  { %v2290_v41 = vpop.eup %2289 }
 0x335   :  { %v665_v45 = vadd.f32 1.0, %v2290_v41 }
 0x336   :  { %v2292_v48 = vpop.eup %2291 }
 0x337   :  { %2295 = vrcp.f32 %v665_v45  ;;  %v674_v49 = vadd.f32 1.0, %v2292_v48  ;;  %v2294_v50 = vpop.eup %2293 }
 0x338   :  { %2297 = vtanh.f32 %v677_v43  ;;  %v685_v60 = vadd.f32 1.0, %v2294_v50 }
 0x339   :  { %2299 = vrcp.f32 %v674_v49 }
 0x33a   :  { %2301 = vrcp.f32 %v685_v60 }
 0x341   :  { %v2296_v54 = vpop.eup %2295 }
 0x342   :  { %v2298_v55 = vpop.eup %2297 }
 0x343   :  { %v2300_v58 = vpop.eup %2299  ;;  %v689_v3 = vmul.f32 %v2298_v55, %v2296_v54 }
 0x344   :  { %v688_v62 = vmul.f32 %v2300_v58, %v2630_v61  ;;  %v2302_v56 = vpop.eup %2301 }
 0x346   :  { %v2676_v5 = vadd.f32 %v689_v3, %v688_v62 }
 0x348   :  { %2303 = vtanh.f32 %v2676_v5 }
 0x352   :  { %v2304_v6 = vpop.eup %2303 }
 0x353   :  { %v692_v10 = vmul.f32 %v2304_v6, %v2302_v56 }
 0x355   :  { %1714 = vst [vmem:[%s2871_s2 + $0x4] sm:$0x3] %v692_v10  ;;  %762 = vmatmul.mubr.f32.vlgmr.msra.gmra.mrb[6].mxu0 %v692_v10  ;;  %833 = vmatmul.mubr.f32.vlgmr.msra.gmra.mrb[6].mxu1 %v692_v10 }
 0x356   :  { %1999 = vmatpush1.bf16.msra.mxu0 %v2449_v9  ;;  %2031 = vmatpush1.bf16.msra.mxu1 %v2452_v13 }
 0x357   :  { %2001 = vmatprep.subr.bf16.mxu0 %v2456_v17  ;;  %2033 = vmatprep.subr.bf16.mxu1 %v2458_v18 }
 0x358   :  { %961 = vmatprep.mubr.f32.mxu0 %v2412_v0  ;;  %1032 = vmatprep.mubr.f32.mxu1 %v2412_v0 }
 0x35a   :  { %2003 = vmatpush1.bf16.msra.mxu0 %v2461_v22  ;;  %2035 = vmatpush1.bf16.msra.mxu1 %v2465_v26 }
 0x35b   :  { %2005 = vmatprep.subr.bf16.mxu0 %v2467_v27  ;;  %2037 = vmatprep.subr.bf16.mxu1 %v2469_v31 }
 0x35e   :  { %2007 = vmatpush1.bf16.msra.mxu0 %v2472_v35  ;;  %2039 = vmatpush1.bf16.msra.mxu1 %v2476_v39 }
 0x35f   :  { %2009 = vmatprep.subr.bf16.mxu0 %v2478_v40  ;;  %2041 = vmatprep.subr.bf16.mxu1 %v2481_v44 }
 0x362   :  { %2011 = vmatpush1.bf16.msra.mxu0 %v2484_v51  ;;  %2043 = vmatpush1.bf16.msra.mxu1 %v2488_v52 }
 0x363   :  { %2013 = vmatprep.subr.bf16.mxu0 %v2490_v53  ;;  %2045 = vmatprep.subr.bf16.mxu1 %v2493_v57 }
 0x366   :  { %2015 = vmatpush1.bf16.msra.mxu0 %v2496_v63  ;;  %2047 = vmatpush1.bf16.msra.mxu1 %v2500_v1 }
 0x367   :  { %2017 = vmatprep.subr.bf16.mxu0 %v2502_v2  ;;  %2049 = vmatprep.subr.bf16.mxu1 %v2505_v7 }
 0x36a   :  { %2019 = vmatpush1.bf16.msra.mxu0 %v2508_v16  ;;  %2051 = vmatpush1.bf16.msra.mxu1 %v2512_v19 }
 0x36b   :  { %2021 = vmatprep.subr.bf16.mxu0 %v2514_v20  ;;  %2053 = vmatprep.subr.bf16.mxu1 %v2517_v25 }
 0x36e   :  { %2023 = vmatpush1.bf16.msra.mxu0 %v2520_v34  ;;  %2055 = vmatpush1.bf16.msra.mxu1 %v2524_v36 }
 0x36f   :  { %2025 = vmatprep.subr.bf16.mxu0 %v2526_v37  ;;  %2057 = vmatprep.subr.bf16.mxu1 %v2529_v42 }
 0x372   :  { %2027 = vmatpush1.bf16.msra.mxu0 %v2532_v46  ;;  %2059 = vmatpush1.bf16.msra.mxu1 %v2536_v47 }
 0x373   :  { %2061 = vmatprep.subr.bf16.mxu0 %v2445_v4  ;;  %2093 = vmatprep.subr.bf16.mxu1 %v2447_v8 }
 0x428   :  { %v763_v61 = vpop.f32.mrb[6].mxu0  ;;  %v834_v11 = vpop.f32.mrb[6].mxu1 }
 0x429   :  { %v765_v12 = vpop.f32.mrb[7].mxu0  ;;  %v836_v14 = vpop.f32.mrb[7].mxu1 }
 0x42a   :  { %v843_v15 = vcombine.low %v763_v61, %v765_v12  ;;  %v844_v21 = vcombine.low %v834_v11, %v836_v14 }
 0x42c   :  { %v851_v23 = vrot.slane %v843_v15, %v2577_v59  ;;  %v858_v24 = vrot.slane %v844_v21, %v2577_v59 }
 0x42e   :  { %v859_v29 = vcombine.low %v851_v23, %v858_v24 }
 0x430   :  { %v861_v30 = vadd.f32 %v1715_v28, %v859_v29 }
 0x432   :  { %v1716_v32 = vmul.f32 -1.442695, %v861_v30  ;;  %v869_v33 = vrot.slane %v861_v30, 2  ;;  %v880_v41 = vrot.slane %v861_v30, 6  ;;  %v877_v48 = vrot.slane %v861_v30, 4  ;;  %v1720_v30 = vld [vmem:[%s2869_s0 + $0x20] sm:$0xff] }
 0x434   :  { %2305 = vpow2.f32 %v1716_v32  ;;  %v1717_v38 = vmul.f32 -1.442695, %v869_v33  ;;  %v1718_v43 = vmul.f32 -1.442695, %v880_v41 }
 0x436   :  { %2307 = vpow2.f32 %v1717_v38 }
 0x437   :  { %2309 = vpow2.f32 %v1718_v43 }
 0x43e   :  { %v2306_v45 = vpop.eup %2305 }
 0x43f   :  { %v865_v49 = vadd.f32 1.0, %v2306_v45 }
 0x440   :  { %v2308_v50 = vpop.eup %2307 }
 0x441   :  { %2311 = vrcp.f32 %v865_v49  ;;  %v874_v54 = vadd.f32 1.0, %v2308_v50  ;;  %v2310_v55 = vpop.eup %2309 }
 0x442   :  { %2313 = vtanh.f32 %v877_v48  ;;  %v885_v3 = vadd.f32 1.0, %v2310_v55 }
 0x443   :  { %2315 = vrcp.f32 %v874_v54 }
 0x444   :  { %2317 = vrcp.f32 %v885_v3 }
 0x44b   :  { %v2312_v58 = vpop.eup %2311 }
 0x44c   :  { %v2314_v60 = vpop.eup %2313 }
 0x44d   :  { %v2316_v62 = vpop.eup %2315  ;;  %v889_v6 = vmul.f32 %v2314_v60, %v2312_v58 }
 0x44e   :  { %v888_v56 = vmul.f32 %v2316_v62, %v2676_v5  ;;  %v2318_v61 = vpop.eup %2317 }
 0x450   :  { %v2722_v10 = vadd.f32 %v889_v6, %v888_v56 }
 0x452   :  { %2319 = vtanh.f32 %v2722_v10 }
 0x45c   :  { %v2320_v11 = vpop.eup %2319 }
 0x45d   :  { %v892_v12 = vmul.f32 %v2320_v11, %v2318_v61 }
 0x45f   :  { %1719 = vst [vmem:[%s2871_s2 + $0x6] sm:$0x3] %v892_v12  ;;  %962 = vmatmul.mubr.f32.vlgmr.msra.gmra.mrb[8].mxu0 %v892_v12  ;;  %1033 = vmatmul.mubr.f32.vlgmr.msra.gmra.mrb[8].mxu1 %v892_v12 }
 0x460   :  { %2063 = vmatpush1.bf16.msra.mxu0 %v2449_v9  ;;  %2095 = vmatpush1.bf16.msra.mxu1 %v2452_v13 }
 0x461   :  { %2065 = vmatprep.subr.bf16.mxu0 %v2456_v17  ;;  %2097 = vmatprep.subr.bf16.mxu1 %v2458_v18 }
 0x462   :  { %1161 = vmatprep.mubr.f32.mxu0 %v2412_v0  ;;  %1232 = vmatprep.mubr.f32.mxu1 %v2412_v0 }
 0x464   :  { %2067 = vmatpush1.bf16.msra.mxu0 %v2461_v22  ;;  %2099 = vmatpush1.bf16.msra.mxu1 %v2465_v26 }
 0x465   :  { %2069 = vmatprep.subr.bf16.mxu0 %v2467_v27  ;;  %2101 = vmatprep.subr.bf16.mxu1 %v2469_v31 }
 0x468   :  { %2071 = vmatpush1.bf16.msra.mxu0 %v2472_v35  ;;  %2103 = vmatpush1.bf16.msra.mxu1 %v2476_v39 }
 0x469   :  { %2073 = vmatprep.subr.bf16.mxu0 %v2478_v40  ;;  %2105 = vmatprep.subr.bf16.mxu1 %v2481_v44 }
 0x46c   :  { %2075 = vmatpush1.bf16.msra.mxu0 %v2484_v51  ;;  %2107 = vmatpush1.bf16.msra.mxu1 %v2488_v52 }
 0x46d   :  { %2077 = vmatprep.subr.bf16.mxu0 %v2490_v53  ;;  %2109 = vmatprep.subr.bf16.mxu1 %v2493_v57 }
 0x470   :  { %2079 = vmatpush1.bf16.msra.mxu0 %v2496_v63  ;;  %2111 = vmatpush1.bf16.msra.mxu1 %v2500_v1 }
 0x471   :  { %2081 = vmatprep.subr.bf16.mxu0 %v2502_v2  ;;  %2113 = vmatprep.subr.bf16.mxu1 %v2505_v7 }
 0x474   :  { %2083 = vmatpush1.bf16.msra.mxu0 %v2508_v16  ;;  %2115 = vmatpush1.bf16.msra.mxu1 %v2512_v19 }
 0x475   :  { %2085 = vmatprep.subr.bf16.mxu0 %v2514_v20  ;;  %2117 = vmatprep.subr.bf16.mxu1 %v2517_v25 }
 0x478   :  { %2087 = vmatpush1.bf16.msra.mxu0 %v2520_v34  ;;  %2119 = vmatpush1.bf16.msra.mxu1 %v2524_v36 }
 0x479   :  { %2089 = vmatprep.subr.bf16.mxu0 %v2526_v37  ;;  %2121 = vmatprep.subr.bf16.mxu1 %v2529_v42 }
 0x47c   :  { %2091 = vmatpush1.bf16.msra.mxu0 %v2532_v46  ;;  %2123 = vmatpush1.bf16.msra.mxu1 %v2536_v47 }
 0x47d   :  { %2125 = vmatprep.subr.bf16.mxu0 %v2445_v4  ;;  %2157 = vmatprep.subr.bf16.mxu1 %v2447_v8 }
 0x532   :  { %v963_v5 = vpop.f32.mrb[8].mxu0  ;;  %v1034_v14 = vpop.f32.mrb[8].mxu1 }
 0x533   :  { %v965_v15 = vpop.f32.mrb[9].mxu0  ;;  %v1036_v21 = vpop.f32.mrb[9].mxu1 }
 0x534   :  { %v1043_v23 = vcombine.low %v963_v5, %v965_v15  ;;  %v1044_v24 = vcombine.low %v1034_v14, %v1036_v21 }
 0x536   :  { %v1051_v28 = vrot.slane %v1043_v23, %v2577_v59  ;;  %v1058_v29 = vrot.slane %v1044_v24, %v2577_v59 }
 0x538   :  { %v1059_v32 = vcombine.low %v1051_v28, %v1058_v29 }
 0x53a   :  { %v1061_v33 = vadd.f32 %v1720_v30, %v1059_v32 }
 0x53c   :  { %v1721_v38 = vmul.f32 -1.442695, %v1061_v33  ;;  %v1069_v41 = vrot.slane %v1061_v33, 2  ;;  %v1080_v45 = vrot.slane %v1061_v33, 6  ;;  %v1077_v50 = vrot.slane %v1061_v33, 4  ;;  %v1725_v33 = vld [vmem:[%s2869_s0 + $0x28] sm:$0xff] }
 0x53e   :  { %2321 = vpow2.f32 %v1721_v38  ;;  %v1722_v43 = vmul.f32 -1.442695, %v1069_v41  ;;  %v1723_v48 = vmul.f32 -1.442695, %v1080_v45 }
 0x540   :  { %2323 = vpow2.f32 %v1722_v43 }
 0x541   :  { %2325 = vpow2.f32 %v1723_v48 }
 0x548   :  { %v2322_v49 = vpop.eup %2321 }
 0x549   :  { %v1065_v54 = vadd.f32 1.0, %v2322_v49 }
 0x54a   :  { %v2324_v55 = vpop.eup %2323 }
 0x54b   :  { %2327 = vrcp.f32 %v1065_v54  ;;  %v1074_v58 = vadd.f32 1.0, %v2324_v55  ;;  %v2326_v60 = vpop.eup %2325 }
 0x54c   :  { %2329 = vtanh.f32 %v1077_v50  ;;  %v1085_v6 = vadd.f32 1.0, %v2326_v60 }
 0x54d   :  { %2331 = vrcp.f32 %v1074_v58 }
 0x54e   :  { %2333 = vrcp.f32 %v1085_v6 }
 0x555   :  { %v2328_v62 = vpop.eup %2327 }
 0x556   :  { %v2330_v3 = vpop.eup %2329 }
 0x557   :  { %v2332_v56 = vpop.eup %2331  ;;  %v1089_v11 = vmul.f32 %v2330_v3, %v2328_v62 }
 0x558   :  { %v1088_v61 = vmul.f32 %v2332_v56, %v2722_v10  ;;  %v2334_v5 = vpop.eup %2333 }
 0x55a   :  { %v2768_v12 = vadd.f32 %v1089_v11, %v1088_v61 }
 0x55c   :  { %2335 = vtanh.f32 %v2768_v12 }
 0x566   :  { %v2336_v14 = vpop.eup %2335 }
 0x567   :  { %v1092_v15 = vmul.f32 %v2336_v14, %v2334_v5 }
 0x569   :  { %1724 = vst [vmem:[%s2871_s2 + $0x8] sm:$0x3] %v1092_v15  ;;  %1162 = vmatmul.mubr.f32.vlgmr.msra.gmra.mrb[10].mxu0 %v1092_v15  ;;  %1233 = vmatmul.mubr.f32.vlgmr.msra.gmra.mrb[10].mxu1 %v1092_v15 }
 0x56a   :  { %2127 = vmatpush1.bf16.msra.mxu0 %v2449_v9  ;;  %2159 = vmatpush1.bf16.msra.mxu1 %v2452_v13 }
 0x56b   :  { %2129 = vmatprep.subr.bf16.mxu0 %v2456_v17  ;;  %2161 = vmatprep.subr.bf16.mxu1 %v2458_v18 }
 0x56c   :  { %1361 = vmatprep.mubr.f32.mxu0 %v2412_v0  ;;  %1432 = vmatprep.mubr.f32.mxu1 %v2412_v0 }
 0x56e   :  { %2131 = vmatpush1.bf16.msra.mxu0 %v2461_v22  ;;  %2163 = vmatpush1.bf16.msra.mxu1 %v2465_v26 }
 0x56f   :  { %2133 = vmatprep.subr.bf16.mxu0 %v2467_v27  ;;  %2165 = vmatprep.subr.bf16.mxu1 %v2469_v31 }
 0x572   :  { %2135 = vmatpush1.bf16.msra.mxu0 %v2472_v35  ;;  %2167 = vmatpush1.bf16.msra.mxu1 %v2476_v39 }
 0x573   :  { %2137 = vmatprep.subr.bf16.mxu0 %v2478_v40  ;;  %2169 = vmatprep.subr.bf16.mxu1 %v2481_v44 }
 0x576   :  { %2139 = vmatpush1.bf16.msra.mxu0 %v2484_v51  ;;  %2171 = vmatpush1.bf16.msra.mxu1 %v2488_v52 }
 0x577   :  { %2141 = vmatprep.subr.bf16.mxu0 %v2490_v53  ;;  %2173 = vmatprep.subr.bf16.mxu1 %v2493_v57 }
 0x57a   :  { %2143 = vmatpush1.bf16.msra.mxu0 %v2496_v63  ;;  %2175 = vmatpush1.bf16.msra.mxu1 %v2500_v1 }
 0x57b   :  { %2145 = vmatprep.subr.bf16.mxu0 %v2502_v2  ;;  %2177 = vmatprep.subr.bf16.mxu1 %v2505_v7 }
 0x57e   :  { %2147 = vmatpush1.bf16.msra.mxu0 %v2508_v16  ;;  %2179 = vmatpush1.bf16.msra.mxu1 %v2512_v19 }
 0x57f   :  { %2149 = vmatprep.subr.bf16.mxu0 %v2514_v20  ;;  %2181 = vmatprep.subr.bf16.mxu1 %v2517_v25 }
 0x582   :  { %2151 = vmatpush1.bf16.msra.mxu0 %v2520_v34  ;;  %2183 = vmatpush1.bf16.msra.mxu1 %v2524_v36 }
 0x583   :  { %2153 = vmatprep.subr.bf16.mxu0 %v2526_v37  ;;  %2185 = vmatprep.subr.bf16.mxu1 %v2529_v42 }
 0x586   :  { %2155 = vmatpush1.bf16.msra.mxu0 %v2532_v46  ;;  %2187 = vmatpush1.bf16.msra.mxu1 %v2536_v47 }
 0x587   :  { %2189 = vmatprep.subr.bf16.mxu0 %v2445_v4  ;;  %2221 = vmatprep.subr.bf16.mxu1 %v2447_v8 }
 0x63c   :  { %v1163_v10 = vpop.f32.mrb[10].mxu0  ;;  %v1234_v21 = vpop.f32.mrb[10].mxu1 }
 0x63d   :  { %v1165_v23 = vpop.f32.mrb[11].mxu0  ;;  %v1236_v24 = vpop.f32.mrb[11].mxu1 }
 0x63e   :  { %v1243_v28 = vcombine.low %v1163_v10, %v1165_v23  ;;  %v1244_v29 = vcombine.low %v1234_v21, %v1236_v24 }
 0x640   :  { %v1251_v30 = vrot.slane %v1243_v28, %v2577_v59  ;;  %v1258_v32 = vrot.slane %v1244_v29, %v2577_v59 }
 0x642   :  { %v1259_v38 = vcombine.low %v1251_v30, %v1258_v32 }
 0x644   :  { %v1261_v41 = vadd.f32 %v1725_v33, %v1259_v38  ;;  %v1735_v38 = vld [vmem:[%s2869_s0 + $0x38] sm:$0xff] }
 0x646   :  { %v1726_v43 = vmul.f32 -1.442695, %v1261_v41  ;;  %v1269_v4 = vrot.slane %v1261_v41, 2  ;;  %v1280_v45 = vrot.slane %v1261_v41, 6  ;;  %v1277_v50 = vrot.slane %v1261_v41, 4 }
 0x648   :  { %2337 = vpow2.f32 %v1726_v43  ;;  %v1727_v8 = vmul.f32 -1.442695, %v1269_v4  ;;  %v1728_v48 = vmul.f32 -1.442695, %v1280_v45 }
 0x64a   :  { %2339 = vpow2.f32 %v1727_v8 }
 0x64b   :  { %2341 = vpow2.f32 %v1728_v48 }
 0x652   :  { %v2338_v49 = vpop.eup %2337 }
 0x653   :  { %v1265_v54 = vadd.f32 1.0, %v2338_v49 }
 0x654   :  { %v2340_v55 = vpop.eup %2339 }
 0x655   :  { %2343 = vrcp.f32 %v1265_v54  ;;  %v1274_v58 = vadd.f32 1.0, %v2340_v55  ;;  %v2342_v60 = vpop.eup %2341 }
 0x656   :  { %2345 = vtanh.f32 %v1277_v50  ;;  %v1285_v6 = vadd.f32 1.0, %v2342_v60 }
 0x657   :  { %2347 = vrcp.f32 %v1274_v58 }
 0x658   :  { %2349 = vrcp.f32 %v1285_v6 }
 0x65f   :  { %v2344_v62 = vpop.eup %2343 }
 0x660   :  { %v2346_v3 = vpop.eup %2345 }
 0x661   :  { %v2348_v56 = vpop.eup %2347  ;;  %v1289_v11 = vmul.f32 %v2346_v3, %v2344_v62 }
 0x662   :  { %v1288_v61 = vmul.f32 %v2348_v56, %v2768_v12  ;;  %v2350_v14 = vpop.eup %2349 }
 0x664   :  { %v2814_v5 = vadd.f32 %v1289_v11, %v1288_v61 }
 0x666   :  { %2351 = vtanh.f32 %v2814_v5 }
 0x670   :  { %v2352_v15 = vpop.eup %2351 }
 0x671   :  { %v1292_v10 = vmul.f32 %v2352_v15, %v2350_v14 }
 0x673   :  { %1729 = vst [vmem:[%s2871_s2 + $0xa] sm:$0x3] %v1292_v10  ;;  %1362 = vmatmul.mubr.f32.vlgmr.msra.gmra.mrb[12].mxu0 %v1292_v10  ;;  %1433 = vmatmul.mubr.f32.vlgmr.msra.gmra.mrb[12].mxu1 %v1292_v10 }
 0x674   :  { %2191 = vmatpush1.bf16.msra.mxu0 %v2449_v9  ;;  %2223 = vmatpush1.bf16.msra.mxu1 %v2452_v13 }
 0x675   :  { %2193 = vmatprep.subr.bf16.mxu0 %v2456_v17  ;;  %2225 = vmatprep.subr.bf16.mxu1 %v2458_v18 }
 0x676   :  { %1561 = vmatprep.mubr.f32.mxu0 %v2412_v0  ;;  %1632 = vmatprep.mubr.f32.mxu1 %v2412_v0 }
 0x678   :  { %2195 = vmatpush1.bf16.msra.mxu0 %v2461_v22  ;;  %2227 = vmatpush1.bf16.msra.mxu1 %v2465_v26 }
 0x679   :  { %2197 = vmatprep.subr.bf16.mxu0 %v2467_v27  ;;  %2229 = vmatprep.subr.bf16.mxu1 %v2469_v31  ;;  %v1730_v31 = vld [vmem:[%s2869_s0 + $0x30] sm:$0xff] }
 0x67c   :  { %2199 = vmatpush1.bf16.msra.mxu0 %v2472_v35  ;;  %2231 = vmatpush1.bf16.msra.mxu1 %v2476_v39 }
 0x67d   :  { %2201 = vmatprep.subr.bf16.mxu0 %v2478_v40  ;;  %2233 = vmatprep.subr.bf16.mxu1 %v2481_v44 }
 0x680   :  { %2203 = vmatpush1.bf16.msra.mxu0 %v2484_v51  ;;  %2235 = vmatpush1.bf16.msra.mxu1 %v2488_v52 }
 0x681   :  { %2205 = vmatprep.subr.bf16.mxu0 %v2490_v53  ;;  %2237 = vmatprep.subr.bf16.mxu1 %v2493_v57 }
 0x684   :  { %2207 = vmatpush1.bf16.msra.mxu0 %v2496_v63  ;;  %2239 = vmatpush1.bf16.msra.mxu1 %v2500_v1 }
 0x685   :  { %2209 = vmatprep.subr.bf16.mxu0 %v2502_v2  ;;  %2241 = vmatprep.subr.bf16.mxu1 %v2505_v7 }
 0x688   :  { %2211 = vmatpush1.bf16.msra.mxu0 %v2508_v16  ;;  %2243 = vmatpush1.bf16.msra.mxu1 %v2512_v19 }
 0x689   :  { %2213 = vmatprep.subr.bf16.mxu0 %v2514_v20  ;;  %2245 = vmatprep.subr.bf16.mxu1 %v2517_v25 }
 0x68c   :  { %2215 = vmatpush1.bf16.msra.mxu0 %v2520_v34  ;;  %2247 = vmatpush1.bf16.msra.mxu1 %v2524_v36 }
 0x68d   :  { %2217 = vmatprep.subr.bf16.mxu0 %v2526_v37  ;;  %2249 = vmatprep.subr.bf16.mxu1 %v2529_v42 }
 0x690   :  { %2219 = vmatpush1.bf16.msra.mxu0 %v2532_v46  ;;  %2251 = vmatpush1.bf16.msra.mxu1 %v2536_v47 }
 0x746   :  { %v1363_v0 = vpop.f32.mrb[12].mxu0  ;;  %v1434_v9 = vpop.f32.mrb[12].mxu1 }
 0x747   :  { %v1365_v13 = vpop.f32.mrb[13].mxu0  ;;  %v1436_v17 = vpop.f32.mrb[13].mxu1 }
 0x748   :  { %v1443_v18 = vcombine.low %v1363_v0, %v1365_v13  ;;  %v1444_v22 = vcombine.low %v1434_v9, %v1436_v17 }
 0x74a   :  { %v1451_v26 = vrot.slane %v1443_v18, %v2577_v59  ;;  %v1458_v27 = vrot.slane %v1444_v22, %v2577_v59 }
 0x74c   :  { %v1459_v35 = vcombine.low %v1451_v26, %v1458_v27 }
 0x74e   :  { %v1461_v39 = vadd.f32 %v1730_v31, %v1459_v35 }
 0x750   :  { %v1731_v40 = vmul.f32 -1.442695, %v1461_v39  ;;  %v1469_v44 = vrot.slane %v1461_v39, 2  ;;  %v1480_v52 = vrot.slane %v1461_v39, 6  ;;  %v1477_v63 = vrot.slane %v1461_v39, 4 }
 0x752   :  { %2353 = vpow2.f32 %v1731_v40  ;;  %v1732_v51 = vmul.f32 -1.442695, %v1469_v44  ;;  %v1733_v53 = vmul.f32 -1.442695, %v1480_v52 }
 0x754   :  { %2355 = vpow2.f32 %v1732_v51 }
 0x755   :  { %2357 = vpow2.f32 %v1733_v53 }
 0x75c   :  { %v2354_v57 = vpop.eup %2353 }
 0x75d   :  { %v1465_v1 = vadd.f32 1.0, %v2354_v57 }
 0x75e   :  { %v2356_v2 = vpop.eup %2355 }
 0x75f   :  { %2359 = vrcp.f32 %v1465_v1  ;;  %v1474_v7 = vadd.f32 1.0, %v2356_v2  ;;  %v2358_v16 = vpop.eup %2357 }
 0x760   :  { %2361 = vtanh.f32 %v1477_v63  ;;  %v1485_v34 = vadd.f32 1.0, %v2358_v16 }
 0x761   :  { %2363 = vrcp.f32 %v1474_v7 }
 0x762   :  { %2365 = vrcp.f32 %v1485_v34 }
 0x769   :  { %v2360_v19 = vpop.eup %2359 }
 0x76a   :  { %v2362_v20 = vpop.eup %2361 }
 0x76b   :  { %v2364_v25 = vpop.eup %2363  ;;  %v1489_v37 = vmul.f32 %v2362_v20, %v2360_v19 }
 0x76c   :  { %v1488_v36 = vmul.f32 %v2364_v25, %v2814_v5  ;;  %v2366_v46 = vpop.eup %2365 }
 0x76e   :  { %v1490_v42 = vadd.f32 %v1489_v37, %v1488_v36 }
 0x770   :  { %2367 = vtanh.f32 %v1490_v42 }
 0x77a   :  { %v2368_v47 = vpop.eup %2367 }
 0x77b   :  { %v1492_v12 = vmul.f32 %v2368_v47, %v2366_v46 }
 0x77d   :  { %1734 = vst [vmem:[%s2871_s2 + $0xc] sm:$0x3] %v1492_v12  ;;  %1562 = vmatmul.mubr.f32.vlgmr.msra.gmra.mrb[14].mxu0 %v1492_v12  ;;  %1633 = vmatmul.mubr.f32.vlgmr.msra.gmra.mrb[14].mxu1 %v1492_v12 }
 0x850   :  { %v1563_v21 = vpop.f32.mrb[14].mxu0  ;;  %v1634_v23 = vpop.f32.mrb[14].mxu1 }
 0x851   :  { %v1565_v24 = vpop.f32.mrb[15].mxu0  ;;  %v1636_v28 = vpop.f32.mrb[15].mxu1 }
 0x852   :  { %v1643_v29 = vcombine.low %v1563_v21, %v1565_v24  ;;  %v1644_v30 = vcombine.low %v1634_v23, %v1636_v28 }
 0x854   :  { %v1651_v32 = vrot.slane %v1643_v29, %v2577_v59  ;;  %v1658_v33 = vrot.slane %v1644_v30, %v2577_v59 }
 0x856   :  { %v1659_v41 = vcombine.low %v1651_v32, %v1658_v33 }
 0x858   :  { %v1661_v43 = vadd.f32 %v1735_v38, %v1659_v41 }
 0x85a   :  { %v1736_v4 = vmul.f32 -1.442695, %v1661_v43  ;;  %v1669_v8 = vrot.slane %v1661_v43, 2  ;;  %v1680_v48 = vrot.slane %v1661_v43, 6  ;;  %v1677_v54 = vrot.slane %v1661_v43, 4 }
 0x85c   :  { %2369 = vpow2.f32 %v1736_v4  ;;  %v1737_v45 = vmul.f32 -1.442695, %v1669_v8  ;;  %v1738_v49 = vmul.f32 -1.442695, %v1680_v48 }
 0x85e   :  { %2371 = vpow2.f32 %v1737_v45 }
 0x85f   :  { %2373 = vpow2.f32 %v1738_v49 }
 0x866   :  { %v2370_v50 = vpop.eup %2369 }
 0x867   :  { %v1665_v55 = vadd.f32 1.0, %v2370_v50 }
 0x868   :  { %v2372_v58 = vpop.eup %2371 }
 0x869   :  { %2375 = vrcp.f32 %v1665_v55  ;;  %v1674_v59 = vadd.f32 1.0, %v2372_v58  ;;  %v2374_v60 = vpop.eup %2373 }
 0x86a   :  { %2377 = vtanh.f32 %v1677_v54  ;;  %v1685_v6 = vadd.f32 1.0, %v2374_v60 }
 0x86b   :  { %2379 = vrcp.f32 %v1674_v59 }
 0x86c   :  { %2381 = vrcp.f32 %v1685_v6 }
 0x873   :  { %v2376_v62 = vpop.eup %2375 }
 0x874   :  { %v2378_v3 = vpop.eup %2377 }
 0x875   :  { %v2380_v56 = vpop.eup %2379  ;;  %v1689_v11 = vmul.f32 %v2378_v3, %v2376_v62 }
 0x876   :  { %v1688_v61 = vmul.f32 %v2380_v56, %v1490_v42  ;;  %v2382_v14 = vpop.eup %2381 }
 0x878   :  { %v1690_v5 = vadd.f32 %v1689_v11, %v1688_v61 }
 0x87a   :  { %2383 = vtanh.f32 %v1690_v5  ;;  %1696 = vst [vmem:[#allocation3] sm:$0x3] %v1690_v5 }
 0x884   :  { %v2384_v15 = vpop.eup %2383 }
 0x885   :  { %v1692_v10 = vmul.f32 %v2384_v15, %v2382_v14 }
 0x887   :  { %1739 = vst [vmem:[%s2871_s2 + $0xe] sm:$0x3] %v1692_v10  ;;  %1695 = vst [vmem:[#allocation2] sm:$0x3] %v1692_v10 }
 0x888   :  { %1701 = vsyncpa [#allocation5], 1 }

// kernel: lstm_forward.7
= control target key start
LH: loop header
LB: loop body
LE: loop exit
PB: predicated region body
PF: predicated region fallthrough
CT: control target
= control target key end

     0   :  { %v2703_v7 = vmov 0.0   ;;  %s3435_s0 = inlined_call_operand.vmem [shape: f32[8,2,512], index: 0, kind: input, shape index: {}]   ;;  %s3436_s1 = inlined_call_operand.vmem [shape: f32[128,512], index: 1, kind: input, shape index: {}]   ;;  %s3437_s2 = inlined_call_operand.vmem [shape: f32[128,64], index: 2, kind: input, shape index: {}]   ;;  %s3438_s3 = inlined_call_operand.vmem [shape: f32[1,64], index: 3, kind: input, shape index: {}]   ;;  %s3439_s4 = inlined_call_operand.vmem [shape: f32[64,4], index: 4, kind: input, shape index: {}]   ;;  %s3440_s5 = inlined_call_operand.vmem [shape: f32[1,4], index: 5, kind: input, shape index: {}]   ;;  %s3441_s6 = inlined_call_operand.hbm [shape: f32[2,4], index: 6, kind: output, shape index: {}]  }
   0x1   :  { %v31_v0 = vld [vmem:[%s3436_s1 + $0x8] sm:$0xff]  ;;  %v33_v2 = vld [vmem:[%s3436_s1 + $0x18] sm:$0xff]  ;;  %v30_v5 = vld [vmem:[%s3436_s1] sm:$0xff]  ;;  %161 = vmatprep.mubr.f32.mxu0 %v2703_v7  ;;  %28 = vst [vmem:[#allocation2] sm:$0x3] %v2703_v7  ;;  %232 = vmatprep.mubr.f32.mxu1 %v2703_v7 }
   0x2   :  { %v35_v1 = vld [vmem:[%s3436_s1 + $0x28] sm:$0xff]  ;;  %v37_v4 = vld [vmem:[%s3436_s1 + $0x38] sm:$0xff]  ;;  %v34_v6 = vld [vmem:[%s3436_s1 + $0x20] sm:$0xff]  ;;  %29 = vst [vmem:[#allocation3] sm:$0x3] %v2703_v7 }
   0x3   :  { %v2752_v3 = vpack.c.bf16 %v35_v1, %v31_v0  ;;  %v2767_v8 = vpack.c.bf16 %v37_v4, %v33_v2  ;;  %v2769_v9 = vpack.c.bf16 %v34_v6, %v30_v5  ;;  %v32_v10 = vld [vmem:[%s3436_s1 + $0x10] sm:$0xff]  ;;  %v39_v12 = vld [vmem:[%s3436_s1 + $0x48] sm:$0xff]  ;;  %v41_v15 = vld [vmem:[%s3436_s1 + $0x58] sm:$0xff] }
   0x4   :  { %v36_v11 = vld [vmem:[%s3436_s1 + $0x30] sm:$0xff]  ;;  %v43_v14 = vld [vmem:[%s3436_s1 + $0x68] sm:$0xff]  ;;  %v45_v16 = vld [vmem:[%s3436_s1 + $0x78] sm:$0xff] }
   0x5   :  { %1999 = vmatprep.subr.bf16.mxu0 %v2752_v3  ;;  %v2781_v13 = vpack.c.bf16 %v36_v11, %v32_v10  ;;  %2031 = vmatprep.subr.bf16.mxu1 %v2767_v8  ;;  %v2794_v17 = vpack.c.bf16 %v43_v14, %v39_v12  ;;  %v2796_v18 = vpack.c.bf16 %v45_v16, %v41_v15  ;;  %v38_v19 = vld [vmem:[%s3436_s1 + $0x40] sm:$0xff]  ;;  %v40_v21 = vld [vmem:[%s3436_s1 + $0x50] sm:$0xff]  ;;  %v47_v24 = vld [vmem:[%s3436_s1 + $0x88] sm:$0xff] }
   0x6   :  { %2001 = vmatpush1.bf16.msra.mxu0 %v2769_v9  ;;  %v42_v20 = vld [vmem:[%s3436_s1 + $0x60] sm:$0xff]  ;;  %v44_v23 = vld [vmem:[%s3436_s1 + $0x70] sm:$0xff]  ;;  %v51_v25 = vld [vmem:[%s3436_s1 + $0xa8] sm:$0xff] }
   0x7   :  { %2033 = vmatpush1.bf16.msra.mxu1 %v2781_v13  ;;  %v2808_v22 = vpack.c.bf16 %v42_v20, %v38_v19  ;;  %2003 = vmatprep.subr.bf16.mxu0 %v2794_v17  ;;  %v2821_v26 = vpack.c.bf16 %v44_v23, %v40_v21  ;;  %v2823_v27 = vpack.c.bf16 %v51_v25, %v47_v24  ;;  %v49_v28 = vld [vmem:[%s3436_s1 + $0x98] sm:$0xff]  ;;  %v46_v30 = vld [vmem:[%s3436_s1 + $0x80] sm:$0xff]  ;;  %v48_v33 = vld [vmem:[%s3436_s1 + $0x90] sm:$0xff] }
   0x8   :  { %2035 = vmatprep.subr.bf16.mxu1 %v2796_v18  ;;  %v53_v29 = vld [vmem:[%s3436_s1 + $0xb8] sm:$0xff]  ;;  %v50_v32 = vld [vmem:[%s3436_s1 + $0xa0] sm:$0xff]  ;;  %v52_v34 = vld [vmem:[%s3436_s1 + $0xb0] sm:$0xff] }
   0x9   :  { %v2834_v31 = vpack.c.bf16 %v53_v29, %v49_v28  ;;  %v2846_v35 = vpack.c.bf16 %v50_v32, %v46_v30  ;;  %v55_v36 = vld [vmem:[%s3436_s1 + $0xc8] sm:$0xff]  ;;  %v57_v38 = vld [vmem:[%s3436_s1 + $0xd8] sm:$0xff]  ;;  %v2859_v39 = vpack.c.bf16 %v52_v34, %v48_v33  ;;  %v54_v42 = vld [vmem:[%s3436_s1 + $0xc0] sm:$0xff] }
   0xa   :  { %2005 = vmatpush1.bf16.msra.mxu0 %v2808_v22  ;;  %v59_v37 = vld [vmem:[%s3436_s1 + $0xe8] sm:$0xff]  ;;  %v61_v41 = vld [vmem:[%s3436_s1 + $0xf8] sm:$0xff]  ;;  %v58_v43 = vld [vmem:[%s3436_s1 + $0xe0] sm:$0xff] }
   0xb   :  { %2037 = vmatpush1.bf16.msra.mxu1 %v2821_v26  ;;  %2007 = vmatprep.subr.bf16.mxu0 %v2823_v27  ;;  %v2861_v40 = vpack.c.bf16 %v59_v37, %v55_v36  ;;  %v2873_v44 = vpack.c.bf16 %v61_v41, %v57_v38  ;;  %v56_v45 = vld [vmem:[%s3436_s1 + $0xd0] sm:$0xff]  ;;  %v63_v47 = vld [vmem:[%s3436_s1 + $0x108] sm:$0xff]  ;;  %v65_v49 = vld [vmem:[%s3436_s1 + $0x118] sm:$0xff]  ;;  %v2894_v51 = vpack.c.bf16 %v58_v43, %v54_v42 }
   0xc   :  { %2039 = vmatprep.subr.bf16.mxu1 %v2834_v31  ;;  %v60_v46 = vld [vmem:[%s3436_s1 + $0xf0] sm:$0xff]  ;;  %v67_v48 = vld [vmem:[%s3436_s1 + $0x128] sm:$0xff]  ;;  %v69_v50 = vld [vmem:[%s3436_s1 + $0x138] sm:$0xff] }
   0xd   :  { %v2898_v52 = vpack.c.bf16 %v60_v46, %v56_v45  ;;  %v2900_v53 = vpack.c.bf16 %v67_v48, %v63_v47  ;;  %v62_v54 = vld [vmem:[%s3436_s1 + $0x100] sm:$0xff]  ;;  %v64_v56 = vld [vmem:[%s3436_s1 + $0x110] sm:$0xff]  ;;  %v2912_v57 = vpack.c.bf16 %v69_v50, %v65_v49  ;;  %v71_v59 = vld [vmem:[%s3436_s1 + $0x148] sm:$0xff] }
   0xe   :  { %2009 = vmatpush1.bf16.msra.mxu0 %v2846_v35  ;;  %v66_v55 = vld [vmem:[%s3436_s1 + $0x120] sm:$0xff]  ;;  %v68_v58 = vld [vmem:[%s3436_s1 + $0x130] sm:$0xff]  ;;  %v75_v60 = vld [vmem:[%s3436_s1 + $0x168] sm:$0xff] }
   0xf   :  { %2041 = vmatpush1.bf16.msra.mxu1 %v2859_v39  ;;  %2011 = vmatprep.subr.bf16.mxu0 %v2861_v40  ;;  %v73_v61 = vld [vmem:[%s3436_s1 + $0x158] sm:$0xff]  ;;  %v2930_v63 = vpack.c.bf16 %v66_v55, %v62_v54  ;;  %v2934_v0 = vpack.c.bf16 %v68_v58, %v64_v56  ;;  %v2936_v1 = vpack.c.bf16 %v75_v60, %v71_v59  ;;  %v70_v2 = vld [vmem:[%s3436_s1 + $0x140] sm:$0xff]  ;;  %v72_v5 = vld [vmem:[%s3436_s1 + $0x150] sm:$0xff] }
  0x10   :  { %2043 = vmatprep.subr.bf16.mxu1 %v2873_v44  ;;  %v77_v62 = vld [vmem:[%s3436_s1 + $0x178] sm:$0xff]  ;;  %v74_v4 = vld [vmem:[%s3436_s1 + $0x160] sm:$0xff]  ;;  %v76_v10 = vld [vmem:[%s3436_s1 + $0x170] sm:$0xff] }
  0x11   :  { %v2948_v6 = vpack.c.bf16 %v77_v62, %v73_v61  ;;  %v79_v11 = vld [vmem:[%s3436_s1 + $0x188] sm:$0xff]  ;;  %v81_v14 = vld [vmem:[%s3436_s1 + $0x198] sm:$0xff]  ;;  %v2966_v16 = vpack.c.bf16 %v74_v4, %v70_v2  ;;  %v78_v19 = vld [vmem:[%s3436_s1 + $0x180] sm:$0xff]  ;;  %v2973_v20 = vpack.c.bf16 %v76_v10, %v72_v5 }
  0x12   :  { %2013 = vmatpush1.bf16.msra.mxu0 %v2894_v51  ;;  %v83_v12 = vld [vmem:[%s3436_s1 + $0x1a8] sm:$0xff]  ;;  %v85_v15 = vld [vmem:[%s3436_s1 + $0x1b8] sm:$0xff]  ;;  %v82_v23 = vld [vmem:[%s3436_s1 + $0x1a0] sm:$0xff] }
  0x13   :  { %2045 = vmatpush1.bf16.msra.mxu1 %v2898_v52  ;;  %2015 = vmatprep.subr.bf16.mxu0 %v2900_v53  ;;  %v2975_v21 = vpack.c.bf16 %v83_v12, %v79_v11  ;;  %v80_v24 = vld [vmem:[%s3436_s1 + $0x190] sm:$0xff] }
  0x14   :  { %2047 = vmatprep.subr.bf16.mxu1 %v2912_v57 }
  0x16   :  { %2017 = vmatpush1.bf16.msra.mxu0 %v2930_v63 }
  0x17   :  { %2049 = vmatpush1.bf16.msra.mxu1 %v2934_v0  ;;  %2019 = vmatprep.subr.bf16.mxu0 %v2936_v1 }
  0x18   :  { %11 = vsyncpa [#allocation5], 0  ;;  %2051 = vmatprep.subr.bf16.mxu1 %v2948_v6  ;;  %v2984_v25 = vpack.c.bf16 %v85_v15, %v81_v14  ;;  %v84_v28 = vld [vmem:[%s3436_s1 + $0x1b0] sm:$0xff]  ;;  %v87_v29 = vld [vmem:[%s3436_s1 + $0x1c8] sm:$0xff]  ;;  %v3002_v34 = vpack.c.bf16 %v82_v23, %v78_v19  ;;  %v2704_v49 = vmov 1983009808   ;;  %v248_v54 = vlaneseq }
  0x19   :  { %v91_v30 = vld [vmem:[%s3436_s1 + $0x1e8] sm:$0xff]  ;;  %v89_v32 = vld [vmem:[%s3436_s1 + $0x1d8] sm:$0xff]  ;;  %v3006_v36 = vpack.c.bf16 %v84_v28, %v80_v24  ;;  %v86_v38 = vld [vmem:[%s3436_s1 + $0x1c0] sm:$0xff]  ;;  %v246_v50 = vunpack.c.l.s4 %v2704_v49  ;;  %vm2706_vm0 = vmmov 0   ;;  %vm1794_vm1 = vcmask 523264   ;;  %s2707_s20 = smov [#allocation4]  }
  0x1a   :  { %v93_v33 = vld [vmem:[%s3436_s1 + $0x1f8] sm:$0xff]  ;;  %2021 = vmatpush1.bf16.msra.mxu0 %v2966_v16  ;;  %v3008_v37 = vpack.c.bf16 %v91_v30, %v87_v29  ;;  %v90_v41 = vld [vmem:[%s3436_s1 + $0x1e0] sm:$0xff]  ;;  %v88_v43 = vld [vmem:[%s3436_s1 + $0x1d0] sm:$0xff]  ;;  %v249_v56 = vshrl.u32 %v248_v54, 7  ;;  %s1876_s21 = sshll.u32 %s2707_s20, 4  ;;  %vm1868_vm2 = vcmask 25600   ;;  %s1877_s21 = int_to_ptr.vmem [resolvable:$true] %s1876_s21 }
  0x1b   :  { %2053 = vmatpush1.bf16.msra.mxu1 %v2973_v20  ;;  %2023 = vmatprep.subr.bf16.mxu0 %v2975_v21  ;;  %v3017_v42 = vpack.c.bf16 %v93_v33, %v89_v32  ;;  %v92_v45 = vld [vmem:[%s3436_s1 + $0x1f0] sm:$0xff]  ;;  %v3026_v46 = vpack.c.bf16 %v90_v41, %v86_v38  ;;  %v94_v48 = vld [vmem:[#allocation2] sm:$0x3]  ;;  %v247_v55 = vunpack.c.0.s8 %v246_v50  ;;  %p2684_p1 = scmp.lt.s32.totalorder %s1877_s21, %s1877_s21 }
  0x1c   :  { %2055 = vmatprep.subr.bf16.mxu1 %v2984_v25  ;;  %v3030_v47 = vpack.c.bf16 %v92_v45, %v88_v43  ;;  %v96_v11 = vld [vmem:[%s3435_s0] sm:$0xff] }
  0x1d   :  { %v3071_v59 = vsub.s32 %v247_v55, %v249_v56  ;;  %v95_v45 = vld [vmem:[#allocation3] sm:$0x3] }
  0x1e   :  { %2025 = vmatpush1.bf16.msra.mxu0 %v3002_v34 }
  0x1f   :  { %2057 = vmatpush1.bf16.msra.mxu1 %v3006_v36  ;;  %2027 = vmatprep.subr.bf16.mxu0 %v3008_v37 }
  0x20   :  { %2059 = vmatprep.subr.bf16.mxu1 %v3017_v42 }
  0x22   :  { %2029 = vmatpush1.bf16.msra.mxu0 %v3026_v46 }
  0x23   :  { %2061 = vmatpush1.bf16.msra.mxu1 %v3030_v47  ;;  %2063 = vmatprep.subr.bf16.mxu0 %v2752_v3 }
  0x24   :  { %2095 = vmatprep.subr.bf16.mxu1 %v2767_v8 }
  0x25   :  { %162 = vmatmul.mubr.f32.vlgmr.msra.gmra.mrb[0].mxu0 %v94_v48 }
  0x26   :  { %233 = vmatmul.mubr.f32.vlgmr.msra.gmra.mrb[0].mxu1 %v94_v48  ;;  %2065 = vmatpush1.bf16.msra.mxu0 %v2769_v9 }
  0x27   :  { %2097 = vmatpush1.bf16.msra.mxu1 %v2781_v13  ;;  %2067 = vmatprep.subr.bf16.mxu0 %v2794_v17 }
  0x28   :  { %2099 = vmatprep.subr.bf16.mxu1 %v2796_v18  ;;  %359 = vmatprep.mubr.f32.mxu0 %v2703_v7 }
  0x29   :  { %430 = vmatprep.mubr.f32.mxu1 %v2703_v7 }
  0x2a   :  { %2069 = vmatpush1.bf16.msra.mxu0 %v2808_v22 }
  0x2b   :  { %2101 = vmatpush1.bf16.msra.mxu1 %v2821_v26  ;;  %2071 = vmatprep.subr.bf16.mxu0 %v2823_v27 }
  0x2c   :  { %2103 = vmatprep.subr.bf16.mxu1 %v2834_v31 }
  0x2e   :  { %2073 = vmatpush1.bf16.msra.mxu0 %v2846_v35 }
  0x2f   :  { %2105 = vmatpush1.bf16.msra.mxu1 %v2859_v39  ;;  %2075 = vmatprep.subr.bf16.mxu0 %v2861_v40 }
  0x30   :  { %2107 = vmatprep.subr.bf16.mxu1 %v2873_v44 }
  0x32   :  { %2077 = vmatpush1.bf16.msra.mxu0 %v2894_v51 }
  0x33   :  { %2109 = vmatpush1.bf16.msra.mxu1 %v2898_v52  ;;  %2079 = vmatprep.subr.bf16.mxu0 %v2900_v53 }
  0x34   :  { %2111 = vmatprep.subr.bf16.mxu1 %v2912_v57 }
  0x36   :  { %2081 = vmatpush1.bf16.msra.mxu0 %v2930_v63 }
  0x37   :  { %2113 = vmatpush1.bf16.msra.mxu1 %v2934_v0  ;;  %2083 = vmatprep.subr.bf16.mxu0 %v2936_v1 }
  0x38   :  { %2115 = vmatprep.subr.bf16.mxu1 %v2948_v6 }
  0x3a   :  { %2085 = vmatpush1.bf16.msra.mxu0 %v2966_v16 }
  0x3b   :  { %2117 = vmatpush1.bf16.msra.mxu1 %v2973_v20  ;;  %2087 = vmatprep.subr.bf16.mxu0 %v2975_v21 }
  0x3c   :  { %2119 = vmatprep.subr.bf16.mxu1 %v2984_v25 }
  0x3e   :  { %2089 = vmatpush1.bf16.msra.mxu0 %v3002_v34 }
  0x3f   :  { %2121 = vmatpush1.bf16.msra.mxu1 %v3006_v36  ;;  %2091 = vmatprep.subr.bf16.mxu0 %v3008_v37 }
  0x40   :  { %2123 = vmatprep.subr.bf16.mxu1 %v3017_v42 }
  0x42   :  { %2093 = vmatpush1.bf16.msra.mxu0 %v3026_v46 }
  0x43   :  { %2125 = vmatpush1.bf16.msra.mxu1 %v3030_v47  ;;  %2127 = vmatprep.subr.bf16.mxu0 %v2752_v3 }
  0x44   :  { %2159 = vmatprep.subr.bf16.mxu1 %v2767_v8 }
  0xf8   :  { %v163_v58 = vpop.f32.mrb[0].mxu0 }
  0xf9   :  { %v234_v60 = vpop.f32.mrb[0].mxu1  ;;  %v165_v61 = vpop.f32.mrb[1].mxu0 }
  0xfa   :  { %v243_v62 = vcombine.low %v163_v58, %v165_v61  ;;  %v236_v2 = vpop.f32.mrb[1].mxu1 }
  0xfb   :  { %v244_v4 = vcombine.low %v234_v60, %v236_v2 }
  0xfc   :  { %v251_v5 = vrot.slane %v243_v62, %v3071_v59 }
  0xfd   :  { %v258_v10 = vrot.slane %v244_v4, %v3071_v59 }
  0xff   :  { %v259_v12 = vcombine.low %v251_v5, %v258_v10 }
 0x101   :  { %v261_v14 = vadd.f32 %v259_v12, %v96_v11 }
 0x103   :  { %v1884_v15 = vmul.f32 -1.442695, %v261_v14  ;;  %v269_v19 = vrot.slane %v261_v14, 2  ;;  %v280_v24 = vrot.slane %v261_v14, 6  ;;  %v277_v30 = vrot.slane %v261_v14, 4 }
 0x105   :  { %2551 = vpow2.f32 %v1884_v15  ;;  %v1885_v23 = vmul.f32 -1.442695, %v269_v19  ;;  %v1886_v28 = vmul.f32 -1.442695, %v280_v24  ;;  %v1887_v15 = vld [vmem:[%s3435_s0 + $0x8] sm:$0xff] }
 0x107   :  { %2553 = vpow2.f32 %v1885_v23 }
 0x108   :  { %2555 = vpow2.f32 %v1886_v28 }
 0x10f   :  { %v2552_v29 = vpop.eup %2551 }
 0x110   :  { %v265_v32 = vadd.f32 1.0, %v2552_v29 }
 0x111   :  { %v2554_v33 = vpop.eup %2553 }
 0x112   :  { %2557 = vrcp.f32 %v265_v32  ;;  %v274_v38 = vadd.f32 1.0, %v2554_v33  ;;  %v2556_v41 = vpop.eup %2555 }
 0x113   :  { %2559 = vtanh.f32 %v277_v30  ;;  %v285_v50 = vadd.f32 1.0, %v2556_v41 }
 0x114   :  { %2561 = vrcp.f32 %v274_v38 }
 0x115   :  { %2563 = vrcp.f32 %v285_v50 }
 0x11c   :  { %v2558_v43 = vpop.eup %2557 }
 0x11d   :  { %v2560_v48 = vpop.eup %2559 }
 0x11e   :  { %v2562_v49 = vpop.eup %2561  ;;  %v289_v55 = vmul.f32 %v2560_v48, %v2558_v43 }
 0x11f   :  { %v288_v54 = vmul.f32 %v2562_v49, %v95_v45  ;;  %v2564_v58 = vpop.eup %2563 }
 0x121   :  { %v3078_v56 = vadd.f32 %v289_v55, %v288_v54 }
 0x123   :  { %2565 = vtanh.f32 %v3078_v56 }
 0x12d   :  { %v2566_v60 = vpop.eup %2565 }
 0x12e   :  { %v292_v61 = vmul.f32 %v2566_v60, %v2564_v58 }
 0x130   :  { %360 = vmatmul.mubr.f32.vlgmr.msra.gmra.mrb[2].mxu0 %v292_v61  ;;  %431 = vmatmul.mubr.f32.vlgmr.msra.gmra.mrb[2].mxu1 %v292_v61 }
 0x131   :  { %2129 = vmatpush1.bf16.msra.mxu0 %v2769_v9  ;;  %2161 = vmatpush1.bf16.msra.mxu1 %v2781_v13 }
 0x132   :  { %2131 = vmatprep.subr.bf16.mxu0 %v2794_v17  ;;  %2163 = vmatprep.subr.bf16.mxu1 %v2796_v18 }
 0x133   :  { %557 = vmatprep.mubr.f32.mxu0 %v2703_v7  ;;  %628 = vmatprep.mubr.f32.mxu1 %v2703_v7 }
 0x135   :  { %2133 = vmatpush1.bf16.msra.mxu0 %v2808_v22  ;;  %2165 = vmatpush1.bf16.msra.mxu1 %v2821_v26 }
 0x136   :  { %2135 = vmatprep.subr.bf16.mxu0 %v2823_v27  ;;  %2167 = vmatprep.subr.bf16.mxu1 %v2834_v31 }
 0x139   :  { %2137 = vmatpush1.bf16.msra.mxu0 %v2846_v35  ;;  %2169 = vmatpush1.bf16.msra.mxu1 %v2859_v39 }
 0x13a   :  { %2139 = vmatprep.subr.bf16.mxu0 %v2861_v40  ;;  %2171 = vmatprep.subr.bf16.mxu1 %v2873_v44 }
 0x13d   :  { %2141 = vmatpush1.bf16.msra.mxu0 %v2894_v51  ;;  %2173 = vmatpush1.bf16.msra.mxu1 %v2898_v52 }
 0x13e   :  { %2143 = vmatprep.subr.bf16.mxu0 %v2900_v53  ;;  %2175 = vmatprep.subr.bf16.mxu1 %v2912_v57 }
 0x141   :  { %2145 = vmatpush1.bf16.msra.mxu0 %v2930_v63  ;;  %2177 = vmatpush1.bf16.msra.mxu1 %v2934_v0 }
 0x142   :  { %2147 = vmatprep.subr.bf16.mxu0 %v2936_v1  ;;  %2179 = vmatprep.subr.bf16.mxu1 %v2948_v6 }
 0x145   :  { %2149 = vmatpush1.bf16.msra.mxu0 %v2966_v16  ;;  %2181 = vmatpush1.bf16.msra.mxu1 %v2973_v20 }
 0x146   :  { %2151 = vmatprep.subr.bf16.mxu0 %v2975_v21  ;;  %2183 = vmatprep.subr.bf16.mxu1 %v2984_v25 }
 0x149   :  { %2153 = vmatpush1.bf16.msra.mxu0 %v3002_v34  ;;  %2185 = vmatpush1.bf16.msra.mxu1 %v3006_v36 }
 0x14a   :  { %2155 = vmatprep.subr.bf16.mxu0 %v3008_v37  ;;  %2187 = vmatprep.subr.bf16.mxu1 %v3017_v42 }
 0x14d   :  { %2157 = vmatpush1.bf16.msra.mxu0 %v3026_v46  ;;  %2189 = vmatpush1.bf16.msra.mxu1 %v3030_v47 }
 0x14e   :  { %2191 = vmatprep.subr.bf16.mxu0 %v2752_v3  ;;  %2223 = vmatprep.subr.bf16.mxu1 %v2767_v8 }
 0x203   :  { %v361_v62 = vpop.f32.mrb[2].mxu0  ;;  %v432_v2 = vpop.f32.mrb[2].mxu1 }
 0x204   :  { %v363_v4 = vpop.f32.mrb[3].mxu0  ;;  %v434_v5 = vpop.f32.mrb[3].mxu1 }
 0x205   :  { %v441_v10 = vcombine.low %v361_v62, %v363_v4  ;;  %v442_v11 = vcombine.low %v432_v2, %v434_v5 }
 0x207   :  { %v449_v12 = vrot.slane %v441_v10, %v3071_v59  ;;  %v456_v14 = vrot.slane %v442_v11, %v3071_v59 }
 0x209   :  { %v457_v19 = vcombine.low %v449_v12, %v456_v14 }
 0x20b   :  { %v459_v23 = vadd.f32 %v1887_v15, %v457_v19 }
 0x20d   :  { %v1888_v24 = vmul.f32 -1.442695, %v459_v23  ;;  %v467_v28 = vrot.slane %v459_v23, 2  ;;  %v478_v30 = vrot.slane %v459_v23, 6  ;;  %v475_v38 = vrot.slane %v459_v23, 4  ;;  %v1891_v23 = vld [vmem:[%s3435_s0 + $0x10] sm:$0xff] }
 0x20f   :  { %2567 = vpow2.f32 %v1888_v24  ;;  %v1889_v29 = vmul.f32 -1.442695, %v467_v28  ;;  %v1890_v32 = vmul.f32 -1.442695, %v478_v30 }
 0x211   :  { %2569 = vpow2.f32 %v1889_v29 }
 0x212   :  { %2571 = vpow2.f32 %v1890_v32 }
 0x219   :  { %v2568_v33 = vpop.eup %2567 }
 0x21a   :  { %v463_v41 = vadd.f32 1.0, %v2568_v33 }
 0x21b   :  { %v2570_v43 = vpop.eup %2569 }
 0x21c   :  { %2573 = vrcp.f32 %v463_v41  ;;  %v472_v45 = vadd.f32 1.0, %v2570_v43  ;;  %v2572_v48 = vpop.eup %2571 }
 0x21d   :  { %2575 = vtanh.f32 %v475_v38  ;;  %v483_v55 = vadd.f32 1.0, %v2572_v48 }
 0x21e   :  { %2577 = vrcp.f32 %v472_v45 }
 0x21f   :  { %2579 = vrcp.f32 %v483_v55 }
 0x226   :  { %v2574_v49 = vpop.eup %2573 }
 0x227   :  { %v2576_v50 = vpop.eup %2575 }
 0x228   :  { %v2578_v54 = vpop.eup %2577  ;;  %v487_v60 = vmul.f32 %v2576_v50, %v2574_v49 }
 0x229   :  { %v486_v58 = vmul.f32 %v2578_v54, %v3078_v56  ;;  %v2580_v62 = vpop.eup %2579 }
 0x22b   :  { %v3121_v61 = vadd.f32 %v487_v60, %v486_v58 }
 0x22d   :  { %2581 = vtanh.f32 %v3121_v61 }
 0x237   :  { %v2582_v2 = vpop.eup %2581 }
 0x238   :  { %v490_v4 = vmul.f32 %v2582_v2, %v2580_v62 }
 0x23a   :  { %558 = vmatmul.mubr.f32.vlgmr.msra.gmra.mrb[4].mxu0 %v490_v4  ;;  %629 = vmatmul.mubr.f32.vlgmr.msra.gmra.mrb[4].mxu1 %v490_v4 }
 0x23b   :  { %2193 = vmatpush1.bf16.msra.mxu0 %v2769_v9  ;;  %2225 = vmatpush1.bf16.msra.mxu1 %v2781_v13 }
 0x23c   :  { %2195 = vmatprep.subr.bf16.mxu0 %v2794_v17  ;;  %2227 = vmatprep.subr.bf16.mxu1 %v2796_v18 }
 0x23d   :  { %755 = vmatprep.mubr.f32.mxu0 %v2703_v7  ;;  %826 = vmatprep.mubr.f32.mxu1 %v2703_v7 }
 0x23f   :  { %2197 = vmatpush1.bf16.msra.mxu0 %v2808_v22  ;;  %2229 = vmatpush1.bf16.msra.mxu1 %v2821_v26 }
 0x240   :  { %2199 = vmatprep.subr.bf16.mxu0 %v2823_v27  ;;  %2231 = vmatprep.subr.bf16.mxu1 %v2834_v31 }
 0x243   :  { %2201 = vmatpush1.bf16.msra.mxu0 %v2846_v35  ;;  %2233 = vmatpush1.bf16.msra.mxu1 %v2859_v39 }
 0x244   :  { %2203 = vmatprep.subr.bf16.mxu0 %v2861_v40  ;;  %2235 = vmatprep.subr.bf16.mxu1 %v2873_v44 }
 0x247   :  { %2205 = vmatpush1.bf16.msra.mxu0 %v2894_v51  ;;  %2237 = vmatpush1.bf16.msra.mxu1 %v2898_v52 }
 0x248   :  { %2207 = vmatprep.subr.bf16.mxu0 %v2900_v53  ;;  %2239 = vmatprep.subr.bf16.mxu1 %v2912_v57 }
 0x24b   :  { %2209 = vmatpush1.bf16.msra.mxu0 %v2930_v63  ;;  %2241 = vmatpush1.bf16.msra.mxu1 %v2934_v0 }
 0x24c   :  { %2211 = vmatprep.subr.bf16.mxu0 %v2936_v1  ;;  %2243 = vmatprep.subr.bf16.mxu1 %v2948_v6 }
 0x24f   :  { %2213 = vmatpush1.bf16.msra.mxu0 %v2966_v16  ;;  %2245 = vmatpush1.bf16.msra.mxu1 %v2973_v20 }
 0x250   :  { %2215 = vmatprep.subr.bf16.mxu0 %v2975_v21  ;;  %2247 = vmatprep.subr.bf16.mxu1 %v2984_v25 }
 0x253   :  { %2217 = vmatpush1.bf16.msra.mxu0 %v3002_v34  ;;  %2249 = vmatpush1.bf16.msra.mxu1 %v3006_v36 }
 0x254   :  { %2219 = vmatprep.subr.bf16.mxu0 %v3008_v37  ;;  %2251 = vmatprep.subr.bf16.mxu1 %v3017_v42 }
 0x257   :  { %2221 = vmatpush1.bf16.msra.mxu0 %v3026_v46  ;;  %2253 = vmatpush1.bf16.msra.mxu1 %v3030_v47 }
 0x258   :  { %2255 = vmatprep.subr.bf16.mxu0 %v2752_v3  ;;  %2287 = vmatprep.subr.bf16.mxu1 %v2767_v8 }
 0x30d   :  { %v559_v56 = vpop.f32.mrb[4].mxu0  ;;  %v630_v5 = vpop.f32.mrb[4].mxu1 }
 0x30e   :  { %v561_v10 = vpop.f32.mrb[5].mxu0  ;;  %v632_v11 = vpop.f32.mrb[5].mxu1 }
 0x30f   :  { %v639_v12 = vcombine.low %v559_v56, %v561_v10  ;;  %v640_v14 = vcombine.low %v630_v5, %v632_v11 }
 0x311   :  { %v647_v15 = vrot.slane %v639_v12, %v3071_v59  ;;  %v654_v19 = vrot.slane %v640_v14, %v3071_v59 }
 0x313   :  { %v655_v24 = vcombine.low %v647_v15, %v654_v19 }
 0x315   :  { %v657_v28 = vadd.f32 %v1891_v23, %v655_v24 }
 0x317   :  { %v1892_v29 = vmul.f32 -1.442695, %v657_v28  ;;  %v665_v30 = vrot.slane %v657_v28, 2  ;;  %v676_v33 = vrot.slane %v657_v28, 6  ;;  %v673_v43 = vrot.slane %v657_v28, 4  ;;  %v1895_v28 = vld [vmem:[%s3435_s0 + $0x18] sm:$0xff] }
 0x319   :  { %2583 = vpow2.f32 %v1892_v29  ;;  %v1893_v32 = vmul.f32 -1.442695, %v665_v30  ;;  %v1894_v38 = vmul.f32 -1.442695, %v676_v33 }
 0x31b   :  { %2585 = vpow2.f32 %v1893_v32 }
 0x31c   :  { %2587 = vpow2.f32 %v1894_v38 }
 0x323   :  { %v2584_v41 = vpop.eup %2583 }
 0x324   :  { %v661_v45 = vadd.f32 1.0, %v2584_v41 }
 0x325   :  { %v2586_v48 = vpop.eup %2585 }
 0x326   :  { %2589 = vrcp.f32 %v661_v45  ;;  %v670_v49 = vadd.f32 1.0, %v2586_v48  ;;  %v2588_v50 = vpop.eup %2587 }
 0x327   :  { %2591 = vtanh.f32 %v673_v43  ;;  %v681_v60 = vadd.f32 1.0, %v2588_v50 }
 0x328   :  { %2593 = vrcp.f32 %v670_v49 }
 0x329   :  { %2595 = vrcp.f32 %v681_v60 }
 0x330   :  { %v2590_v54 = vpop.eup %2589 }
 0x331   :  { %v2592_v55 = vpop.eup %2591 }
 0x332   :  { %v2594_v58 = vpop.eup %2593  ;;  %v685_v2 = vmul.f32 %v2592_v55, %v2590_v54 }
 0x333   :  { %v684_v62 = vmul.f32 %v2594_v58, %v3121_v61  ;;  %v2596_v56 = vpop.eup %2595 }
 0x335   :  { %v3164_v4 = vadd.f32 %v685_v2, %v684_v62 }
 0x337   :  { %2597 = vtanh.f32 %v3164_v4 }
 0x341   :  { %v2598_v5 = vpop.eup %2597 }
 0x342   :  { %v688_v10 = vmul.f32 %v2598_v5, %v2596_v56 }
 0x344   :  { %756 = vmatmul.mubr.f32.vlgmr.msra.gmra.mrb[6].mxu0 %v688_v10  ;;  %827 = vmatmul.mubr.f32.vlgmr.msra.gmra.mrb[6].mxu1 %v688_v10 }
 0x345   :  { %2257 = vmatpush1.bf16.msra.mxu0 %v2769_v9  ;;  %2289 = vmatpush1.bf16.msra.mxu1 %v2781_v13 }
 0x346   :  { %2259 = vmatprep.subr.bf16.mxu0 %v2794_v17  ;;  %2291 = vmatprep.subr.bf16.mxu1 %v2796_v18 }
 0x347   :  { %953 = vmatprep.mubr.f32.mxu0 %v2703_v7  ;;  %1024 = vmatprep.mubr.f32.mxu1 %v2703_v7 }
 0x349   :  { %2261 = vmatpush1.bf16.msra.mxu0 %v2808_v22  ;;  %2293 = vmatpush1.bf16.msra.mxu1 %v2821_v26 }
 0x34a   :  { %2263 = vmatprep.subr.bf16.mxu0 %v2823_v27  ;;  %2295 = vmatprep.subr.bf16.mxu1 %v2834_v31 }
 0x34d   :  { %2265 = vmatpush1.bf16.msra.mxu0 %v2846_v35  ;;  %2297 = vmatpush1.bf16.msra.mxu1 %v2859_v39 }
 0x34e   :  { %2267 = vmatprep.subr.bf16.mxu0 %v2861_v40  ;;  %2299 = vmatprep.subr.bf16.mxu1 %v2873_v44 }
 0x351   :  { %2269 = vmatpush1.bf16.msra.mxu0 %v2894_v51  ;;  %2301 = vmatpush1.bf16.msra.mxu1 %v2898_v52 }
 0x352   :  { %2271 = vmatprep.subr.bf16.mxu0 %v2900_v53  ;;  %2303 = vmatprep.subr.bf16.mxu1 %v2912_v57 }
 0x355   :  { %2273 = vmatpush1.bf16.msra.mxu0 %v2930_v63  ;;  %2305 = vmatpush1.bf16.msra.mxu1 %v2934_v0 }
 0x356   :  { %2275 = vmatprep.subr.bf16.mxu0 %v2936_v1  ;;  %2307 = vmatprep.subr.bf16.mxu1 %v2948_v6 }
 0x359   :  { %2277 = vmatpush1.bf16.msra.mxu0 %v2966_v16  ;;  %2309 = vmatpush1.bf16.msra.mxu1 %v2973_v20 }
 0x35a   :  { %2279 = vmatprep.subr.bf16.mxu0 %v2975_v21  ;;  %2311 = vmatprep.subr.bf16.mxu1 %v2984_v25 }
 0x35d   :  { %2281 = vmatpush1.bf16.msra.mxu0 %v3002_v34  ;;  %2313 = vmatpush1.bf16.msra.mxu1 %v3006_v36 }
 0x35e   :  { %2283 = vmatprep.subr.bf16.mxu0 %v3008_v37  ;;  %2315 = vmatprep.subr.bf16.mxu1 %v3017_v42 }
 0x361   :  { %2285 = vmatpush1.bf16.msra.mxu0 %v3026_v46  ;;  %2317 = vmatpush1.bf16.msra.mxu1 %v3030_v47 }
 0x362   :  { %2319 = vmatprep.subr.bf16.mxu0 %v2752_v3  ;;  %2351 = vmatprep.subr.bf16.mxu1 %v2767_v8 }
 0x417   :  { %v757_v61 = vpop.f32.mrb[6].mxu0  ;;  %v828_v11 = vpop.f32.mrb[6].mxu1 }
 0x418   :  { %v759_v12 = vpop.f32.mrb[7].mxu0  ;;  %v830_v14 = vpop.f32.mrb[7].mxu1 }
 0x419   :  { %v837_v15 = vcombine.low %v757_v61, %v759_v12  ;;  %v838_v19 = vcombine.low %v828_v11, %v830_v14 }
 0x41b   :  { %v845_v23 = vrot.slane %v837_v15, %v3071_v59  ;;  %v852_v24 = vrot.slane %v838_v19, %v3071_v59 }
 0x41d   :  { %v853_v29 = vcombine.low %v845_v23, %v852_v24 }
 0x41f   :  { %v855_v30 = vadd.f32 %v1895_v28, %v853_v29 }
 0x421   :  { %v1896_v32 = vmul.f32 -1.442695, %v855_v30  ;;  %v863_v33 = vrot.slane %v855_v30, 2  ;;  %v874_v41 = vrot.slane %v855_v30, 6  ;;  %v871_v48 = vrot.slane %v855_v30, 4  ;;  %v1899_v30 = vld [vmem:[%s3435_s0 + $0x20] sm:$0xff] }
 0x423   :  { %2599 = vpow2.f32 %v1896_v32  ;;  %v1897_v38 = vmul.f32 -1.442695, %v863_v33  ;;  %v1898_v43 = vmul.f32 -1.442695, %v874_v41 }
 0x425   :  { %2601 = vpow2.f32 %v1897_v38 }
 0x426   :  { %2603 = vpow2.f32 %v1898_v43 }
 0x42d   :  { %v2600_v45 = vpop.eup %2599 }
 0x42e   :  { %v859_v49 = vadd.f32 1.0, %v2600_v45 }
 0x42f   :  { %v2602_v50 = vpop.eup %2601 }
 0x430   :  { %2605 = vrcp.f32 %v859_v49  ;;  %v868_v54 = vadd.f32 1.0, %v2602_v50  ;;  %v2604_v55 = vpop.eup %2603 }
 0x431   :  { %2607 = vtanh.f32 %v871_v48  ;;  %v879_v2 = vadd.f32 1.0, %v2604_v55 }
 0x432   :  { %2609 = vrcp.f32 %v868_v54 }
 0x433   :  { %2611 = vrcp.f32 %v879_v2 }
 0x43a   :  { %v2606_v58 = vpop.eup %2605 }
 0x43b   :  { %v2608_v60 = vpop.eup %2607 }
 0x43c   :  { %v2610_v62 = vpop.eup %2609  ;;  %v883_v5 = vmul.f32 %v2608_v60, %v2606_v58 }
 0x43d   :  { %v882_v56 = vmul.f32 %v2610_v62, %v3164_v4  ;;  %v2612_v61 = vpop.eup %2611 }
 0x43f   :  { %v3207_v10 = vadd.f32 %v883_v5, %v882_v56 }
 0x441   :  { %2613 = vtanh.f32 %v3207_v10 }
 0x44b   :  { %v2614_v11 = vpop.eup %2613 }
 0x44c   :  { %v886_v12 = vmul.f32 %v2614_v11, %v2612_v61 }
 0x44e   :  { %954 = vmatmul.mubr.f32.vlgmr.msra.gmra.mrb[8].mxu0 %v886_v12  ;;  %1025 = vmatmul.mubr.f32.vlgmr.msra.gmra.mrb[8].mxu1 %v886_v12 }
 0x44f   :  { %2321 = vmatpush1.bf16.msra.mxu0 %v2769_v9  ;;  %2353 = vmatpush1.bf16.msra.mxu1 %v2781_v13 }
 0x450   :  { %2323 = vmatprep.subr.bf16.mxu0 %v2794_v17  ;;  %2355 = vmatprep.subr.bf16.mxu1 %v2796_v18 }
 0x451   :  { %1151 = vmatprep.mubr.f32.mxu0 %v2703_v7  ;;  %1222 = vmatprep.mubr.f32.mxu1 %v2703_v7 }
 0x453   :  { %2325 = vmatpush1.bf16.msra.mxu0 %v2808_v22  ;;  %2357 = vmatpush1.bf16.msra.mxu1 %v2821_v26 }
 0x454   :  { %2327 = vmatprep.subr.bf16.mxu0 %v2823_v27  ;;  %2359 = vmatprep.subr.bf16.mxu1 %v2834_v31 }
 0x457   :  { %2329 = vmatpush1.bf16.msra.mxu0 %v2846_v35  ;;  %2361 = vmatpush1.bf16.msra.mxu1 %v2859_v39 }
 0x458   :  { %2331 = vmatprep.subr.bf16.mxu0 %v2861_v40  ;;  %2363 = vmatprep.subr.bf16.mxu1 %v2873_v44 }
 0x45b   :  { %2333 = vmatpush1.bf16.msra.mxu0 %v2894_v51  ;;  %2365 = vmatpush1.bf16.msra.mxu1 %v2898_v52 }
 0x45c   :  { %2335 = vmatprep.subr.bf16.mxu0 %v2900_v53  ;;  %2367 = vmatprep.subr.bf16.mxu1 %v2912_v57 }
 0x45f   :  { %2337 = vmatpush1.bf16.msra.mxu0 %v2930_v63  ;;  %2369 = vmatpush1.bf16.msra.mxu1 %v2934_v0 }
 0x460   :  { %2339 = vmatprep.subr.bf16.mxu0 %v2936_v1  ;;  %2371 = vmatprep.subr.bf16.mxu1 %v2948_v6 }
 0x463   :  { %2341 = vmatpush1.bf16.msra.mxu0 %v2966_v16  ;;  %2373 = vmatpush1.bf16.msra.mxu1 %v2973_v20 }
 0x464   :  { %2343 = vmatprep.subr.bf16.mxu0 %v2975_v21  ;;  %2375 = vmatprep.subr.bf16.mxu1 %v2984_v25 }
 0x467   :  { %2345 = vmatpush1.bf16.msra.mxu0 %v3002_v34  ;;  %2377 = vmatpush1.bf16.msra.mxu1 %v3006_v36 }
 0x468   :  { %2347 = vmatprep.subr.bf16.mxu0 %v3008_v37  ;;  %2379 = vmatprep.subr.bf16.mxu1 %v3017_v42 }
 0x46b   :  { %2349 = vmatpush1.bf16.msra.mxu0 %v3026_v46  ;;  %2381 = vmatpush1.bf16.msra.mxu1 %v3030_v47 }
 0x46c   :  { %2383 = vmatprep.subr.bf16.mxu0 %v2752_v3  ;;  %2415 = vmatprep.subr.bf16.mxu1 %v2767_v8 }
 0x521   :  { %v955_v4 = vpop.f32.mrb[8].mxu0  ;;  %v1026_v14 = vpop.f32.mrb[8].mxu1 }
 0x522   :  { %v957_v15 = vpop.f32.mrb[9].mxu0  ;;  %v1028_v19 = vpop.f32.mrb[9].mxu1 }
 0x523   :  { %v1035_v23 = vcombine.low %v955_v4, %v957_v15  ;;  %v1036_v24 = vcombine.low %v1026_v14, %v1028_v19 }
 0x525   :  { %v1043_v28 = vrot.slane %v1035_v23, %v3071_v59  ;;  %v1050_v29 = vrot.slane %v1036_v24, %v3071_v59 }
 0x527   :  { %v1051_v32 = vcombine.low %v1043_v28, %v1050_v29 }
 0x529   :  { %v1053_v33 = vadd.f32 %v1899_v30, %v1051_v32 }
 0x52b   :  { %v1900_v38 = vmul.f32 -1.442695, %v1053_v33  ;;  %v1061_v41 = vrot.slane %v1053_v33, 2  ;;  %v1072_v45 = vrot.slane %v1053_v33, 6  ;;  %v1069_v50 = vrot.slane %v1053_v33, 4  ;;  %v1903_v33 = vld [vmem:[%s3435_s0 + $0x28] sm:$0xff] }
 0x52d   :  { %2615 = vpow2.f32 %v1900_v38  ;;  %v1901_v43 = vmul.f32 -1.442695, %v1061_v41  ;;  %v1902_v48 = vmul.f32 -1.442695, %v1072_v45 }
 0x52f   :  { %2617 = vpow2.f32 %v1901_v43 }
 0x530   :  { %2619 = vpow2.f32 %v1902_v48 }
 0x537   :  { %v2616_v49 = vpop.eup %2615 }
 0x538   :  { %v1057_v54 = vadd.f32 1.0, %v2616_v49 }
 0x539   :  { %v2618_v55 = vpop.eup %2617 }
 0x53a   :  { %2621 = vrcp.f32 %v1057_v54  ;;  %v1066_v58 = vadd.f32 1.0, %v2618_v55  ;;  %v2620_v60 = vpop.eup %2619 }
 0x53b   :  { %2623 = vtanh.f32 %v1069_v50  ;;  %v1077_v5 = vadd.f32 1.0, %v2620_v60 }
 0x53c   :  { %2625 = vrcp.f32 %v1066_v58 }
 0x53d   :  { %2627 = vrcp.f32 %v1077_v5 }
 0x544   :  { %v2622_v62 = vpop.eup %2621 }
 0x545   :  { %v2624_v2 = vpop.eup %2623 }
 0x546   :  { %v2626_v56 = vpop.eup %2625  ;;  %v1081_v11 = vmul.f32 %v2624_v2, %v2622_v62 }
 0x547   :  { %v1080_v61 = vmul.f32 %v2626_v56, %v3207_v10  ;;  %v2628_v4 = vpop.eup %2627 }
 0x549   :  { %v3250_v12 = vadd.f32 %v1081_v11, %v1080_v61 }
 0x54b   :  { %2629 = vtanh.f32 %v3250_v12 }
 0x555   :  { %v2630_v14 = vpop.eup %2629 }
 0x556   :  { %v1084_v15 = vmul.f32 %v2630_v14, %v2628_v4 }
 0x558   :  { %1152 = vmatmul.mubr.f32.vlgmr.msra.gmra.mrb[10].mxu0 %v1084_v15  ;;  %1223 = vmatmul.mubr.f32.vlgmr.msra.gmra.mrb[10].mxu1 %v1084_v15 }
 0x559   :  { %2385 = vmatpush1.bf16.msra.mxu0 %v2769_v9  ;;  %2417 = vmatpush1.bf16.msra.mxu1 %v2781_v13 }
 0x55a   :  { %2387 = vmatprep.subr.bf16.mxu0 %v2794_v17  ;;  %2419 = vmatprep.subr.bf16.mxu1 %v2796_v18 }
 0x55b   :  { %1349 = vmatprep.mubr.f32.mxu0 %v2703_v7  ;;  %1420 = vmatprep.mubr.f32.mxu1 %v2703_v7 }
 0x55d   :  { %2389 = vmatpush1.bf16.msra.mxu0 %v2808_v22  ;;  %2421 = vmatpush1.bf16.msra.mxu1 %v2821_v26 }
 0x55e   :  { %2391 = vmatprep.subr.bf16.mxu0 %v2823_v27  ;;  %2423 = vmatprep.subr.bf16.mxu1 %v2834_v31 }
 0x561   :  { %2393 = vmatpush1.bf16.msra.mxu0 %v2846_v35  ;;  %2425 = vmatpush1.bf16.msra.mxu1 %v2859_v39 }
 0x562   :  { %2395 = vmatprep.subr.bf16.mxu0 %v2861_v40  ;;  %2427 = vmatprep.subr.bf16.mxu1 %v2873_v44 }
 0x565   :  { %2397 = vmatpush1.bf16.msra.mxu0 %v2894_v51  ;;  %2429 = vmatpush1.bf16.msra.mxu1 %v2898_v52 }
 0x566   :  { %2399 = vmatprep.subr.bf16.mxu0 %v2900_v53  ;;  %2431 = vmatprep.subr.bf16.mxu1 %v2912_v57 }
 0x569   :  { %2401 = vmatpush1.bf16.msra.mxu0 %v2930_v63  ;;  %2433 = vmatpush1.bf16.msra.mxu1 %v2934_v0 }
 0x56a   :  { %2403 = vmatprep.subr.bf16.mxu0 %v2936_v1  ;;  %2435 = vmatprep.subr.bf16.mxu1 %v2948_v6 }
 0x56d   :  { %2405 = vmatpush1.bf16.msra.mxu0 %v2966_v16  ;;  %2437 = vmatpush1.bf16.msra.mxu1 %v2973_v20 }
 0x56e   :  { %2407 = vmatprep.subr.bf16.mxu0 %v2975_v21  ;;  %2439 = vmatprep.subr.bf16.mxu1 %v2984_v25 }
 0x571   :  { %2409 = vmatpush1.bf16.msra.mxu0 %v3002_v34  ;;  %2441 = vmatpush1.bf16.msra.mxu1 %v3006_v36 }
 0x572   :  { %2411 = vmatprep.subr.bf16.mxu0 %v3008_v37  ;;  %2443 = vmatprep.subr.bf16.mxu1 %v3017_v42 }
 0x575   :  { %2413 = vmatpush1.bf16.msra.mxu0 %v3026_v46  ;;  %2445 = vmatpush1.bf16.msra.mxu1 %v3030_v47 }
 0x576   :  { %2447 = vmatprep.subr.bf16.mxu0 %v2752_v3  ;;  %2479 = vmatprep.subr.bf16.mxu1 %v2767_v8 }
 0x62b   :  { %v1153_v10 = vpop.f32.mrb[10].mxu0  ;;  %v1224_v19 = vpop.f32.mrb[10].mxu1 }
 0x62c   :  { %v1155_v23 = vpop.f32.mrb[11].mxu0  ;;  %v1226_v24 = vpop.f32.mrb[11].mxu1 }
 0x62d   :  { %v1233_v28 = vcombine.low %v1153_v10, %v1155_v23  ;;  %v1234_v29 = vcombine.low %v1224_v19, %v1226_v24  ;;  %v1685_v23 = vld [vmem:[%s3437_s2] sm:$0xff]  ;;  %v1686_v24 = vld [vmem:[%s3437_s2 + $0x8] sm:$0xff] }
 0x62f   :  { %v1241_v30 = vrot.slane %v1233_v28, %v3071_v59  ;;  %v1248_v32 = vrot.slane %v1234_v29, %v3071_v59  ;;  %v2511_v28 = vpack.c.bf16 %v1686_v24, %v1685_v23  ;;  %v2705_v29 = vmov 0.0|0.0  }
 0x631   :  { %v1249_v38 = vcombine.low %v1241_v30, %v1248_v32  ;;  %v1687_v30 = vld [vmem:[%s3437_s2 + $0x10] sm:$0xff]  ;;  %v1688_v32 = vld [vmem:[%s3437_s2 + $0x18] sm:$0xff] }
 0x633   :  { %v1251_v41 = vadd.f32 %v1903_v33, %v1249_v38  ;;  %v1689_v33 = vld [vmem:[%s3437_s2 + $0x20] sm:$0xff]  ;;  %v2514_v38 = vpack.c.bf16 %v1688_v32, %v1687_v30  ;;  %v1785_v30 = vld [vmem:[%s3439_s4 + $0x30] sm:$0xff]  ;;  %v1786_v32 = vld [vmem:[%s3439_s4 + $0x38] sm:$0xff] }
 0x635   :  { %v1904_v43 = vmul.f32 -1.442695, %v1251_v41  ;;  %v1259_v3 = vrot.slane %v1251_v41, 2  ;;  %v1270_v45 = vrot.slane %v1251_v41, 6  ;;  %v1267_v50 = vrot.slane %v1251_v41, 4  ;;  %v1690_v41 = vld [vmem:[%s3437_s2 + $0x28] sm:$0xff] }
 0x637   :  { %2631 = vpow2.f32 %v1904_v43  ;;  %v1905_v8 = vmul.f32 -1.442695, %v1259_v3  ;;  %v1906_v48 = vmul.f32 -1.442695, %v1270_v45  ;;  %v2517_v43 = vpack.c.bf16 %v1690_v41, %v1689_v33  ;;  %v1691_v3 = vld [vmem:[%s3437_s2 + $0x30] sm:$0xff] }
 0x638   :  { %v1915_v33 = vld [vmem:[%s3438_s3] ss:$0 sm:$0xff] }
 0x639   :  { %2633 = vpow2.f32 %v1905_v8  ;;  %v1692_v8 = vld [vmem:[%s3437_s2 + $0x38] sm:$0xff] }
 0x63a   :  { %2635 = vpow2.f32 %v1906_v48  ;;  %v2520_v45 = vpack.c.bf16 %v1692_v8, %v1691_v3  ;;  %v1693_v48 = vld [vmem:[%s3437_s2 + $0x40] sm:$0xff] }
 0x63b   :  { %v1916_v8 = vld [vmem:[%s3440_s5] ss:$0 sm:$0xff] }
 0x641   :  { %v2632_v49 = vpop.eup %2631 }
 0x642   :  { %v1255_v54 = vadd.f32 1.0, %v2632_v49 }
 0x643   :  { %v2634_v55 = vpop.eup %2633 }
 0x644   :  { %2637 = vrcp.f32 %v1255_v54  ;;  %v1264_v58 = vadd.f32 1.0, %v2634_v55  ;;  %v2636_v60 = vpop.eup %2635  ;;  %v1696_v54 = vld [vmem:[%s3437_s2 + $0x58] sm:$0xff] }
 0x645   :  { %2639 = vtanh.f32 %v1267_v50  ;;  %v1275_v5 = vadd.f32 1.0, %v2636_v60  ;;  %v1695_v50 = vld [vmem:[%s3437_s2 + $0x50] sm:$0xff]  ;;  %v1698_v60 = vld [vmem:[%s3437_s2 + $0x68] sm:$0xff] }
 0x646   :  { %2641 = vrcp.f32 %v1264_v58  ;;  %v2526_v55 = vpack.c.bf16 %v1696_v54, %v1695_v50  ;;  %v1697_v58 = vld [vmem:[%s3437_s2 + $0x60] sm:$0xff] }
 0x647   :  { %2643 = vrcp.f32 %v1275_v5 }
 0x64e   :  { %v2638_v62 = vpop.eup %2637 }
 0x64f   :  { %v2640_v2 = vpop.eup %2639 }
 0x650   :  { %v2642_v56 = vpop.eup %2641  ;;  %v1279_v11 = vmul.f32 %v2640_v2, %v2638_v62  ;;  %v2529_v62 = vpack.c.bf16 %v1698_v60, %v1697_v58  ;;  %v1699_v2 = vld [vmem:[%s3437_s2 + $0x70] sm:$0xff] }
 0x651   :  { %v1278_v61 = vmul.f32 %v2642_v56, %v3250_v12  ;;  %v2644_v14 = vpop.eup %2643  ;;  %v1700_v56 = vld [vmem:[%s3437_s2 + $0x78] sm:$0xff] }
 0x652   :  { %v2532_v5 = vpack.c.bf16 %v1700_v56, %v1699_v2 }
 0x653   :  { %v3293_v4 = vadd.f32 %v1279_v11, %v1278_v61  ;;  %v1779_v61 = vld [vmem:[%s3439_s4] sm:$0xff]  ;;  %v1780_v11 = vld [vmem:[%s3439_s4 + $0x8] sm:$0xff] }
 0x655   :  { %2645 = vtanh.f32 %v3293_v4 }
 0x65f   :  { %v2646_v15 = vpop.eup %2645 }
 0x660   :  { %v1282_v10 = vmul.f32 %v2646_v15, %v2644_v14  ;;  %v2535_v14 = vpack.c.bf16 %v1780_v11, %v1779_v61  ;;  %v1782_v15 = vld [vmem:[%s3439_s4 + $0x18] sm:$0xff] }
 0x662   :  { %1350 = vmatmul.mubr.f32.vlgmr.msra.gmra.mrb[12].mxu0 %v1282_v10  ;;  %1421 = vmatmul.mubr.f32.vlgmr.msra.gmra.mrb[12].mxu1 %v1282_v10 }
 0x663   :  { %2449 = vmatpush1.bf16.msra.mxu0 %v2769_v9  ;;  %2481 = vmatpush1.bf16.msra.mxu1 %v2781_v13 }
 0x664   :  { %2451 = vmatprep.subr.bf16.mxu0 %v2794_v17  ;;  %2483 = vmatprep.subr.bf16.mxu1 %v2796_v18 }
 0x665   :  { %1547 = vmatprep.mubr.f32.mxu0 %v2703_v7  ;;  %1618 = vmatprep.mubr.f32.mxu1 %v2703_v7 }
 0x667   :  { %2453 = vmatpush1.bf16.msra.mxu0 %v2808_v22  ;;  %2485 = vmatpush1.bf16.msra.mxu1 %v2821_v26 }
 0x668   :  { %2455 = vmatprep.subr.bf16.mxu0 %v2823_v27  ;;  %2487 = vmatprep.subr.bf16.mxu1 %v2834_v31 }
 0x66b   :  { %2457 = vmatpush1.bf16.msra.mxu0 %v2846_v35  ;;  %2489 = vmatpush1.bf16.msra.mxu1 %v2859_v39  ;;  %v1907_v35 = vld [vmem:[%s3435_s0 + $0x30] sm:$0xff] }
 0x66c   :  { %2459 = vmatprep.subr.bf16.mxu0 %v2861_v40  ;;  %2491 = vmatprep.subr.bf16.mxu1 %v2873_v44 }
 0x66f   :  { %2461 = vmatpush1.bf16.msra.mxu0 %v2894_v51  ;;  %2493 = vmatpush1.bf16.msra.mxu1 %v2898_v52 }
 0x670   :  { %2463 = vmatprep.subr.bf16.mxu0 %v2900_v53  ;;  %2495 = vmatprep.subr.bf16.mxu1 %v2912_v57 }
 0x673   :  { %2465 = vmatpush1.bf16.msra.mxu0 %v2930_v63  ;;  %2497 = vmatpush1.bf16.msra.mxu1 %v2934_v0 }
 0x674   :  { %2467 = vmatprep.subr.bf16.mxu0 %v2936_v1  ;;  %2499 = vmatprep.subr.bf16.mxu1 %v2948_v6 }
 0x677   :  { %2469 = vmatpush1.bf16.msra.mxu0 %v2966_v16  ;;  %2501 = vmatpush1.bf16.msra.mxu1 %v2973_v20 }
 0x678   :  { %2471 = vmatprep.subr.bf16.mxu0 %v2975_v21  ;;  %2503 = vmatprep.subr.bf16.mxu1 %v2984_v25 }
 0x67b   :  { %2473 = vmatpush1.bf16.msra.mxu0 %v3002_v34  ;;  %2505 = vmatpush1.bf16.msra.mxu1 %v3006_v36 }
 0x67c   :  { %2475 = vmatprep.subr.bf16.mxu0 %v3008_v37  ;;  %2507 = vmatprep.subr.bf16.mxu1 %v3017_v42 }
 0x67f   :  { %2477 = vmatpush1.bf16.msra.mxu0 %v3026_v46  ;;  %2509 = vmatpush1.bf16.msra.mxu1 %v3030_v47 }
 0x680   :  { %2510 = vmatprep.subr.bf16.mxu0 %v2705_v29  ;;  %2534 = vmatprep.subr.bf16.mxu1 %v2705_v29 }
 0x735   :  { %v1351_v9 = vpop.f32.mrb[12].mxu0  ;;  %v1422_v13 = vpop.f32.mrb[12].mxu1 }
 0x736   :  { %v1353_v17 = vpop.f32.mrb[13].mxu0  ;;  %v1424_v18 = vpop.f32.mrb[13].mxu1 }
 0x737   :  { %v1431_v22 = vcombine.low %v1351_v9, %v1353_v17  ;;  %v1432_v26 = vcombine.low %v1422_v13, %v1424_v18  ;;  %v1783_v9 = vld [vmem:[%s3439_s4 + $0x20] sm:$0xff]  ;;  %v1784_v13 = vld [vmem:[%s3439_s4 + $0x28] sm:$0xff] }
 0x738   :  { %v2541_v17 = vpack.c.bf16 %v1784_v13, %v1783_v9 }
 0x739   :  { %v1439_v27 = vrot.slane %v1431_v22, %v3071_v59  ;;  %v1446_v31 = vrot.slane %v1432_v26, %v3071_v59 }
 0x73b   :  { %v1447_v39 = vcombine.low %v1439_v27, %v1446_v31 }
 0x73d   :  { %v1449_v40 = vadd.f32 %v1907_v35, %v1447_v39 }
 0x73f   :  { %v1908_v44 = vmul.f32 -1.442695, %v1449_v40  ;;  %v1457_v51 = vrot.slane %v1449_v40, 2  ;;  %v1468_v53 = vrot.slane %v1449_v40, 6  ;;  %v1465_v0 = vrot.slane %v1449_v40, 4 }
 0x741   :  { %2647 = vpow2.f32 %v1908_v44  ;;  %v1909_v52 = vmul.f32 -1.442695, %v1457_v51  ;;  %v1910_v57 = vmul.f32 -1.442695, %v1468_v53  ;;  %v1911_v44 = vld [vmem:[%s3435_s0 + $0x38] sm:$0xff] }
 0x743   :  { %2649 = vpow2.f32 %v1909_v52 }
 0x744   :  { %2651 = vpow2.f32 %v1910_v57 }
 0x74b   :  { %v2648_v63 = vpop.eup %2647 }
 0x74c   :  { %v1453_v1 = vadd.f32 1.0, %v2648_v63 }
 0x74d   :  { %v2650_v6 = vpop.eup %2649 }
 0x74e   :  { %2653 = vrcp.f32 %v1453_v1  ;;  %v1462_v16 = vadd.f32 1.0, %v2650_v6  ;;  %v2652_v20 = vpop.eup %2651 }
 0x74f   :  { %2655 = vtanh.f32 %v1465_v0  ;;  %v1473_v36 = vadd.f32 1.0, %v2652_v20 }
 0x750   :  { %2657 = vrcp.f32 %v1462_v16 }
 0x751   :  { %2659 = vrcp.f32 %v1473_v36 }
 0x758   :  { %v2654_v21 = vpop.eup %2653 }
 0x759   :  { %v2656_v25 = vpop.eup %2655 }
 0x75a   :  { %v2658_v34 = vpop.eup %2657  ;;  %v1477_v42 = vmul.f32 %v2656_v25, %v2654_v21 }
 0x75b   :  { %v1476_v37 = vmul.f32 %v2658_v34, %v3293_v4  ;;  %v2660_v47 = vpop.eup %2659  ;;  %v1781_v4 = vld [vmem:[%s3439_s4 + $0x10] sm:$0xff]  ;;  %s2679_s4 = scalar_lea.vmem %s1877_s21, 32 }
 0x75c   :  { %v2538_v10 = vpack.c.bf16 %v1782_v15, %v1781_v4  ;;  %p2680_p0 = scmp.ne.s32.totalorder %s1877_s21, %s2679_s4  ;;  %p2685_p2 = scmp.lt.s32.totalorder %s2679_s4, %s2679_s4 }
 0x75d   :  { %v3334_v46 = vadd.f32 %v1477_v42, %v1476_v37 }
 0x75e   :  { %p2686_p3 = por %p2685_p2, %p2684_p1 }
 0x75f   :  { %2661 = vtanh.f32 %v3334_v46 }
 0x760   :  { %p2687_p4 = pnand %p2686_p3, %p2680_p0 }
 0x769   :  { %v2662_v12 = vpop.eup %2661 }
 0x76a   :  { %v1480_v19 = vmul.f32 %v2662_v12, %v2660_v47 }
 0x76c   :  { %1548 = vmatmul.mubr.f32.vlgmr.msra.gmra.mrb[14].mxu0 %v1480_v19  ;;  %1619 = vmatmul.mubr.f32.vlgmr.msra.gmra.mrb[14].mxu1 %v1480_v19 }
 0x76d   :  { %2512 = vmatpush3.bf16.msra.mxu0 %v2511_v28  ;;  %1976 = vmatprep.mubr.msk.f32.mxu0 %vm2706_vm0, %v2703_v7 }
 0x76e   :  { %2513 = vmatprep.subr.bf16.mxu0 %v2705_v29  ;;  %1995 = vmatprep.mubr.msk.f32.mxu1 %vm2706_vm0, %v2703_v7  ;;  %v1694_v7 = vld [vmem:[%s3437_s2 + $0x48] sm:$0xff] }
 0x76f   :  { %v2523_v49 = vpack.c.bf16 %v1694_v7, %v1693_v48  ;;  %2536 = vmatpush3.bf16.msra.mxu1 %v2535_v14 }
 0x770   :  { %2537 = vmatprep.subr.bf16.mxu1 %v2705_v29 }
 0x771   :  { %2515 = vmatpush3.bf16.msra.mxu0 %v2514_v38 }
 0x772   :  { %2516 = vmatprep.subr.bf16.mxu0 %v2705_v29 }
 0x773   :  { %2539 = vmatpush3.bf16.msra.mxu1 %v2538_v10 }
 0x774   :  { %2540 = vmatprep.subr.bf16.mxu1 %v2705_v29 }
 0x775   :  { %2518 = vmatpush3.bf16.msra.mxu0 %v2517_v43 }
 0x776   :  { %2519 = vmatprep.subr.bf16.mxu0 %v2705_v29 }
 0x777   :  { %2542 = vmatpush3.bf16.msra.mxu1 %v2541_v17 }
 0x778   :  { %2543 = vmatprep.subr.bf16.mxu1 %v2705_v29 }
 0x779   :  { %2521 = vmatpush3.bf16.msra.mxu0 %v2520_v45 }
 0x77a   :  { %2522 = vmatprep.subr.bf16.mxu0 %v2705_v29 }
 0x77d   :  { %2524 = vmatpush3.bf16.msra.mxu0 %v2523_v49 }
 0x77e   :  { %2525 = vmatprep.subr.bf16.mxu0 %v2705_v29 }
 0x781   :  { %2527 = vmatpush3.bf16.msra.mxu0 %v2526_v55 }
 0x782   :  { %2528 = vmatprep.subr.bf16.mxu0 %v2705_v29 }
 0x785   :  { %2530 = vmatpush3.bf16.msra.mxu0 %v2529_v62 }
 0x786   :  { %2531 = vmatprep.subr.bf16.mxu0 %v2705_v29 }
 0x789   :  { %2533 = vmatpush3.bf16.msra.mxu0 %v2532_v5 }
 0x83f   :  { %v1549_v18 = vpop.f32.mrb[14].mxu0  ;;  %v1620_v22 = vpop.f32.mrb[14].mxu1 }
 0x840   :  { %v1551_v26 = vpop.f32.mrb[15].mxu0  ;;  %v1622_v27 = vpop.f32.mrb[15].mxu1 }
 0x841   :  { %v1629_v31 = vcombine.low %v1549_v18, %v1551_v26  ;;  %v1630_v35 = vcombine.low %v1620_v22, %v1622_v27 }
 0x843   :  { %v1637_v39 = vrot.slane %v1629_v31, %v3071_v59  ;;  %v1644_v40 = vrot.slane %v1630_v35, %v3071_v59 }
 0x845   :  { %v1645_v51 = vcombine.low %v1637_v39, %v1644_v40 }
 0x847   :  { %v1647_v52 = vadd.f32 %v1911_v44, %v1645_v51 }
 0x849   :  { %v1912_v53 = vmul.f32 -1.442695, %v1647_v52  ;;  %v1655_v57 = vrot.slane %v1647_v52, 2  ;;  %v1666_v0 = vrot.slane %v1647_v52, 6  ;;  %v1663_v16 = vrot.slane %v1647_v52, 4 }
 0x84b   :  { %2663 = vpow2.f32 %v1912_v53  ;;  %v1913_v63 = vmul.f32 -1.442695, %v1655_v57  ;;  %v1914_v1 = vmul.f32 -1.442695, %v1666_v0 }
 0x84d   :  { %2665 = vpow2.f32 %v1913_v63 }
 0x84e   :  { %2667 = vpow2.f32 %v1914_v1 }
 0x855   :  { %v2664_v6 = vpop.eup %2663 }
 0x856   :  { %v1651_v20 = vadd.f32 1.0, %v2664_v6 }
 0x857   :  { %v2666_v21 = vpop.eup %2665 }
 0x858   :  { %2669 = vrcp.f32 %v1651_v20  ;;  %v1660_v59 = vadd.f32 1.0, %v2666_v21  ;;  %v2668_v25 = vpop.eup %2667 }
 0x859   :  { %2671 = vtanh.f32 %v1663_v16  ;;  %v1671_v42 = vadd.f32 1.0, %v2668_v25 }
 0x85a   :  { %2673 = vrcp.f32 %v1660_v59 }
 0x85b   :  { %2675 = vrcp.f32 %v1671_v42 }
 0x862   :  { %v2670_v34 = vpop.eup %2669 }
 0x863   :  { %v2672_v36 = vpop.eup %2671 }
 0x864   :  { %v2674_v37 = vpop.eup %2673  ;;  %v1675_v12 = vmul.f32 %v2672_v36, %v2670_v34 }
 0x865   :  { %v1674_v47 = vmul.f32 %v2674_v37, %v3334_v46  ;;  %v2676_v23 = vpop.eup %2675  ;;  %v2544_v46 = vpack.c.bf16 %v1786_v32, %v1785_v30 }
 0x867   :  { %v1676_v19 = vadd.f32 %v1675_v12, %v1674_v47  ;;  %2545 = vmatpush3.bf16.msra.mxu1 %v2544_v46 }
 0x869   :  { %2677 = vtanh.f32 %v1676_v19  ;;  %1680 = vst [vmem:[#allocation3] sm:$0x3] %v1676_v19 }
 0x873   :  { %v2678_v24 = vpop.eup %2677 }
 0x874   :  { %v1678_v28 = vmul.f32 %v2678_v24, %v2676_v23 }
 0x876   :  { %1679 = vst [vmem:[#allocation2] sm:$0x3] %v1678_v28  ;;  %v1684_v29 = vmax.f32 %v1678_v28, 0.0 }
 0x878   :  { %1977 = vmatmul.mubr.f32.vlgmr.msra.gmra.mrb[16].mxu0 %v1684_v29 }
 0x94b   :  { %v1774_v38 = vpop.f32.mrb[16].mxu0 }
 0x94c   :  { %v1775_v41 = vadd.f32 %v1915_v33, %v1774_v38  ;;  %v1978_v43 = vpop.f32.mrb[17].mxu0 }
 0x94e   :  { %v1778_v3 = vmax.f32 %v1775_v41, 0.0 }
 0x950   :  { %1996 = vmatmul.mubr.msk.f32.vlgmr.msra.gmra.mrb[16].mxu1 %vm1794_vm1, %v1778_v3 }
 0xa23   :  { %v1864_v45 = vpop.f32.mrb[16].mxu1 }
 0xa24   :  { %v1865_v48 = vadd.f32 %v1916_v8, %v1864_v45  ;;  %v1997_v7 = vpop.f32.mrb[17].mxu1 }
 0xa26   :  { %1869 = vst.msk [vmem:[#allocation4] sm:$0x3] %vm1868_vm2, %v1865_v48 }
 0xa27   :  { %2690 = shalt.err (!%p2687_p4)
}
 0xa28   :  { %s2691_s23 = scalar_lea.hbm %s3441_s6, 32 }
 0xa29   :  { %p2692_p5 = scmp.ne.s32.totalorder %s3441_s6, %s2691_s23  ;;  %p2695_p6 = scmp.lt.u32.totalorder %s2691_s23, %s3441_s6 }
 0xa2b   :  { %p2697_p7 = pnand %p2695_p6, %p2692_p5 }
 0xa2d   :  { %2700 = shalt.err (!%p2697_p7)
}
 0xa2e   :  { %1879 = dma.vmem_to_hbm [thread:$0]  %s1877_s21, 32, %s3441_s6, [#allocation5]  }
 0xa2f   :  { %2701 = dma.done.wait [#allocation5], 32  }
 0xa30   :  { %2702 = vsyncadd [#allocation5], 4294967264 }
 0xa31   :  { %1883 = vsyncpa [#allocation5], 1 }

</bundles_post_ra>
